<compile_context>
chip_gen: v5e
topology: v5e:2x2
jax: 0.10.0
libtpu: 0.0.40
codegen_flags: <defaults>
</compile_context>

<pallas_src>
import functools

import jax
import jax.numpy as jnp
from jax.experimental import pallas as pl
from jax.experimental.pallas import tpu as pltpu


def _round_up(x, m):
    return (x + m - 1) // m * m


def mlp_kernel(x_ref, w1_ref, b1_ref, w2_ref, b2_ref, w3_ref, b3_ref, o_ref):
    # Layer 1: Linear(D_in, 512) + ReLU  (bf16 operands, f32 MXU accumulation)
    h1 = jnp.dot(x_ref[...], w1_ref[...], preferred_element_type=jnp.float32)
    h1 = jnp.maximum(h1 + b1_ref[...], 0.0)
    # Layer 2: Linear(512, 256)  (no activation, matches the module)
    h2 = jnp.dot(h1.astype(jnp.bfloat16), w2_ref[...],
                 preferred_element_type=jnp.float32) + b2_ref[...]
    # Layer 3: Linear(256, classes_padded)
    o_ref[...] = (
        jnp.dot(h2.astype(jnp.bfloat16), w3_ref[...],
                preferred_element_type=jnp.float32) + b3_ref[...]
    ).astype(o_ref.dtype)


@functools.partial(jax.jit, static_argnames=())
def mlp_forward(x, w1, b1, w2, b2, w3, b3):
    B = x.shape[0]
    # nn.Flatten(): NCHW -> (B, C*H*W), row-major (C-order) like PyTorch.
    x2d = x.reshape(B, -1)
    D_in = x2d.shape[1]          # 32*32*C, always a multiple of 128
    H1 = w1.shape[1]             # 512
    H2 = w2.shape[1]             # 256
    classes = w3.shape[1]        # e.g. 10

    LANES = 128
    C_pad = _round_up(classes, LANES)        # lane-dense output slab
    TM = min(256, _round_up(B, 8))           # MXU-friendly batch tile
    B_pad = _round_up(B, TM)
    num_m = B_pad // TM

    # bf16 for x / weights, f32 biases. Pad batch rows and classes lanes.
    x_p = jnp.zeros((B_pad, D_in), jnp.bfloat16).at[:B].set(
        x2d.astype(jnp.bfloat16))
    w1_b = w1.astype(jnp.bfloat16)
    w2_b = w2.astype(jnp.bfloat16)
    w3_b = jnp.zeros((H2, C_pad), jnp.bfloat16).at[:, :classes].set(
        w3.astype(jnp.bfloat16))
    b1_f = b1.astype(jnp.float32)
    b2_f = b2.astype(jnp.float32)
    b3_p = jnp.zeros((1, C_pad), jnp.float32).at[:, :classes].set(
        b3.astype(jnp.float32))

    # Weights/biases: constant block index -> stay resident in VMEM across the
    # batch grid (fetched once, not per tile).
    resident = lambda shape: pl.BlockSpec(shape, lambda i: (0, 0))

    out_padded = pl.pallas_call(
        mlp_kernel,
        out_shape=jax.ShapeDtypeStruct((B_pad, C_pad), jnp.float32),
        grid=(num_m,),
        in_specs=[
            pl.BlockSpec((TM, D_in), lambda i: (i, 0)),   # x: batch-tiled
            resident((D_in, H1)),
            resident((1, H1)),
            resident((H1, H2)),
            resident((1, H2)),
            resident((H2, C_pad)),
            resident((1, C_pad)),
        ],
        out_specs=pl.BlockSpec((TM, C_pad), lambda i: (i, 0)),
        compiler_params=pltpu.CompilerParams(
            dimension_semantics=("parallel",),   # v7x: shard batch tiles over 2 TCs
            vmem_limit_bytes=32 << 20,
        ),
    )(x_p, w1_b, b1_f, w2_b, b2_f, w3_b, b3_p)

    return out_padded[:B, :classes]


def init_params(key, in_chnls, classes):
    """Deterministic init mimicking PyTorch nn.Linear default (uniform +-1/sqrt(fan_in))."""
    d_in = 32 * 32 * in_chnls
    dims = [(d_in, 512), (512, 256), (256, classes)]
    params = []
    for (fan_in, fan_out) in dims:
        key, kw, kb = jax.random.split(key, 3)
        bound = 1.0 / jnp.sqrt(fan_in)
        w = jax.random.uniform(kw, (fan_in, fan_out), jnp.float32, -bound, bound)
        b = jax.random.uniform(kb, (1, fan_out), jnp.float32, -bound, bound)
        params += [w, b]
    return params


if __name__ == "__main__":
    in_chnls = 3
    classes = 10
    B = 2

    key = jax.random.PRNGKey(0)
    key, kx = jax.random.split(key)
    # Module hardcodes 32*32 spatial -> input must be (B, C, 32, 32) NCHW.
    x = jax.random.normal(kx, (B, in_chnls, 32, 32), jnp.float32)

    w1, b1, w2, b2, w3, b3 = init_params(key, in_chnls, classes)

    out = mlp_forward(x, w1, b1, w2, b2, w3, b3)
    out = jax.block_until_ready(out)
    assert out.shape == (B, classes)

    # Reference 1: same bf16-operand / f32-accumulate path in plain JAX.
    x2d = x.reshape(B, -1)
    xb = x2d.astype(jnp.bfloat16)
    w1b, w2b, w3b = (w.astype(jnp.bfloat16) for w in (w1, w2, w3))
    h1 = jnp.maximum(
        jnp.dot(xb, w1b, preferred_element_type=jnp.float32) + b1, 0.0)
    h2 = jnp.dot(h1.astype(jnp.bfloat16), w2b,
                 preferred_element_type=jnp.float32) + b2
    ref_bf16 = jnp.dot(h2.astype(jnp.bfloat16), w3b,
                       preferred_element_type=jnp.float32) + b3
    assert jnp.allclose(out, ref_bf16, atol=2e-2, rtol=2e-2)

    # Reference 2: full-f32 PyTorch-equivalent forward (loose tolerance for bf16 cast).
    ref_f32 = jnp.maximum(x2d @ w1 + b1, 0.0) @ w2 + b2
    ref_f32 = ref_f32 @ w3 + b3
    assert jnp.allclose(out, ref_f32, atol=5e-2, rtol=5e-2)

    print("KERNEL_OK")
</pallas_src>

<mosaic_0001>
module attributes {stable_mosaic.version = 11 : i64} {
  func.func @mlp_kernel(%arg0: i32, %arg1: memref<8x3072xbf16, #tpu.memory_space<vmem>>, %arg2: memref<3072x512xbf16, #tpu.memory_space<vmem>>, %arg3: memref<1x512xf32, #tpu.memory_space<vmem>>, %arg4: memref<512x256xbf16, #tpu.memory_space<vmem>>, %arg5: memref<1x256xf32, #tpu.memory_space<vmem>>, %arg6: memref<256x128xbf16, #tpu.memory_space<vmem>>, %arg7: memref<1x128xf32, #tpu.memory_space<vmem>>, %arg8: memref<8x128xf32, #tpu.memory_space<vmem>>) attributes {dimension_semantics = [#tpu.dimension_semantics<parallel>], iteration_bounds = array<i64: 1>, scalar_prefetch = 0 : i64, scratch_operands = 0 : i64, tpu.core_type = #tpu.core_type<tc>, window_params = [{transform_indices = @transform_0, window_bounds = array<i64: 8, 3072>}, {pipeline_mode = #tpu.pipeline_mode<synchronous>, transform_indices = @transform_1, window_bounds = array<i64: 3072, 512>}, {pipeline_mode = #tpu.pipeline_mode<synchronous>, transform_indices = @transform_2, window_bounds = array<i64: 1, 512>}, {pipeline_mode = #tpu.pipeline_mode<synchronous>, transform_indices = @transform_3, window_bounds = array<i64: 512, 256>}, {pipeline_mode = #tpu.pipeline_mode<synchronous>, transform_indices = @transform_4, window_bounds = array<i64: 1, 256>}, {pipeline_mode = #tpu.pipeline_mode<synchronous>, transform_indices = @transform_5, window_bounds = array<i64: 256, 128>}, {pipeline_mode = #tpu.pipeline_mode<synchronous>, transform_indices = @transform_6, window_bounds = array<i64: 1, 128>}, {transform_indices = @transform_7, window_bounds = array<i64: 8, 128>}]} {
    %c0 = arith.constant 0 : index
    %c0_0 = arith.constant 0 : index
    %0 = vector.load %arg1[%c0, %c0_0] : memref<8x3072xbf16, #tpu.memory_space<vmem>>, vector<8x3072xbf16>
    %c0_1 = arith.constant 0 : index
    %c0_2 = arith.constant 0 : index
    %1 = vector.load %arg2[%c0_1, %c0_2] : memref<3072x512xbf16, #tpu.memory_space<vmem>>, vector<3072x512xbf16>
    %cst = arith.constant dense<0.000000e+00> : vector<8x512xf32>
    %2 = tpu.matmul %0, %1, %cst {dimension_numbers = #tpu.dot_dimension_numbers<[1], [0], [0], [1], [0, 0, 1, 1], [], []>} : vector<8x3072xbf16>, vector<3072x512xbf16>, vector<8x512xf32> -> vector<8x512xf32>
    %c0_3 = arith.constant 0 : index
    %c0_4 = arith.constant 0 : index
    %3 = vector.load %arg3[%c0_3, %c0_4] : memref<1x512xf32, #tpu.memory_space<vmem>>, vector<1x512xf32>
    %4 = vector.broadcast %3 : vector<1x512xf32> to vector<8x512xf32>
    %5 = arith.addf %2, %4 : vector<8x512xf32>
    %cst_5 = arith.constant 0.000000e+00 : f32
    %6 = vector.broadcast %cst_5 : f32 to vector<8x512xf32>
    %7 = arith.maximumf %5, %6 : vector<8x512xf32>
    %8 = arith.truncf %7 : vector<8x512xf32> to vector<8x512xbf16>
    %c0_6 = arith.constant 0 : index
    %c0_7 = arith.constant 0 : index
    %9 = vector.load %arg4[%c0_6, %c0_7] : memref<512x256xbf16, #tpu.memory_space<vmem>>, vector<512x256xbf16>
    %cst_8 = arith.constant dense<0.000000e+00> : vector<8x256xf32>
    %10 = tpu.matmul %8, %9, %cst_8 {dimension_numbers = #tpu.dot_dimension_numbers<[1], [0], [0], [1], [0, 0, 1, 1], [], []>} : vector<8x512xbf16>, vector<512x256xbf16>, vector<8x256xf32> -> vector<8x256xf32>
    %c0_9 = arith.constant 0 : index
    %c0_10 = arith.constant 0 : index
    %11 = vector.load %arg5[%c0_9, %c0_10] : memref<1x256xf32, #tpu.memory_space<vmem>>, vector<1x256xf32>
    %12 = vector.broadcast %11 : vector<1x256xf32> to vector<8x256xf32>
    %13 = arith.addf %10, %12 : vector<8x256xf32>
    %14 = arith.truncf %13 : vector<8x256xf32> to vector<8x256xbf16>
    %c0_11 = arith.constant 0 : index
    %c0_12 = arith.constant 0 : index
    %15 = vector.load %arg6[%c0_11, %c0_12] : memref<256x128xbf16, #tpu.memory_space<vmem>>, vector<256x128xbf16>
    %cst_13 = arith.constant dense<0.000000e+00> : vector<8x128xf32>
    %16 = tpu.matmul %14, %15, %cst_13 {dimension_numbers = #tpu.dot_dimension_numbers<[1], [0], [0], [1], [0, 0, 1, 1], [], []>} : vector<8x256xbf16>, vector<256x128xbf16>, vector<8x128xf32> -> vector<8x128xf32>
    %c0_14 = arith.constant 0 : index
    %c0_15 = arith.constant 0 : index
    %17 = vector.load %arg7[%c0_14, %c0_15] : memref<1x128xf32, #tpu.memory_space<vmem>>, vector<1x128xf32>
    %18 = vector.broadcast %17 : vector<1x128xf32> to vector<8x128xf32>
    %19 = arith.addf %16, %18 : vector<8x128xf32>
    %c0_16 = arith.constant 0 : index
    %c0_17 = arith.constant 0 : index
    %20 = vector.load %arg8[%c0_16, %c0_17] : memref<8x128xf32, #tpu.memory_space<vmem>>, vector<8x128xf32>
    tpu.vector_store %arg8[%c0_16, %c0_17], %19 {strides = array<i32>} : memref<8x128xf32, #tpu.memory_space<vmem>>, vector<8x128xf32>,
    return
  }
  func.func @transform_0(%arg0: i32) -> (i32, i32) {
    %c0_i32 = arith.constant 0 : i32
    %c0_i32_0 = arith.constant 0 : i32
    return %arg0, %c0_i32 : i32, i32
  }
  func.func @transform_1(%arg0: i32) -> (i32, i32) {
    %c0_i32 = arith.constant 0 : i32
    %c0_i32_0 = arith.constant 0 : i32
    %c0_i32_1 = arith.constant 0 : i32
    return %c0_i32, %c0_i32_0 : i32, i32
  }
  func.func @transform_2(%arg0: i32) -> (i32, i32) {
    %c0_i32 = arith.constant 0 : i32
    %c0_i32_0 = arith.constant 0 : i32
    %c0_i32_1 = arith.constant 0 : i32
    return %c0_i32, %c0_i32_0 : i32, i32
  }
  func.func @transform_3(%arg0: i32) -> (i32, i32) {
    %c0_i32 = arith.constant 0 : i32
    %c0_i32_0 = arith.constant 0 : i32
    %c0_i32_1 = arith.constant 0 : i32
    return %c0_i32, %c0_i32_0 : i32, i32
  }
  func.func @transform_4(%arg0: i32) -> (i32, i32) {
    %c0_i32 = arith.constant 0 : i32
    %c0_i32_0 = arith.constant 0 : i32
    %c0_i32_1 = arith.constant 0 : i32
    return %c0_i32, %c0_i32_0 : i32, i32
  }
  func.func @transform_5(%arg0: i32) -> (i32, i32) {
    %c0_i32 = arith.constant 0 : i32
    %c0_i32_0 = arith.constant 0 : i32
    %c0_i32_1 = arith.constant 0 : i32
    return %c0_i32, %c0_i32_0 : i32, i32
  }
  func.func @transform_6(%arg0: i32) -> (i32, i32) {
    %c0_i32 = arith.constant 0 : i32
    %c0_i32_0 = arith.constant 0 : i32
    %c0_i32_1 = arith.constant 0 : i32
    return %c0_i32, %c0_i32_0 : i32, i32
  }
  func.func @transform_7(%arg0: i32) -> (i32, i32) {
    %c0_i32 = arith.constant 0 : i32
    %c0_i32_0 = arith.constant 0 : i32
    return %arg0, %c0_i32 : i32, i32
  }
}

</mosaic_0001>

<bundles_post_ra>
// kernel: mlp_forward.1
= control target key start
LH: loop header
LB: loop body
LE: loop exit
PB: predicated region body
PF: predicated region fallthrough
CT: control target
= control target key end

     0   :  { %s16255_s1 = inlined_call_operand.vmem [shape: bf16[3072,512], index: 1, kind: input, shape index: {}]   ;;  %s16256_s0 = inlined_call_operand.vmem [shape: bf16[8,3072], index: 0, kind: input, shape index: {}]   ;;  %s16257_s2 = inlined_call_operand.vmem [shape: f32[1,512], index: 2, kind: input, shape index: {}]   ;;  %s16258_s3 = inlined_call_operand.vmem [shape: bf16[512,256], index: 3, kind: input, shape index: {}]   ;;  %s16259_s4 = inlined_call_operand.vmem [shape: f32[1,256], index: 4, kind: input, shape index: {}]   ;;  %s16260_s5 = inlined_call_operand.vmem [shape: bf16[256,128], index: 5, kind: input, shape index: {}]   ;;  %s16261_s6 = inlined_call_operand.vmem [shape: f32[1,128], index: 6, kind: input, shape index: {}]   ;;  %s16262_s7 = inlined_call_operand.vmem [shape: f32[8,128], index: 7, kind: output, shape index: {}]  }
   0x1   :  { %v6769_v0 = vld [vmem:[%s16255_s1 + $0xe0] sm:$0xf]  ;;  %v10077_v1 = vld [vmem:[%s16255_s1 + $0xec] sm:$0xf0] }
   0x2   :  { %v6897_v2 = vld [vmem:[%s16255_s1 + $0x1e0] sm:$0xf]  ;;  %v6770_v3 = vor.u32 %v10077_v1, %v6769_v0  ;;  %v10109_v4 = vld [vmem:[%s16255_s1 + $0x1ec] sm:$0xf0] }
   0x3   :  { %v7025_v5 = vld [vmem:[%s16255_s1 + $0x2e0] sm:$0xf]  ;;  %v10141_v6 = vld [vmem:[%s16255_s1 + $0x2ec] sm:$0xf0]  ;;  %v6898_v7 = vor.u32 %v10109_v4, %v6897_v2 }
   0x4   :  { %v7026_v8 = vor.u32 %v10141_v6, %v7025_v5  ;;  %v7153_v9 = vld [vmem:[%s16255_s1 + $0x3e0] sm:$0xf]  ;;  %v10173_v10 = vld [vmem:[%s16255_s1 + $0x3ec] sm:$0xf0]  ;;  %4740 = vmatpush.bf16.msra.mxu0 %v6770_v3 }
   0x5   :  { %v6753_v11 = vld [vmem:[%s16255_s1 + $0xc0] sm:$0xf]  ;;  %v7154_v12 = vor.u32 %v10173_v10, %v7153_v9  ;;  %v10073_v13 = vld [vmem:[%s16255_s1 + $0xcc] sm:$0xf0]  ;;  %4753 = vmatpush.bf16.msra.mxu1 %v6898_v7 }
   0x6   :  { %v6881_v14 = vld [vmem:[%s16255_s1 + $0x1c0] sm:$0xf]  ;;  %v10105_v15 = vld [vmem:[%s16255_s1 + $0x1cc] sm:$0xf0]  ;;  %4766 = vmatpush.bf16.msra.mxu2 %v7026_v8  ;;  %v6754_v16 = vor.u32 %v10073_v13, %v6753_v11 }
   0x7   :  { %v6882_v17 = vor.u32 %v10105_v15, %v6881_v14  ;;  %v7009_v18 = vld [vmem:[%s16255_s1 + $0x2c0] sm:$0xf]  ;;  %v10137_v19 = vld [vmem:[%s16255_s1 + $0x2cc] sm:$0xf0]  ;;  %4779 = vmatpush.bf16.msra.mxu3 %v7154_v12 }
   0x8   :  { %v7137_v20 = vld [vmem:[%s16255_s1 + $0x3c0] sm:$0xf]  ;;  %v7010_v21 = vor.u32 %v10137_v19, %v7009_v18  ;;  %v10169_v22 = vld [vmem:[%s16255_s1 + $0x3cc] sm:$0xf0]  ;;  %4741 = vmatpush.bf16.msra.mxu0 %v6754_v16 }
   0x9   :  { %v6737_v23 = vld [vmem:[%s16255_s1 + $0xa0] sm:$0xf]  ;;  %v10069_v24 = vld [vmem:[%s16255_s1 + $0xac] sm:$0xf0]  ;;  %v7138_v25 = vor.u32 %v10169_v22, %v7137_v20  ;;  %4754 = vmatpush.bf16.msra.mxu1 %v6882_v17 }
   0xa   :  { %v6865_v26 = vld [vmem:[%s16255_s1 + $0x1a0] sm:$0xf]  ;;  %v10101_v27 = vld [vmem:[%s16255_s1 + $0x1ac] sm:$0xf0]  ;;  %v6738_v29 = vor.u32 %v10069_v24, %v6737_v23  ;;  %4767 = vmatpush.bf16.msra.mxu2 %v7010_v21 }
   0xb   :  { %v6993_v28 = vld [vmem:[%s16255_s1 + $0x2a0] sm:$0xf]  ;;  %v10133_v30 = vld [vmem:[%s16255_s1 + $0x2ac] sm:$0xf0]  ;;  %v6866_v33 = vor.u32 %v10101_v27, %v6865_v26  ;;  %4780 = vmatpush.bf16.msra.mxu3 %v7138_v25 }
   0xc   :  { %v7121_v31 = vld [vmem:[%s16255_s1 + $0x3a0] sm:$0xf]  ;;  %v10165_v32 = vld [vmem:[%s16255_s1 + $0x3ac] sm:$0xf0]  ;;  %v6994_v34 = vor.u32 %v10133_v30, %v6993_v28  ;;  %4742 = vmatpush.bf16.msra.mxu0 %v6738_v29 }
   0xd   :  { %v6721_v35 = vld [vmem:[%s16255_s1 + $0x80] sm:$0xf]  ;;  %v10065_v36 = vld [vmem:[%s16255_s1 + $0x8c] sm:$0xf0]  ;;  %v7122_v38 = vor.u32 %v10165_v32, %v7121_v31  ;;  %4755 = vmatpush.bf16.msra.mxu1 %v6866_v33 }
   0xe   :  { %v6849_v37 = vld [vmem:[%s16255_s1 + $0x180] sm:$0xf]  ;;  %v10097_v39 = vld [vmem:[%s16255_s1 + $0x18c] sm:$0xf0]  ;;  %v6722_v44 = vor.u32 %v10065_v36, %v6721_v35  ;;  %4768 = vmatpush.bf16.msra.mxu2 %v6994_v34 }
   0xf   :  { %v6977_v40 = vld [vmem:[%s16255_s1 + $0x280] sm:$0xf]  ;;  %v10129_v41 = vld [vmem:[%s16255_s1 + $0x28c] sm:$0xf0]  ;;  %v6850_v45 = vor.u32 %v10097_v39, %v6849_v37  ;;  %4781 = vmatpush.bf16.msra.mxu3 %v7122_v38 }
  0x10   :  { %v7105_v42 = vld [vmem:[%s16255_s1 + $0x380] sm:$0xf]  ;;  %v10161_v43 = vld [vmem:[%s16255_s1 + $0x38c] sm:$0xf0]  ;;  %v6978_v46 = vor.u32 %v10129_v41, %v6977_v40  ;;  %4743 = vmatpush.bf16.msra.mxu0 %v6722_v44 }
  0x11   :  { %v6705_v47 = vld [vmem:[%s16255_s1 + $0x60] sm:$0xf]  ;;  %v10061_v48 = vld [vmem:[%s16255_s1 + $0x6c] sm:$0xf0]  ;;  %v7106_v50 = vor.u32 %v10161_v43, %v7105_v42  ;;  %4756 = vmatpush.bf16.msra.mxu1 %v6850_v45 }
  0x12   :  { %v6833_v49 = vld [vmem:[%s16255_s1 + $0x160] sm:$0xf]  ;;  %v10093_v51 = vld [vmem:[%s16255_s1 + $0x16c] sm:$0xf0]  ;;  %v6706_v56 = vor.u32 %v10061_v48, %v6705_v47  ;;  %4769 = vmatpush.bf16.msra.mxu2 %v6978_v46 }
  0x13   :  { %v6961_v52 = vld [vmem:[%s16255_s1 + $0x260] sm:$0xf]  ;;  %v10125_v53 = vld [vmem:[%s16255_s1 + $0x26c] sm:$0xf0]  ;;  %v6834_v57 = vor.u32 %v10093_v51, %v6833_v49  ;;  %4782 = vmatpush.bf16.msra.mxu3 %v7106_v50 }
  0x14   :  { %v7089_v54 = vld [vmem:[%s16255_s1 + $0x360] sm:$0xf]  ;;  %v10157_v55 = vld [vmem:[%s16255_s1 + $0x36c] sm:$0xf0]  ;;  %v6962_v58 = vor.u32 %v10125_v53, %v6961_v52  ;;  %4744 = vmatpush.bf16.msra.mxu0 %v6706_v56 }
  0x15   :  { %v6689_v59 = vld [vmem:[%s16255_s1 + $0x40] sm:$0xf]  ;;  %v10057_v60 = vld [vmem:[%s16255_s1 + $0x4c] sm:$0xf0]  ;;  %v7090_v62 = vor.u32 %v10157_v55, %v7089_v54  ;;  %4757 = vmatpush.bf16.msra.mxu1 %v6834_v57 }
  0x16   :  { %v6817_v61 = vld [vmem:[%s16255_s1 + $0x140] sm:$0xf]  ;;  %v10089_v63 = vld [vmem:[%s16255_s1 + $0x14c] sm:$0xf0]  ;;  %v6690_v4 = vor.u32 %v10057_v60, %v6689_v59  ;;  %4770 = vmatpush.bf16.msra.mxu2 %v6962_v58 }
  0x17   :  { %v6945_v0 = vld [vmem:[%s16255_s1 + $0x240] sm:$0xf]  ;;  %v10121_v1 = vld [vmem:[%s16255_s1 + $0x24c] sm:$0xf0]  ;;  %v6818_v5 = vor.u32 %v10089_v63, %v6817_v61  ;;  %4783 = vmatpush.bf16.msra.mxu3 %v7090_v62 }
  0x18   :  { %v7073_v2 = vld [vmem:[%s16255_s1 + $0x340] sm:$0xf]  ;;  %v10153_v3 = vld [vmem:[%s16255_s1 + $0x34c] sm:$0xf0]  ;;  %v6946_v6 = vor.u32 %v10121_v1, %v6945_v0  ;;  %4745 = vmatpush.bf16.msra.mxu0 %v6690_v4 }
  0x19   :  { %v6673_v7 = vld [vmem:[%s16255_s1 + $0x20] sm:$0xf]  ;;  %v10053_v8 = vld [vmem:[%s16255_s1 + $0x2c] sm:$0xf0]  ;;  %v7074_v10 = vor.u32 %v10153_v3, %v7073_v2  ;;  %4758 = vmatpush.bf16.msra.mxu1 %v6818_v5  ;;  %v27_v2 = vld [vmem:[%s16256_s0 + $0x8] sm:$0xff] }
  0x1a   :  { %v6801_v9 = vld [vmem:[%s16255_s1 + $0x120] sm:$0xf]  ;;  %v10085_v11 = vld [vmem:[%s16255_s1 + $0x12c] sm:$0xf0]  ;;  %v6674_v16 = vor.u32 %v10053_v8, %v6673_v7  ;;  %4771 = vmatpush.bf16.msra.mxu2 %v6946_v6  ;;  %v830_v8 = vunpack.c.l.b16 %v27_v2 }
  0x1b   :  { %v6929_v12 = vld [vmem:[%s16255_s1 + $0x220] sm:$0xf]  ;;  %v10117_v13 = vld [vmem:[%s16255_s1 + $0x22c] sm:$0xf0]  ;;  %v6802_v19 = vor.u32 %v10085_v11, %v6801_v9  ;;  %4784 = vmatpush.bf16.msra.mxu3 %v7074_v10  ;;  %v831_v10 = vunpack.c.h.b16 %v27_v2 }
  0x1c   :  { %v7057_v14 = vld [vmem:[%s16255_s1 + $0x320] sm:$0xf]  ;;  %v10149_v15 = vld [vmem:[%s16255_s1 + $0x32c] sm:$0xf0]  ;;  %v6930_v20 = vor.u32 %v10117_v13, %v6929_v12  ;;  %4746 = vmatpush.bf16.msra.mxu0 %v6674_v16 }
  0x1d   :  { %v6657_v17 = vld [vmem:[%s16255_s1] sm:$0xf]  ;;  %v10049_v18 = vld [vmem:[%s16255_s1 + $0xc] sm:$0xf0]  ;;  %v7058_v24 = vor.u32 %v10149_v15, %v7057_v14  ;;  %4759 = vmatpush.bf16.msra.mxu1 %v6802_v19 }
  0x1e   :  { %v6785_v21 = vld [vmem:[%s16255_s1 + $0x100] sm:$0xf]  ;;  %v10081_v22 = vld [vmem:[%s16255_s1 + $0x10c] sm:$0xf0]  ;;  %v6658_v31 = vor.u32 %v10049_v18, %v6657_v17  ;;  %4772 = vmatpush.bf16.msra.mxu2 %v6930_v20  ;;  %v11233_v18 = vpack.c.b16 %v830_v8, %v830_v8  ;;  %v11237_v20 = vpack.c.b16 %v831_v10, %v831_v10 }
  0x1f   :  { %v6913_v23 = vld [vmem:[%s16255_s1 + $0x200] sm:$0xf]  ;;  %v10113_v25 = vld [vmem:[%s16255_s1 + $0x20c] sm:$0xf0]  ;;  %v6786_v35 = vor.u32 %v10081_v22, %v6785_v21  ;;  %4785 = vmatpush.bf16.msra.mxu3 %v7058_v24 }
  0x20   :  { %v7041_v26 = vld [vmem:[%s16255_s1 + $0x300] sm:$0xf]  ;;  %v10145_v27 = vld [vmem:[%s16255_s1 + $0x30c] sm:$0xf0]  ;;  %v6914_v36 = vor.u32 %v10113_v25, %v6913_v23  ;;  %4747 = vmatpush.bf16.msra.mxu0 %v6658_v31 }
  0x21   :  { %v7281_v28 = vld [vmem:[%s16255_s1 + $0x4e0] sm:$0xf]  ;;  %v10205_v29 = vld [vmem:[%s16255_s1 + $0x4ec] sm:$0xf0]  ;;  %v7042_v39 = vor.u32 %v10145_v27, %v7041_v26  ;;  %4760 = vmatpush.bf16.msra.mxu1 %v6786_v35 }
  0x22   :  { %v7409_v30 = vld [vmem:[%s16255_s1 + $0x5e0] sm:$0xf]  ;;  %v10237_v32 = vld [vmem:[%s16255_s1 + $0x5ec] sm:$0xf0]  ;;  %v7282_v40 = vor.u32 %v10205_v29, %v7281_v28  ;;  %4773 = vmatpush.bf16.msra.mxu2 %v6914_v36 }
  0x23   :  { %v7537_v33 = vld [vmem:[%s16255_s1 + $0x6e0] sm:$0xf]  ;;  %v10269_v34 = vld [vmem:[%s16255_s1 + $0x6ec] sm:$0xf0]  ;;  %v7410_v41 = vor.u32 %v10237_v32, %v7409_v30  ;;  %4786 = vmatpush.bf16.msra.mxu3 %v7042_v39 }
  0x24   :  { %v7665_v37 = vld [vmem:[%s16255_s1 + $0x7e0] sm:$0xf]  ;;  %v10301_v38 = vld [vmem:[%s16255_s1 + $0x7ec] sm:$0xf0]  ;;  %v7538_v42 = vor.u32 %v10269_v34, %v7537_v33  ;;  %4792 = vmatpush.bf16.msrb.mxu0 %v7282_v40 }
  0x25   :  { %v7265_v43 = vld [vmem:[%s16255_s1 + $0x4c0] sm:$0xf]  ;;  %v10201_v44 = vld [vmem:[%s16255_s1 + $0x4cc] sm:$0xf0]  ;;  %v7666_v46 = vor.u32 %v10301_v38, %v7665_v37  ;;  %4805 = vmatpush.bf16.msrb.mxu1 %v7410_v41  ;;  %4774 = vmatmul.bf16.vlgmr.msra.gmra.mxu2 %v11233_v18 }
  0x26   :  { %v7393_v45 = vld [vmem:[%s16255_s1 + $0x5c0] sm:$0xf]  ;;  %v10233_v47 = vld [vmem:[%s16255_s1 + $0x5cc] sm:$0xf0]  ;;  %v7266_v52 = vor.u32 %v10201_v44, %v7265_v43  ;;  %4818 = vmatpush.bf16.msrb.mxu2 %v7538_v42  ;;  %4787 = vmatmul.bf16.vlgmr.msra.gmra.mxu3 %v11237_v20 }
  0x27   :  { %v7521_v48 = vld [vmem:[%s16255_s1 + $0x6c0] sm:$0xf]  ;;  %v10265_v49 = vld [vmem:[%s16255_s1 + $0x6cc] sm:$0xf0]  ;;  %v7394_v54 = vor.u32 %v10233_v47, %v7393_v45  ;;  %4831 = vmatpush.bf16.msrb.mxu3 %v7666_v46 }
  0x28   :  { %v7649_v50 = vld [vmem:[%s16255_s1 + $0x7c0] sm:$0xf]  ;;  %v10297_v51 = vld [vmem:[%s16255_s1 + $0x7cc] sm:$0xf0]  ;;  %v7522_v55 = vor.u32 %v10265_v49, %v7521_v48  ;;  %4793 = vmatpush.bf16.msrb.mxu0 %v7266_v52 }
  0x29   :  { %v7249_v53 = vld [vmem:[%s16255_s1 + $0x4a0] sm:$0xf]  ;;  %v10197_v56 = vld [vmem:[%s16255_s1 + $0x4ac] sm:$0xf0]  ;;  %v7650_v59 = vor.u32 %v10297_v51, %v7649_v50  ;;  %4806 = vmatpush.bf16.msrb.mxu1 %v7394_v54 }
  0x2a   :  { %v7377_v57 = vld [vmem:[%s16255_s1 + $0x5a0] sm:$0xf]  ;;  %v10229_v58 = vld [vmem:[%s16255_s1 + $0x5ac] sm:$0xf0]  ;;  %v7250_v0 = vor.u32 %v10197_v56, %v7249_v53  ;;  %4819 = vmatpush.bf16.msrb.mxu2 %v7522_v55 }
  0x2b   :  { %v7505_v60 = vld [vmem:[%s16255_s1 + $0x6a0] sm:$0xf]  ;;  %v10261_v61 = vld [vmem:[%s16255_s1 + $0x6ac] sm:$0xf0]  ;;  %v7378_v1 = vor.u32 %v10229_v58, %v7377_v57  ;;  %4832 = vmatpush.bf16.msrb.mxu3 %v7650_v59 }
  0x2c   :  { %v7633_v62 = vld [vmem:[%s16255_s1 + $0x7a0] sm:$0xf]  ;;  %v10293_v63 = vld [vmem:[%s16255_s1 + $0x7ac] sm:$0xf0]  ;;  %v7506_v4 = vor.u32 %v10261_v61, %v7505_v60  ;;  %4794 = vmatpush.bf16.msrb.mxu0 %v7250_v0 }
  0x2d   :  { %v26_v3 = vld [vmem:[%s16256_s0] sm:$0xff]  ;;  %v10193_v6 = vld [vmem:[%s16255_s1 + $0x48c] sm:$0xf0]  ;;  %v7634_v11 = vor.u32 %v10293_v63, %v7633_v62  ;;  %4807 = vmatpush.bf16.msrb.mxu1 %v7378_v1 }
  0x2e   :  { %v7233_v5 = vld [vmem:[%s16255_s1 + $0x480] sm:$0xf]  ;;  %v828_v9 = vunpack.c.l.b16 %v26_v3  ;;  %v10225_v12 = vld [vmem:[%s16255_s1 + $0x58c] sm:$0xf0]  ;;  %v829_v15 = vunpack.c.h.b16 %v26_v3  ;;  %4820 = vmatpush.bf16.msrb.mxu2 %v7506_v4  ;;  %v29_v3 = vld [vmem:[%s16256_s0 + $0x18] sm:$0xff] }
  0x2f   :  { %v7361_v7 = vld [vmem:[%s16255_s1 + $0x580] sm:$0xf]  ;;  %v10257_v14 = vld [vmem:[%s16255_s1 + $0x68c] sm:$0xf0]  ;;  %v7234_v21 = vor.u32 %v10193_v6, %v7233_v5  ;;  %4833 = vmatpush.bf16.msrb.mxu3 %v7634_v11 }
  0x30   :  { %v7489_v13 = vld [vmem:[%s16255_s1 + $0x680] sm:$0xf]  ;;  %v10289_v17 = vld [vmem:[%s16255_s1 + $0x78c] sm:$0xf0]  ;;  %v11235_v19 = vpack.c.b16 %v828_v9, %v828_v9  ;;  %v11239_v22 = vpack.c.b16 %v829_v15, %v829_v15  ;;  %v7362_v23 = vor.u32 %v10225_v12, %v7361_v7  ;;  %v834_v15 = vunpack.c.l.b16 %v29_v3 }
  0x31   :  { %v7617_v16 = vld [vmem:[%s16255_s1 + $0x780] sm:$0xf]  ;;  %v7490_v24 = vor.u32 %v10257_v14, %v7489_v13  ;;  %v10189_v26 = vld [vmem:[%s16255_s1 + $0x46c] sm:$0xf0]  ;;  %4795 = vmatpush.bf16.msrb.mxu0 %v7234_v21 }
  0x32   :  { %v7217_v25 = vld [vmem:[%s16255_s1 + $0x460] sm:$0xf]  ;;  %v7618_v28 = vor.u32 %v10289_v17, %v7617_v16  ;;  %v10221_v29 = vld [vmem:[%s16255_s1 + $0x56c] sm:$0xf0]  ;;  %4748 = vmatmul.bf16.vlgmr.msra.gmra.mxu0 %v11235_v19  ;;  %4761 = vmatmul.bf16.vlgmr.msra.gmra.mxu1 %v11239_v22 }
  0x33   :  { %v7345_v27 = vld [vmem:[%s16255_s1 + $0x560] sm:$0xf]  ;;  %v10253_v31 = vld [vmem:[%s16255_s1 + $0x66c] sm:$0xf0]  ;;  %v7218_v34 = vor.u32 %v10189_v26, %v7217_v25  ;;  %4808 = vmatpush.bf16.msrb.mxu1 %v7362_v23  ;;  %4821 = vmatpush.bf16.msrb.mxu2 %v7490_v24  ;;  %v835_v25 = vunpack.c.h.b16 %v29_v3 }
  0x34   :  { %v7473_v30 = vld [vmem:[%s16255_s1 + $0x660] sm:$0xf]  ;;  %v10285_v33 = vld [vmem:[%s16255_s1 + $0x76c] sm:$0xf0]  ;;  %v7346_v35 = vor.u32 %v10221_v29, %v7345_v27  ;;  %4834 = vmatpush.bf16.msrb.mxu3 %v7618_v28 }
  0x35   :  { %v7601_v32 = vld [vmem:[%s16255_s1 + $0x760] sm:$0xf]  ;;  %v7474_v36 = vor.u32 %v10253_v31, %v7473_v30  ;;  %v10185_v38 = vld [vmem:[%s16255_s1 + $0x44c] sm:$0xf0]  ;;  %4796 = vmatpush.bf16.msrb.mxu0 %v7218_v34 }
  0x36   :  { %v7201_v37 = vld [vmem:[%s16255_s1 + $0x440] sm:$0xf]  ;;  %v7602_v40 = vor.u32 %v10285_v33, %v7601_v32  ;;  %v10217_v41 = vld [vmem:[%s16255_s1 + $0x54c] sm:$0xf0] }
  0x37   :  { %v7329_v39 = vld [vmem:[%s16255_s1 + $0x540] sm:$0xf]  ;;  %v10249_v43 = vld [vmem:[%s16255_s1 + $0x64c] sm:$0xf0]  ;;  %v7202_v46 = vor.u32 %v10185_v38, %v7201_v37  ;;  %4809 = vmatpush.bf16.msrb.mxu1 %v7346_v35  ;;  %4822 = vmatpush.bf16.msrb.mxu2 %v7474_v36  ;;  %v11389_v38 = vpack.c.b16 %v834_v15, %v834_v15 }
  0x38   :  { %v7457_v42 = vld [vmem:[%s16255_s1 + $0x640] sm:$0xf]  ;;  %v10281_v45 = vld [vmem:[%s16255_s1 + $0x74c] sm:$0xf0]  ;;  %v7330_v47 = vor.u32 %v10217_v41, %v7329_v39  ;;  %4835 = vmatpush.bf16.msrb.mxu3 %v7602_v40 }
  0x39   :  { %v7585_v44 = vld [vmem:[%s16255_s1 + $0x740] sm:$0xf]  ;;  %v7458_v48 = vor.u32 %v10249_v43, %v7457_v42  ;;  %v10181_v50 = vld [vmem:[%s16255_s1 + $0x42c] sm:$0xf0]  ;;  %4797 = vmatpush.bf16.msrb.mxu0 %v7202_v46  ;;  %v11399_v42 = vpack.c.b16 %v835_v25, %v835_v25 }
  0x3a   :  { %v7185_v49 = vld [vmem:[%s16255_s1 + $0x420] sm:$0xf]  ;;  %v7586_v52 = vor.u32 %v10281_v45, %v7585_v44  ;;  %v10213_v53 = vld [vmem:[%s16255_s1 + $0x52c] sm:$0xf0] }
  0x3b   :  { %v7313_v51 = vld [vmem:[%s16255_s1 + $0x520] sm:$0xf]  ;;  %v10245_v55 = vld [vmem:[%s16255_s1 + $0x62c] sm:$0xf0]  ;;  %v7186_v59 = vor.u32 %v10181_v50, %v7185_v49  ;;  %4810 = vmatpush.bf16.msrb.mxu1 %v7330_v47  ;;  %4823 = vmatpush.bf16.msrb.mxu2 %v7458_v48 }
  0x3c   :  { %v7441_v54 = vld [vmem:[%s16255_s1 + $0x620] sm:$0xf]  ;;  %v10277_v57 = vld [vmem:[%s16255_s1 + $0x72c] sm:$0xf0]  ;;  %v7314_v63 = vor.u32 %v10213_v53, %v7313_v51  ;;  %4836 = vmatpush.bf16.msrb.mxu3 %v7586_v52 }
  0x3d   :  { %v7569_v56 = vld [vmem:[%s16255_s1 + $0x720] sm:$0xf]  ;;  %v10177_v60 = vld [vmem:[%s16255_s1 + $0x40c] sm:$0xf0]  ;;  %v7442_v0 = vor.u32 %v10245_v55, %v7441_v54  ;;  %4798 = vmatpush.bf16.msrb.mxu0 %v7186_v59 }
  0x3e   :  { %v7169_v58 = vld [vmem:[%s16255_s1 + $0x400] sm:$0xf]  ;;  %v10209_v62 = vld [vmem:[%s16255_s1 + $0x50c] sm:$0xf0]  ;;  %v7570_v4 = vor.u32 %v10277_v57, %v7569_v56 }
  0x3f   :  { %v7297_v61 = vld [vmem:[%s16255_s1 + $0x500] sm:$0xf]  ;;  %v10241_v2 = vld [vmem:[%s16255_s1 + $0x60c] sm:$0xf0]  ;;  %v7170_v11 = vor.u32 %v10177_v60, %v7169_v58  ;;  %4811 = vmatpush.bf16.msrb.mxu1 %v7314_v63  ;;  %4824 = vmatpush.bf16.msrb.mxu2 %v7442_v0 }
  0x40   :  { %v7425_v1 = vld [vmem:[%s16255_s1 + $0x600] sm:$0xf]  ;;  %v10273_v6 = vld [vmem:[%s16255_s1 + $0x70c] sm:$0xf0]  ;;  %v7298_v16 = vor.u32 %v10209_v62, %v7297_v61  ;;  %4837 = vmatpush.bf16.msrb.mxu3 %v7570_v4 }
  0x41   :  { %v7553_v5 = vld [vmem:[%s16255_s1 + $0x700] sm:$0xf]  ;;  %v28_v7 = vld [vmem:[%s16256_s0 + $0x10] sm:$0xff]  ;;  %v7426_v17 = vor.u32 %v10241_v2, %v7425_v1  ;;  %4799 = vmatpush.bf16.msrb.mxu0 %v7170_v11 }
  0x42   :  { %v7793_v8 = vld [vmem:[%s16255_s1 + $0x8e0] sm:$0xf]  ;;  %v10333_v9 = vld [vmem:[%s16255_s1 + $0x8ec] sm:$0xf0]  ;;  %v832_v24 = vunpack.c.l.b16 %v28_v7  ;;  %v7554_v26 = vor.u32 %v10273_v6, %v7553_v5  ;;  %v833_v28 = vunpack.c.h.b16 %v28_v7 }
  0x43   :  { %v7921_v10 = vld [vmem:[%s16255_s1 + $0x9e0] sm:$0xf]  ;;  %v10365_v12 = vld [vmem:[%s16255_s1 + $0x9ec] sm:$0xf0]  ;;  %v7794_v27 = vor.u32 %v10333_v9, %v7793_v8  ;;  %4812 = vmatpush.bf16.msrb.mxu1 %v7298_v16  ;;  %4825 = vmatpush.bf16.msrb.mxu2 %v7426_v17 }
  0x44   :  { %v8049_v13 = vld [vmem:[%s16255_s1 + $0xae0] sm:$0xf]  ;;  %v10397_v14 = vld [vmem:[%s16255_s1 + $0xaec] sm:$0xf0]  ;;  %v7922_v29 = vor.u32 %v10365_v12, %v7921_v10  ;;  %v11397_v41 = vpack.c.b16 %v832_v24, %v832_v24  ;;  %4838 = vmatpush.bf16.msrb.mxu3 %v7554_v26  ;;  %v11401_v44 = vpack.c.b16 %v833_v28, %v833_v28 }
  0x45   :  { %v8177_v21 = vld [vmem:[%s16255_s1 + $0xbe0] sm:$0xf]  ;;  %v10429_v23 = vld [vmem:[%s16255_s1 + $0xbec] sm:$0xf0]  ;;  %v8050_v30 = vor.u32 %v10397_v14, %v8049_v13  ;;  %4844 = vmatpush.bf16.msra.mxu0 %v7794_v27 }
  0x46   :  { %v7777_v31 = vld [vmem:[%s16255_s1 + $0x8c0] sm:$0xf]  ;;  %v10329_v32 = vld [vmem:[%s16255_s1 + $0x8cc] sm:$0xf0]  ;;  %v8178_v34 = vor.u32 %v10429_v23, %v8177_v21  ;;  %4826 = vmatmul.bf16.vlgmr.msrb.gmra.mxu2 %v11389_v38  ;;  %4800 = vmatmul.bf16.vlgmr.msrb.gmra.mxu0 %v11397_v41 }
  0x47   :  { %v7905_v33 = vld [vmem:[%s16255_s1 + $0x9c0] sm:$0xf]  ;;  %v10361_v35 = vld [vmem:[%s16255_s1 + $0x9cc] sm:$0xf0]  ;;  %v7778_v43 = vor.u32 %v10329_v32, %v7777_v31  ;;  %4857 = vmatpush.bf16.msra.mxu1 %v7922_v29  ;;  %4870 = vmatpush.bf16.msra.mxu2 %v8050_v30 }
  0x48   :  { %v8033_v36 = vld [vmem:[%s16255_s1 + $0xac0] sm:$0xf]  ;;  %v10393_v37 = vld [vmem:[%s16255_s1 + $0xacc] sm:$0xf0]  ;;  %v7906_v45 = vor.u32 %v10361_v35, %v7905_v33  ;;  %4883 = vmatpush.bf16.msra.mxu3 %v8178_v34  ;;  %4813 = vmatmul.bf16.vlgmr.msrb.gmra.mxu1 %v11401_v44 }
  0x49   :  { %v8161_v39 = vld [vmem:[%s16255_s1 + $0xbc0] sm:$0xf]  ;;  %v10425_v40 = vld [vmem:[%s16255_s1 + $0xbcc] sm:$0xf0]  ;;  %v8034_v46 = vor.u32 %v10393_v37, %v8033_v36  ;;  %4839 = vmatmul.bf16.vlgmr.msrb.gmra.mxu3 %v11399_v42  ;;  %4845 = vmatpush.bf16.msra.mxu0 %v7778_v43 }
  0x4a   :  { %v7761_v47 = vld [vmem:[%s16255_s1 + $0x8a0] sm:$0xf]  ;;  %v10325_v48 = vld [vmem:[%s16255_s1 + $0x8ac] sm:$0xf0]  ;;  %v8162_v50 = vor.u32 %v10425_v40, %v8161_v39 }
  0x4b   :  { %v7889_v49 = vld [vmem:[%s16255_s1 + $0x9a0] sm:$0xf]  ;;  %v10357_v51 = vld [vmem:[%s16255_s1 + $0x9ac] sm:$0xf0]  ;;  %v7762_v56 = vor.u32 %v10325_v48, %v7761_v47  ;;  %4858 = vmatpush.bf16.msra.mxu1 %v7906_v45  ;;  %4871 = vmatpush.bf16.msra.mxu2 %v8034_v46 }
  0x4c   :  { %v8017_v52 = vld [vmem:[%s16255_s1 + $0xaa0] sm:$0xf]  ;;  %v10389_v53 = vld [vmem:[%s16255_s1 + $0xaac] sm:$0xf0]  ;;  %v7890_v57 = vor.u32 %v10357_v51, %v7889_v49  ;;  %4884 = vmatpush.bf16.msra.mxu3 %v8162_v50 }
  0x4d   :  { %v8145_v54 = vld [vmem:[%s16255_s1 + $0xba0] sm:$0xf]  ;;  %v10421_v55 = vld [vmem:[%s16255_s1 + $0xbac] sm:$0xf0]  ;;  %v8018_v58 = vor.u32 %v10389_v53, %v8017_v52  ;;  %4846 = vmatpush.bf16.msra.mxu0 %v7762_v56 }
  0x4e   :  { %v7745_v59 = vld [vmem:[%s16255_s1 + $0x880] sm:$0xf]  ;;  %v10321_v60 = vld [vmem:[%s16255_s1 + $0x88c] sm:$0xf0]  ;;  %v8146_v62 = vor.u32 %v10421_v55, %v8145_v54 }
  0x4f   :  { %v7873_v61 = vld [vmem:[%s16255_s1 + $0x980] sm:$0xf]  ;;  %v10353_v63 = vld [vmem:[%s16255_s1 + $0x98c] sm:$0xf0]  ;;  %v7746_v4 = vor.u32 %v10321_v60, %v7745_v59  ;;  %4859 = vmatpush.bf16.msra.mxu1 %v7890_v57  ;;  %4872 = vmatpush.bf16.msra.mxu2 %v8018_v58 }
  0x50   :  { %v8001_v0 = vld [vmem:[%s16255_s1 + $0xa80] sm:$0xf]  ;;  %v10385_v1 = vld [vmem:[%s16255_s1 + $0xa8c] sm:$0xf0]  ;;  %v7874_v5 = vor.u32 %v10353_v63, %v7873_v61  ;;  %4885 = vmatpush.bf16.msra.mxu3 %v8146_v62  ;;  %v31_v61 = vld [vmem:[%s16256_s0 + $0x28] sm:$0xff] }
  0x51   :  { %v8129_v2 = vld [vmem:[%s16255_s1 + $0xb80] sm:$0xf]  ;;  %v10417_v3 = vld [vmem:[%s16255_s1 + $0xb8c] sm:$0xf0]  ;;  %v8002_v6 = vor.u32 %v10385_v1, %v8001_v0  ;;  %4847 = vmatpush.bf16.msra.mxu0 %v7746_v4 }
  0x52   :  { %v7729_v7 = vld [vmem:[%s16255_s1 + $0x860] sm:$0xf]  ;;  %v10317_v8 = vld [vmem:[%s16255_s1 + $0x86c] sm:$0xf0]  ;;  %v8130_v10 = vor.u32 %v10417_v3, %v8129_v2 }
  0x53   :  { %v7857_v9 = vld [vmem:[%s16255_s1 + $0x960] sm:$0xf]  ;;  %v10349_v11 = vld [vmem:[%s16255_s1 + $0x96c] sm:$0xf0]  ;;  %v7730_v16 = vor.u32 %v10317_v8, %v7729_v7  ;;  %4860 = vmatpush.bf16.msra.mxu1 %v7874_v5  ;;  %4873 = vmatpush.bf16.msra.mxu2 %v8002_v6 }
  0x54   :  { %v7985_v12 = vld [vmem:[%s16255_s1 + $0xa60] sm:$0xf]  ;;  %v10381_v13 = vld [vmem:[%s16255_s1 + $0xa6c] sm:$0xf0]  ;;  %v7858_v17 = vor.u32 %v10349_v11, %v7857_v9  ;;  %4886 = vmatpush.bf16.msra.mxu3 %v8130_v10  ;;  %v838_v10 = vunpack.c.l.b16 %v31_v61 }
  0x55   :  { %v8113_v14 = vld [vmem:[%s16255_s1 + $0xb60] sm:$0xf]  ;;  %v10413_v15 = vld [vmem:[%s16255_s1 + $0xb6c] sm:$0xf0]  ;;  %v7986_v21 = vor.u32 %v10381_v13, %v7985_v12  ;;  %4848 = vmatpush.bf16.msra.mxu0 %v7730_v16 }
  0x56   :  { %v7713_v23 = vld [vmem:[%s16255_s1 + $0x840] sm:$0xf]  ;;  %v10313_v24 = vld [vmem:[%s16255_s1 + $0x84c] sm:$0xf0]  ;;  %v8114_v26 = vor.u32 %v10413_v15, %v8113_v14  ;;  %v839_v14 = vunpack.c.h.b16 %v31_v61 }
  0x57   :  { %v7841_v25 = vld [vmem:[%s16255_s1 + $0x940] sm:$0xf]  ;;  %v10345_v27 = vld [vmem:[%s16255_s1 + $0x94c] sm:$0xf0]  ;;  %v7714_v32 = vor.u32 %v10313_v24, %v7713_v23  ;;  %4861 = vmatpush.bf16.msra.mxu1 %v7858_v17  ;;  %4874 = vmatpush.bf16.msra.mxu2 %v7986_v21 }
  0x58   :  { %v7969_v28 = vld [vmem:[%s16255_s1 + $0xa40] sm:$0xf]  ;;  %v10377_v29 = vld [vmem:[%s16255_s1 + $0xa4c] sm:$0xf0]  ;;  %v7842_v33 = vor.u32 %v10345_v27, %v7841_v25  ;;  %4887 = vmatpush.bf16.msra.mxu3 %v8114_v26 }
  0x59   :  { %v8097_v30 = vld [vmem:[%s16255_s1 + $0xb40] sm:$0xf]  ;;  %v10409_v31 = vld [vmem:[%s16255_s1 + $0xb4c] sm:$0xf0]  ;;  %v7970_v34 = vor.u32 %v10377_v29, %v7969_v28  ;;  %4849 = vmatpush.bf16.msra.mxu0 %v7714_v32  ;;  %v11601_v29 = vpack.c.b16 %v838_v10, %v838_v10 }
  0x5a   :  { %v7697_v35 = vld [vmem:[%s16255_s1 + $0x820] sm:$0xf]  ;;  %v10309_v36 = vld [vmem:[%s16255_s1 + $0x82c] sm:$0xf0]  ;;  %v8098_v39 = vor.u32 %v10409_v31, %v8097_v30 }
  0x5b   :  { %v7825_v37 = vld [vmem:[%s16255_s1 + $0x920] sm:$0xf]  ;;  %v10341_v40 = vld [vmem:[%s16255_s1 + $0x92c] sm:$0xf0]  ;;  %v7698_v49 = vor.u32 %v10309_v36, %v7697_v35  ;;  %4862 = vmatpush.bf16.msra.mxu1 %v7842_v33  ;;  %4875 = vmatpush.bf16.msra.mxu2 %v7970_v34  ;;  %v11611_v33 = vpack.c.b16 %v839_v14, %v839_v14 }
  0x5c   :  { %v7953_v43 = vld [vmem:[%s16255_s1 + $0xa20] sm:$0xf]  ;;  %v10373_v45 = vld [vmem:[%s16255_s1 + $0xa2c] sm:$0xf0]  ;;  %v7826_v53 = vor.u32 %v10341_v40, %v7825_v37  ;;  %4888 = vmatpush.bf16.msra.mxu3 %v8098_v39 }
  0x5d   :  { %v8081_v46 = vld [vmem:[%s16255_s1 + $0xb20] sm:$0xf]  ;;  %v10405_v47 = vld [vmem:[%s16255_s1 + $0xb2c] sm:$0xf0]  ;;  %v7954_v54 = vor.u32 %v10373_v45, %v7953_v43  ;;  %4850 = vmatpush.bf16.msra.mxu0 %v7698_v49 }
  0x5e   :  { %v7681_v48 = vld [vmem:[%s16255_s1 + $0x800] sm:$0xf]  ;;  %v10305_v50 = vld [vmem:[%s16255_s1 + $0x80c] sm:$0xf0]  ;;  %v8082_v58 = vor.u32 %v10405_v47, %v8081_v46 }
  0x5f   :  { %v7809_v51 = vld [vmem:[%s16255_s1 + $0x900] sm:$0xf]  ;;  %v10337_v52 = vld [vmem:[%s16255_s1 + $0x90c] sm:$0xf0]  ;;  %v7682_v1 = vor.u32 %v10305_v50, %v7681_v48  ;;  %4863 = vmatpush.bf16.msra.mxu1 %v7826_v53  ;;  %4876 = vmatpush.bf16.msra.mxu2 %v7954_v54 }
  0x60   :  { %v7937_v55 = vld [vmem:[%s16255_s1 + $0xa00] sm:$0xf]  ;;  %v10369_v56 = vld [vmem:[%s16255_s1 + $0xa0c] sm:$0xf0]  ;;  %v7810_v6 = vor.u32 %v10337_v52, %v7809_v51  ;;  %4889 = vmatpush.bf16.msra.mxu3 %v8082_v58 }
  0x61   :  { %v30_v57 = vld [vmem:[%s16256_s0 + $0x20] sm:$0xff]  ;;  %v10401_v60 = vld [vmem:[%s16255_s1 + $0xb0c] sm:$0xf0]  ;;  %v7938_v7 = vor.u32 %v10369_v56, %v7937_v55  ;;  %4851 = vmatpush.bf16.msra.mxu0 %v7682_v1 }
  0x62   :  { %v8065_v59 = vld [vmem:[%s16255_s1 + $0xb00] sm:$0xf]  ;;  %v10461_v63 = vld [vmem:[%s16255_s1 + $0xcec] sm:$0xf0]  ;;  %v836_v5 = vunpack.c.l.b16 %v30_v57  ;;  %v837_v11 = vunpack.c.h.b16 %v30_v57 }
  0x63   :  { %v8305_v62 = vld [vmem:[%s16255_s1 + $0xce0] sm:$0xf]  ;;  %v10493_v2 = vld [vmem:[%s16255_s1 + $0xdec] sm:$0xf0]  ;;  %v8066_v12 = vor.u32 %v10401_v60, %v8065_v59  ;;  %4864 = vmatpush.bf16.msra.mxu1 %v7810_v6  ;;  %4877 = vmatpush.bf16.msra.mxu2 %v7938_v7 }
  0x64   :  { %v8433_v0 = vld [vmem:[%s16255_s1 + $0xde0] sm:$0xf]  ;;  %v10525_v4 = vld [vmem:[%s16255_s1 + $0xeec] sm:$0xf0]  ;;  %v8306_v13 = vor.u32 %v10461_v63, %v8305_v62  ;;  %v11590_v25 = vpack.c.b16 %v836_v5, %v836_v5  ;;  %v11603_v30 = vpack.c.b16 %v837_v11, %v837_v11 }
  0x65   :  { %v8561_v3 = vld [vmem:[%s16255_s1 + $0xee0] sm:$0xf]  ;;  %v10557_v9 = vld [vmem:[%s16255_s1 + $0xfec] sm:$0xf0]  ;;  %v8434_v15 = vor.u32 %v10493_v2, %v8433_v0  ;;  %4890 = vmatpush.bf16.msra.mxu3 %v8066_v12 }
  0x66   :  { %v8689_v8 = vld [vmem:[%s16255_s1 + $0xfe0] sm:$0xf]  ;;  %v8562_v16 = vor.u32 %v10525_v4, %v8561_v3  ;;  %v10457_v21 = vld [vmem:[%s16255_s1 + $0xccc] sm:$0xf0]  ;;  %4896 = vmatpush.bf16.msrb.mxu0 %v8306_v13  ;;  %4878 = vmatmul.bf16.vlgmr.msra.gmra.mxu2 %v11601_v29 }
  0x67   :  { %v8289_v17 = vld [vmem:[%s16255_s1 + $0xcc0] sm:$0xf]  ;;  %v8690_v24 = vor.u32 %v10557_v9, %v8689_v8  ;;  %v10489_v26 = vld [vmem:[%s16255_s1 + $0xdcc] sm:$0xf0]  ;;  %4909 = vmatpush.bf16.msrb.mxu1 %v8434_v15  ;;  %4852 = vmatmul.bf16.vlgmr.msra.gmra.mxu0 %v11590_v25 }
  0x68   :  { %v8417_v23 = vld [vmem:[%s16255_s1 + $0xdc0] sm:$0xf]  ;;  %v10521_v28 = vld [vmem:[%s16255_s1 + $0xecc] sm:$0xf0]  ;;  %v8290_v34 = vor.u32 %v10457_v21, %v8289_v17  ;;  %4922 = vmatpush.bf16.msrb.mxu2 %v8562_v16  ;;  %4865 = vmatmul.bf16.vlgmr.msra.gmra.mxu1 %v11603_v30 }
  0x69   :  { %v8545_v27 = vld [vmem:[%s16255_s1 + $0xec0] sm:$0xf]  ;;  %v10553_v32 = vld [vmem:[%s16255_s1 + $0xfcc] sm:$0xf0]  ;;  %v8418_v35 = vor.u32 %v10489_v26, %v8417_v23  ;;  %4935 = vmatpush.bf16.msrb.mxu3 %v8690_v24 }
  0x6a   :  { %v8673_v31 = vld [vmem:[%s16255_s1 + $0xfc0] sm:$0xf]  ;;  %v8546_v36 = vor.u32 %v10521_v28, %v8545_v27  ;;  %v10453_v39 = vld [vmem:[%s16255_s1 + $0xcac] sm:$0xf0]  ;;  %4891 = vmatmul.bf16.vlgmr.msra.gmra.mxu3 %v11611_v33  ;;  %4897 = vmatpush.bf16.msrb.mxu0 %v8290_v34 }
  0x6b   :  { %v8273_v37 = vld [vmem:[%s16255_s1 + $0xca0] sm:$0xf]  ;;  %v8674_v43 = vor.u32 %v10553_v32, %v8673_v31  ;;  %v10485_v45 = vld [vmem:[%s16255_s1 + $0xdac] sm:$0xf0]  ;;  %4910 = vmatpush.bf16.msrb.mxu1 %v8418_v35 }
  0x6c   :  { %v8401_v40 = vld [vmem:[%s16255_s1 + $0xda0] sm:$0xf]  ;;  %v10517_v47 = vld [vmem:[%s16255_s1 + $0xeac] sm:$0xf0]  ;;  %v8274_v50 = vor.u32 %v10453_v39, %v8273_v37  ;;  %4923 = vmatpush.bf16.msrb.mxu2 %v8546_v36 }
  0x6d   :  { %v8529_v46 = vld [vmem:[%s16255_s1 + $0xea0] sm:$0xf]  ;;  %v10549_v49 = vld [vmem:[%s16255_s1 + $0xfac] sm:$0xf0]  ;;  %v8402_v51 = vor.u32 %v10485_v45, %v8401_v40  ;;  %4936 = vmatpush.bf16.msrb.mxu3 %v8674_v43 }
  0x6e   :  { %v8657_v48 = vld [vmem:[%s16255_s1 + $0xfa0] sm:$0xf]  ;;  %v8530_v52 = vor.u32 %v10517_v47, %v8529_v46  ;;  %v10449_v54 = vld [vmem:[%s16255_s1 + $0xc8c] sm:$0xf0]  ;;  %4898 = vmatpush.bf16.msrb.mxu0 %v8274_v50 }
  0x6f   :  { %v8257_v53 = vld [vmem:[%s16255_s1 + $0xc80] sm:$0xf]  ;;  %v8658_v56 = vor.u32 %v10549_v49, %v8657_v48  ;;  %v10481_v57 = vld [vmem:[%s16255_s1 + $0xd8c] sm:$0xf0]  ;;  %4911 = vmatpush.bf16.msrb.mxu1 %v8402_v51 }
  0x70   :  { %v8385_v55 = vld [vmem:[%s16255_s1 + $0xd80] sm:$0xf]  ;;  %v10513_v59 = vld [vmem:[%s16255_s1 + $0xe8c] sm:$0xf0]  ;;  %v8258_v62 = vor.u32 %v10449_v54, %v8257_v53  ;;  %4924 = vmatpush.bf16.msrb.mxu2 %v8530_v52 }
  0x71   :  { %v8513_v58 = vld [vmem:[%s16255_s1 + $0xe80] sm:$0xf]  ;;  %v10545_v61 = vld [vmem:[%s16255_s1 + $0xf8c] sm:$0xf0]  ;;  %v8386_v63 = vor.u32 %v10481_v57, %v8385_v55  ;;  %4937 = vmatpush.bf16.msrb.mxu3 %v8658_v56 }
  0x72   :  { %v8641_v60 = vld [vmem:[%s16255_s1 + $0xf80] sm:$0xf]  ;;  %v8514_v0 = vor.u32 %v10513_v59, %v8513_v58  ;;  %v10445_v2 = vld [vmem:[%s16255_s1 + $0xc6c] sm:$0xf0]  ;;  %4899 = vmatpush.bf16.msrb.mxu0 %v8258_v62  ;;  %v33_v59 = vld [vmem:[%s16256_s0 + $0x38] sm:$0xff] }
  0x73   :  { %v8241_v1 = vld [vmem:[%s16255_s1 + $0xc60] sm:$0xf]  ;;  %v8642_v4 = vor.u32 %v10545_v61, %v8641_v60  ;;  %v10477_v5 = vld [vmem:[%s16255_s1 + $0xd6c] sm:$0xf0]  ;;  %4912 = vmatpush.bf16.msrb.mxu1 %v8386_v63 }
  0x74   :  { %v8369_v3 = vld [vmem:[%s16255_s1 + $0xd60] sm:$0xf]  ;;  %v10509_v7 = vld [vmem:[%s16255_s1 + $0xe6c] sm:$0xf0]  ;;  %v8242_v10 = vor.u32 %v10445_v2, %v8241_v1  ;;  %4925 = vmatpush.bf16.msrb.mxu2 %v8514_v0 }
  0x75   :  { %v8497_v6 = vld [vmem:[%s16255_s1 + $0xe60] sm:$0xf]  ;;  %v10541_v9 = vld [vmem:[%s16255_s1 + $0xf6c] sm:$0xf0]  ;;  %v8370_v11 = vor.u32 %v10477_v5, %v8369_v3  ;;  %4938 = vmatpush.bf16.msrb.mxu3 %v8642_v4 }
  0x76   :  { %v8625_v8 = vld [vmem:[%s16255_s1 + $0xf60] sm:$0xf]  ;;  %v8498_v12 = vor.u32 %v10509_v7, %v8497_v6  ;;  %v10441_v14 = vld [vmem:[%s16255_s1 + $0xc4c] sm:$0xf0]  ;;  %4900 = vmatpush.bf16.msrb.mxu0 %v8242_v10 }
  0x77   :  { %v8225_v13 = vld [vmem:[%s16255_s1 + $0xc40] sm:$0xf]  ;;  %v8626_v16 = vor.u32 %v10541_v9, %v8625_v8  ;;  %v10473_v17 = vld [vmem:[%s16255_s1 + $0xd4c] sm:$0xf0]  ;;  %4913 = vmatpush.bf16.msrb.mxu1 %v8370_v11  ;;  %v842_v8 = vunpack.c.l.b16 %v33_v59 }
  0x78   :  { %v8353_v15 = vld [vmem:[%s16255_s1 + $0xd40] sm:$0xf]  ;;  %v10505_v23 = vld [vmem:[%s16255_s1 + $0xe4c] sm:$0xf0]  ;;  %v8226_v27 = vor.u32 %v10441_v14, %v8225_v13  ;;  %4926 = vmatpush.bf16.msrb.mxu2 %v8498_v12  ;;  %v843_v12 = vunpack.c.h.b16 %v33_v59 }
  0x79   :  { %v8481_v21 = vld [vmem:[%s16255_s1 + $0xe40] sm:$0xf]  ;;  %v10537_v26 = vld [vmem:[%s16255_s1 + $0xf4c] sm:$0xf0]  ;;  %v8354_v28 = vor.u32 %v10473_v17, %v8353_v15  ;;  %4939 = vmatpush.bf16.msrb.mxu3 %v8626_v16 }
  0x7a   :  { %v8609_v24 = vld [vmem:[%s16255_s1 + $0xf40] sm:$0xf]  ;;  %v8482_v31 = vor.u32 %v10505_v23, %v8481_v21  ;;  %v10437_v34 = vld [vmem:[%s16255_s1 + $0xc2c] sm:$0xf0]  ;;  %4901 = vmatpush.bf16.msrb.mxu0 %v8226_v27 }
  0x7b   :  { %v8209_v32 = vld [vmem:[%s16255_s1 + $0xc20] sm:$0xf]  ;;  %v8610_v36 = vor.u32 %v10537_v26, %v8609_v24  ;;  %v10469_v37 = vld [vmem:[%s16255_s1 + $0xd2c] sm:$0xf0]  ;;  %4914 = vmatpush.bf16.msrb.mxu1 %v8354_v28  ;;  %v11811_v28 = vpack.c.b16 %v842_v8, %v842_v8 }
  0x7c   :  { %v8337_v35 = vld [vmem:[%s16255_s1 + $0xd20] sm:$0xf]  ;;  %v10501_v40 = vld [vmem:[%s16255_s1 + $0xe2c] sm:$0xf0]  ;;  %v8210_v47 = vor.u32 %v10437_v34, %v8209_v32  ;;  %4927 = vmatpush.bf16.msrb.mxu2 %v8482_v31 }
  0x7d   :  { %v8465_v39 = vld [vmem:[%s16255_s1 + $0xe20] sm:$0xf]  ;;  %v10533_v45 = vld [vmem:[%s16255_s1 + $0xf2c] sm:$0xf0]  ;;  %v8338_v51 = vor.u32 %v10469_v37, %v8337_v35  ;;  %4940 = vmatpush.bf16.msrb.mxu3 %v8610_v36  ;;  %v11821_v35 = vpack.c.b16 %v843_v12, %v843_v12 }
  0x7e   :  { %v8593_v43 = vld [vmem:[%s16255_s1 + $0xf20] sm:$0xf]  ;;  %v10433_v48 = vld [vmem:[%s16255_s1 + $0xc0c] sm:$0xf0]  ;;  %v8466_v52 = vor.u32 %v10501_v40, %v8465_v39  ;;  %4902 = vmatpush.bf16.msrb.mxu0 %v8210_v47 }
  0x7f   :  { %v8193_v46 = vld [vmem:[%s16255_s1 + $0xc00] sm:$0xf]  ;;  %v10465_v50 = vld [vmem:[%s16255_s1 + $0xd0c] sm:$0xf0]  ;;  %v8594_v56 = vor.u32 %v10533_v45, %v8593_v43  ;;  %4915 = vmatpush.bf16.msrb.mxu1 %v8338_v51 }
  0x80   :  { %v8321_v49 = vld [vmem:[%s16255_s1 + $0xd00] sm:$0xf]  ;;  %v10497_v54 = vld [vmem:[%s16255_s1 + $0xe0c] sm:$0xf0]  ;;  %v8194_v63 = vor.u32 %v10433_v48, %v8193_v46  ;;  %4928 = vmatpush.bf16.msrb.mxu2 %v8466_v52 }
  0x81   :  { %v8449_v53 = vld [vmem:[%s16255_s1 + $0xe00] sm:$0xf]  ;;  %v32_v55 = vld [vmem:[%s16256_s0 + $0x30] sm:$0xff]  ;;  %v8322_v4 = vor.u32 %v10465_v50, %v8321_v49  ;;  %4941 = vmatpush.bf16.msrb.mxu3 %v8594_v56 }
  0x82   :  { %v8577_v57 = vld [vmem:[%s16255_s1 + $0xf00] sm:$0xf]  ;;  %v10529_v58 = vld [vmem:[%s16255_s1 + $0xf0c] sm:$0xf0]  ;;  %v840_v3 = vunpack.c.l.b16 %v32_v55  ;;  %v8450_v5 = vor.u32 %v10497_v54, %v8449_v53  ;;  %v841_v9 = vunpack.c.h.b16 %v32_v55  ;;  %4903 = vmatpush.bf16.msrb.mxu0 %v8194_v63 }
  0x83   :  { %v8817_v60 = vld [vmem:[%s16255_s1 + $0x10e0] sm:$0xf]  ;;  %v10589_v61 = vld [vmem:[%s16255_s1 + $0x10ec] sm:$0xf0]  ;;  %v8578_v10 = vor.u32 %v10529_v58, %v8577_v57  ;;  %4916 = vmatpush.bf16.msrb.mxu1 %v8322_v4 }
  0x84   :  { %v8945_v62 = vld [vmem:[%s16255_s1 + $0x11e0] sm:$0xf]  ;;  %v10621_v0 = vld [vmem:[%s16255_s1 + $0x11ec] sm:$0xf0]  ;;  %v8818_v11 = vor.u32 %v10589_v61, %v8817_v60  ;;  %v11800_v23 = vpack.c.b16 %v840_v3, %v840_v3  ;;  %4929 = vmatpush.bf16.msrb.mxu2 %v8450_v5  ;;  %v11813_v31 = vpack.c.b16 %v841_v9, %v841_v9 }
  0x85   :  { %v9073_v1 = vld [vmem:[%s16255_s1 + $0x12e0] sm:$0xf]  ;;  %v10653_v2 = vld [vmem:[%s16255_s1 + $0x12ec] sm:$0xf0]  ;;  %v8946_v13 = vor.u32 %v10621_v0, %v8945_v62  ;;  %4942 = vmatpush.bf16.msrb.mxu3 %v8578_v10 }
  0x86   :  { %v9201_v6 = vld [vmem:[%s16255_s1 + $0x13e0] sm:$0xf]  ;;  %v10685_v7 = vld [vmem:[%s16255_s1 + $0x13ec] sm:$0xf0]  ;;  %v9074_v14 = vor.u32 %v10653_v2, %v9073_v1  ;;  %4948 = vmatpush.bf16.msra.mxu0 %v8818_v11  ;;  %4917 = vmatmul.bf16.vlgmr.msrb.gmra.mxu1 %v11813_v31 }
  0x87   :  { %v8801_v15 = vld [vmem:[%s16255_s1 + $0x10c0] sm:$0xf]  ;;  %v10585_v16 = vld [vmem:[%s16255_s1 + $0x10cc] sm:$0xf0]  ;;  %v9202_v21 = vor.u32 %v10685_v7, %v9201_v6  ;;  %4961 = vmatpush.bf16.msra.mxu1 %v8946_v13  ;;  %4904 = vmatmul.bf16.vlgmr.msrb.gmra.mxu0 %v11800_v23 }
  0x88   :  { %v8929_v17 = vld [vmem:[%s16255_s1 + $0x11c0] sm:$0xf]  ;;  %v10617_v24 = vld [vmem:[%s16255_s1 + $0x11cc] sm:$0xf0]  ;;  %v8802_v36 = vor.u32 %v10585_v16, %v8801_v15  ;;  %4974 = vmatpush.bf16.msra.mxu2 %v9074_v14  ;;  %4943 = vmatmul.bf16.vlgmr.msrb.gmra.mxu3 %v11821_v35 }
  0x89   :  { %v9057_v26 = vld [vmem:[%s16255_s1 + $0x12c0] sm:$0xf]  ;;  %v10649_v27 = vld [vmem:[%s16255_s1 + $0x12cc] sm:$0xf0]  ;;  %v8930_v37 = vor.u32 %v10617_v24, %v8929_v17  ;;  %4987 = vmatpush.bf16.msra.mxu3 %v9202_v21  ;;  %4930 = vmatmul.bf16.vlgmr.msrb.gmra.mxu2 %v11811_v28 }
  0x8a   :  { %v9185_v32 = vld [vmem:[%s16255_s1 + $0x13c0] sm:$0xf]  ;;  %v10681_v34 = vld [vmem:[%s16255_s1 + $0x13cc] sm:$0xf0]  ;;  %v9058_v39 = vor.u32 %v10649_v27, %v9057_v26  ;;  %4949 = vmatpush.bf16.msra.mxu0 %v8802_v36 }
  0x8b   :  { %v8785_v40 = vld [vmem:[%s16255_s1 + $0x10a0] sm:$0xf]  ;;  %v10581_v43 = vld [vmem:[%s16255_s1 + $0x10ac] sm:$0xf0]  ;;  %v9186_v46 = vor.u32 %v10681_v34, %v9185_v32  ;;  %4962 = vmatpush.bf16.msra.mxu1 %v8930_v37 }
  0x8c   :  { %v8913_v45 = vld [vmem:[%s16255_s1 + $0x11a0] sm:$0xf]  ;;  %v10613_v47 = vld [vmem:[%s16255_s1 + $0x11ac] sm:$0xf0]  ;;  %v8786_v52 = vor.u32 %v10581_v43, %v8785_v40  ;;  %4975 = vmatpush.bf16.msra.mxu2 %v9058_v39 }
  0x8d   :  { %v9041_v48 = vld [vmem:[%s16255_s1 + $0x12a0] sm:$0xf]  ;;  %v10645_v49 = vld [vmem:[%s16255_s1 + $0x12ac] sm:$0xf0]  ;;  %v8914_v53 = vor.u32 %v10613_v47, %v8913_v45  ;;  %4988 = vmatpush.bf16.msra.mxu3 %v9186_v46 }
  0x8e   :  { %v9169_v50 = vld [vmem:[%s16255_s1 + $0x13a0] sm:$0xf]  ;;  %v10677_v51 = vld [vmem:[%s16255_s1 + $0x13ac] sm:$0xf0]  ;;  %v9042_v54 = vor.u32 %v10645_v49, %v9041_v48  ;;  %4950 = vmatpush.bf16.msra.mxu0 %v8786_v52 }
  0x8f   :  { %v8769_v55 = vld [vmem:[%s16255_s1 + $0x1080] sm:$0xf]  ;;  %v10577_v56 = vld [vmem:[%s16255_s1 + $0x108c] sm:$0xf0]  ;;  %v9170_v58 = vor.u32 %v10677_v51, %v9169_v50  ;;  %4963 = vmatpush.bf16.msra.mxu1 %v8914_v53 }
  0x90   :  { %v8897_v57 = vld [vmem:[%s16255_s1 + $0x1180] sm:$0xf]  ;;  %v10609_v59 = vld [vmem:[%s16255_s1 + $0x118c] sm:$0xf0]  ;;  %v8770_v0 = vor.u32 %v10577_v56, %v8769_v55  ;;  %4976 = vmatpush.bf16.msra.mxu2 %v9042_v54 }
  0x91   :  { %v9025_v60 = vld [vmem:[%s16255_s1 + $0x1280] sm:$0xf]  ;;  %v10641_v61 = vld [vmem:[%s16255_s1 + $0x128c] sm:$0xf0]  ;;  %v8898_v1 = vor.u32 %v10609_v59, %v8897_v57  ;;  %4989 = vmatpush.bf16.msra.mxu3 %v9170_v58 }
  0x92   :  { %v9153_v62 = vld [vmem:[%s16255_s1 + $0x1380] sm:$0xf]  ;;  %v10673_v63 = vld [vmem:[%s16255_s1 + $0x138c] sm:$0xf0]  ;;  %v9026_v2 = vor.u32 %v10641_v61, %v9025_v60  ;;  %4951 = vmatpush.bf16.msra.mxu0 %v8770_v0 }
  0x93   :  { %v8753_v3 = vld [vmem:[%s16255_s1 + $0x1060] sm:$0xf]  ;;  %v10573_v4 = vld [vmem:[%s16255_s1 + $0x106c] sm:$0xf0]  ;;  %v9154_v6 = vor.u32 %v10673_v63, %v9153_v62  ;;  %4964 = vmatpush.bf16.msra.mxu1 %v8898_v1  ;;  %v35_v1 = vld [vmem:[%s16256_s0 + $0x48] sm:$0xff] }
  0x94   :  { %v8881_v5 = vld [vmem:[%s16255_s1 + $0x1160] sm:$0xf]  ;;  %v10605_v7 = vld [vmem:[%s16255_s1 + $0x116c] sm:$0xf0]  ;;  %v8754_v12 = vor.u32 %v10573_v4, %v8753_v3  ;;  %4977 = vmatpush.bf16.msra.mxu2 %v9026_v2 }
  0x95   :  { %v9009_v8 = vld [vmem:[%s16255_s1 + $0x1260] sm:$0xf]  ;;  %v10637_v9 = vld [vmem:[%s16255_s1 + $0x126c] sm:$0xf0]  ;;  %v8882_v13 = vor.u32 %v10605_v7, %v8881_v5  ;;  %4990 = vmatpush.bf16.msra.mxu3 %v9154_v6 }
  0x96   :  { %v9137_v10 = vld [vmem:[%s16255_s1 + $0x1360] sm:$0xf]  ;;  %v10669_v11 = vld [vmem:[%s16255_s1 + $0x136c] sm:$0xf0]  ;;  %v9010_v14 = vor.u32 %v10637_v9, %v9009_v8  ;;  %4952 = vmatpush.bf16.msra.mxu0 %v8754_v12 }
  0x97   :  { %v8737_v15 = vld [vmem:[%s16255_s1 + $0x1040] sm:$0xf]  ;;  %v10569_v16 = vld [vmem:[%s16255_s1 + $0x104c] sm:$0xf0]  ;;  %v9138_v21 = vor.u32 %v10669_v11, %v9137_v10  ;;  %4965 = vmatpush.bf16.msra.mxu1 %v8882_v13 }
  0x98   :  { %v8865_v17 = vld [vmem:[%s16255_s1 + $0x1140] sm:$0xf]  ;;  %v10601_v24 = vld [vmem:[%s16255_s1 + $0x114c] sm:$0xf0]  ;;  %v8738_v36 = vor.u32 %v10569_v16, %v8737_v15  ;;  %4978 = vmatpush.bf16.msra.mxu2 %v9010_v14  ;;  %v846_v14 = vunpack.c.l.b16 %v35_v1 }
  0x99   :  { %v8993_v26 = vld [vmem:[%s16255_s1 + $0x1240] sm:$0xf]  ;;  %v10633_v27 = vld [vmem:[%s16255_s1 + $0x124c] sm:$0xf0]  ;;  %v8866_v37 = vor.u32 %v10601_v24, %v8865_v17  ;;  %4991 = vmatpush.bf16.msra.mxu3 %v9138_v21  ;;  %v847_v21 = vunpack.c.h.b16 %v35_v1 }
  0x9a   :  { %v9121_v32 = vld [vmem:[%s16255_s1 + $0x1340] sm:$0xf]  ;;  %v10665_v34 = vld [vmem:[%s16255_s1 + $0x134c] sm:$0xf0]  ;;  %v8994_v39 = vor.u32 %v10633_v27, %v8993_v26  ;;  %4953 = vmatpush.bf16.msra.mxu0 %v8738_v36 }
  0x9b   :  { %v8721_v40 = vld [vmem:[%s16255_s1 + $0x1020] sm:$0xf]  ;;  %v10565_v43 = vld [vmem:[%s16255_s1 + $0x102c] sm:$0xf0]  ;;  %v9122_v46 = vor.u32 %v10665_v34, %v9121_v32  ;;  %4966 = vmatpush.bf16.msra.mxu1 %v8866_v37 }
  0x9c   :  { %v8849_v45 = vld [vmem:[%s16255_s1 + $0x1120] sm:$0xf]  ;;  %v10597_v47 = vld [vmem:[%s16255_s1 + $0x112c] sm:$0xf0]  ;;  %v8722_v53 = vor.u32 %v10565_v43, %v8721_v40  ;;  %4979 = vmatpush.bf16.msra.mxu2 %v8994_v39 }
  0x9d   :  { %v8977_v48 = vld [vmem:[%s16255_s1 + $0x1220] sm:$0xf]  ;;  %v10629_v49 = vld [vmem:[%s16255_s1 + $0x122c] sm:$0xf0]  ;;  %v8850_v57 = vor.u32 %v10597_v47, %v8849_v45  ;;  %4992 = vmatpush.bf16.msra.mxu3 %v9122_v46  ;;  %v12021_v45 = vpack.c.b16 %v846_v14, %v846_v14 }
  0x9e   :  { %v9105_v50 = vld [vmem:[%s16255_s1 + $0x1320] sm:$0xf]  ;;  %v10661_v51 = vld [vmem:[%s16255_s1 + $0x132c] sm:$0xf0]  ;;  %v8978_v58 = vor.u32 %v10629_v49, %v8977_v48  ;;  %4954 = vmatpush.bf16.msra.mxu0 %v8722_v53  ;;  %v12031_v49 = vpack.c.b16 %v847_v21, %v847_v21 }
  0x9f   :  { %v8705_v52 = vld [vmem:[%s16255_s1 + $0x1000] sm:$0xf]  ;;  %v10561_v54 = vld [vmem:[%s16255_s1 + $0x100c] sm:$0xf0]  ;;  %v9106_v62 = vor.u32 %v10661_v51, %v9105_v50  ;;  %4967 = vmatpush.bf16.msra.mxu1 %v8850_v57 }
  0xa0   :  { %v8833_v55 = vld [vmem:[%s16255_s1 + $0x1100] sm:$0xf]  ;;  %v10593_v56 = vld [vmem:[%s16255_s1 + $0x110c] sm:$0xf0]  ;;  %v8706_v5 = vor.u32 %v10561_v54, %v8705_v52  ;;  %4980 = vmatpush.bf16.msra.mxu2 %v8978_v58 }
  0xa1   :  { %v8961_v59 = vld [vmem:[%s16255_s1 + $0x1200] sm:$0xf]  ;;  %v10625_v60 = vld [vmem:[%s16255_s1 + $0x120c] sm:$0xf0]  ;;  %v8834_v10 = vor.u32 %v10593_v56, %v8833_v55  ;;  %4993 = vmatpush.bf16.msra.mxu3 %v9106_v62 }
  0xa2   :  { %v34_v61 = vld [vmem:[%s16256_s0 + $0x40] sm:$0xff]  ;;  %v10657_v0 = vld [vmem:[%s16255_s1 + $0x130c] sm:$0xf0]  ;;  %v8962_v11 = vor.u32 %v10625_v60, %v8961_v59  ;;  %4955 = vmatpush.bf16.msra.mxu0 %v8706_v5 }
  0xa3   :  { %v9089_v63 = vld [vmem:[%s16255_s1 + $0x1300] sm:$0xf]  ;;  %v10717_v3 = vld [vmem:[%s16255_s1 + $0x14ec] sm:$0xf0]  ;;  %v844_v9 = vunpack.c.l.b16 %v34_v61  ;;  %v845_v15 = vunpack.c.h.b16 %v34_v61  ;;  %4968 = vmatpush.bf16.msra.mxu1 %v8834_v10 }
  0xa4   :  { %v9329_v2 = vld [vmem:[%s16255_s1 + $0x14e0] sm:$0xf]  ;;  %v10749_v6 = vld [vmem:[%s16255_s1 + $0x15ec] sm:$0xf0]  ;;  %v9090_v16 = vor.u32 %v10657_v0, %v9089_v63  ;;  %4981 = vmatpush.bf16.msra.mxu2 %v8962_v11 }
  0xa5   :  { %v9457_v4 = vld [vmem:[%s16255_s1 + $0x15e0] sm:$0xf]  ;;  %v10781_v8 = vld [vmem:[%s16255_s1 + $0x16ec] sm:$0xf0]  ;;  %v9330_v17 = vor.u32 %v10717_v3, %v9329_v2  ;;  %v12010_v37 = vpack.c.b16 %v844_v9, %v844_v9  ;;  %v12023_v46 = vpack.c.b16 %v845_v15, %v845_v15 }
  0xa6   :  { %v9585_v7 = vld [vmem:[%s16255_s1 + $0x16e0] sm:$0xf]  ;;  %v10813_v13 = vld [vmem:[%s16255_s1 + $0x17ec] sm:$0xf0]  ;;  %v9458_v24 = vor.u32 %v10749_v6, %v9457_v4  ;;  %4994 = vmatpush.bf16.msra.mxu3 %v9090_v16 }
  0xa7   :  { %v9713_v12 = vld [vmem:[%s16255_s1 + $0x17e0] sm:$0xf]  ;;  %v9586_v26 = vor.u32 %v10781_v8, %v9585_v7  ;;  %v10713_v32 = vld [vmem:[%s16255_s1 + $0x14cc] sm:$0xf0]  ;;  %5000 = vmatpush.bf16.msrb.mxu0 %v9330_v17  ;;  %4982 = vmatmul.bf16.vlgmr.msra.gmra.mxu2 %v12021_v45 }
  0xa8   :  { %v9313_v27 = vld [vmem:[%s16255_s1 + $0x14c0] sm:$0xf]  ;;  %v9714_v36 = vor.u32 %v10813_v13, %v9713_v12  ;;  %v10745_v39 = vld [vmem:[%s16255_s1 + $0x15cc] sm:$0xf0]  ;;  %5013 = vmatpush.bf16.msrb.mxu1 %v9458_v24  ;;  %4956 = vmatmul.bf16.vlgmr.msra.gmra.mxu0 %v12010_v37 }
  0xa9   :  { %v9441_v34 = vld [vmem:[%s16255_s1 + $0x15c0] sm:$0xf]  ;;  %v10777_v43 = vld [vmem:[%s16255_s1 + $0x16cc] sm:$0xf0]  ;;  %v9314_v50 = vor.u32 %v10713_v32, %v9313_v27  ;;  %5026 = vmatpush.bf16.msrb.mxu2 %v9586_v26  ;;  %4969 = vmatmul.bf16.vlgmr.msra.gmra.mxu1 %v12023_v46 }
  0xaa   :  { %v9569_v40 = vld [vmem:[%s16255_s1 + $0x16c0] sm:$0xf]  ;;  %v10809_v48 = vld [vmem:[%s16255_s1 + $0x17cc] sm:$0xf0]  ;;  %v9442_v51 = vor.u32 %v10745_v39, %v9441_v34  ;;  %5039 = vmatpush.bf16.msrb.mxu3 %v9714_v36 }
  0xab   :  { %v9697_v47 = vld [vmem:[%s16255_s1 + $0x17c0] sm:$0xf]  ;;  %v9570_v52 = vor.u32 %v10777_v43, %v9569_v40  ;;  %v10709_v54 = vld [vmem:[%s16255_s1 + $0x14ac] sm:$0xf0]  ;;  %4995 = vmatmul.bf16.vlgmr.msra.gmra.mxu3 %v12031_v49  ;;  %5001 = vmatpush.bf16.msrb.mxu0 %v9314_v50 }
  0xac   :  { %v9297_v53 = vld [vmem:[%s16255_s1 + $0x14a0] sm:$0xf]  ;;  %v9698_v56 = vor.u32 %v10809_v48, %v9697_v47  ;;  %v10741_v57 = vld [vmem:[%s16255_s1 + $0x15ac] sm:$0xf0]  ;;  %5014 = vmatpush.bf16.msrb.mxu1 %v9442_v51 }
  0xad   :  { %v9425_v55 = vld [vmem:[%s16255_s1 + $0x15a0] sm:$0xf]  ;;  %v10773_v59 = vld [vmem:[%s16255_s1 + $0x16ac] sm:$0xf0]  ;;  %v9298_v62 = vor.u32 %v10709_v54, %v9297_v53  ;;  %5027 = vmatpush.bf16.msrb.mxu2 %v9570_v52 }
  0xae   :  { %v9553_v58 = vld [vmem:[%s16255_s1 + $0x16a0] sm:$0xf]  ;;  %v10805_v61 = vld [vmem:[%s16255_s1 + $0x17ac] sm:$0xf0]  ;;  %v9426_v63 = vor.u32 %v10741_v57, %v9425_v55  ;;  %5040 = vmatpush.bf16.msrb.mxu3 %v9698_v56 }
  0xaf   :  { %v9681_v60 = vld [vmem:[%s16255_s1 + $0x17a0] sm:$0xf]  ;;  %v9554_v0 = vor.u32 %v10773_v59, %v9553_v58  ;;  %v10705_v2 = vld [vmem:[%s16255_s1 + $0x148c] sm:$0xf0]  ;;  %5002 = vmatpush.bf16.msrb.mxu0 %v9298_v62  ;;  %v4749_v57 = vpop.f32.mrf.mxu0 }
  0xb0   :  { %v9281_v1 = vld [vmem:[%s16255_s1 + $0x1480] sm:$0xf]  ;;  %v9682_v4 = vor.u32 %v10805_v61, %v9681_v60  ;;  %v10737_v5 = vld [vmem:[%s16255_s1 + $0x158c] sm:$0xf0]  ;;  %5015 = vmatpush.bf16.msrb.mxu1 %v9426_v63 }
  0xb1   :  { %v9409_v3 = vld [vmem:[%s16255_s1 + $0x1580] sm:$0xf]  ;;  %v10769_v7 = vld [vmem:[%s16255_s1 + $0x168c] sm:$0xf0]  ;;  %v9282_v10 = vor.u32 %v10705_v2, %v9281_v1  ;;  %5028 = vmatpush.bf16.msrb.mxu2 %v9554_v0  ;;  %v4762_v0 = vpop.f32.mrf.mxu1 }
  0xb2   :  { %v9537_v6 = vld [vmem:[%s16255_s1 + $0x1680] sm:$0xf]  ;;  %v10801_v9 = vld [vmem:[%s16255_s1 + $0x178c] sm:$0xf0]  ;;  %v9410_v12 = vor.u32 %v10737_v5, %v9409_v3  ;;  %5041 = vmatpush.bf16.msrb.mxu3 %v9682_v4 }
  0xb3   :  { %v9665_v8 = vld [vmem:[%s16255_s1 + $0x1780] sm:$0xf]  ;;  %v9538_v13 = vor.u32 %v10769_v7, %v9537_v6  ;;  %v10701_v14 = vld [vmem:[%s16255_s1 + $0x146c] sm:$0xf0]  ;;  %5003 = vmatpush.bf16.msrb.mxu0 %v9282_v10 }
  0xb4   :  { %v9265_v11 = vld [vmem:[%s16255_s1 + $0x1460] sm:$0xf]  ;;  %v10733_v16 = vld [vmem:[%s16255_s1 + $0x156c] sm:$0xf0]  ;;  %v9666_v17 = vor.u32 %v10801_v9, %v9665_v8  ;;  %5016 = vmatpush.bf16.msrb.mxu1 %v9410_v12 }
  0xb5   :  { %v9393_v15 = vld [vmem:[%s16255_s1 + $0x1560] sm:$0xf]  ;;  %v10765_v24 = vld [vmem:[%s16255_s1 + $0x166c] sm:$0xf0]  ;;  %v9266_v34 = vor.u32 %v10701_v14, %v9265_v11  ;;  %5029 = vmatpush.bf16.msrb.mxu2 %v9538_v13 }
  0xb6   :  { %v9521_v21 = vld [vmem:[%s16255_s1 + $0x1660] sm:$0xf]  ;;  %v10797_v32 = vld [vmem:[%s16255_s1 + $0x176c] sm:$0xf0]  ;;  %v9394_v39 = vor.u32 %v10733_v16, %v9393_v15  ;;  %5042 = vmatpush.bf16.msrb.mxu3 %v9666_v17 }
  0xb7   :  { %v806_v26 = vld [vmem:[%s16257_s2] sm:$0xf]  ;;  %v9522_v40 = vor.u32 %v10765_v24, %v9521_v21  ;;  %v10697_v43 = vld [vmem:[%s16255_s1 + $0x144c] sm:$0xf0]  ;;  %5004 = vmatpush.bf16.msrb.mxu0 %v9266_v34  ;;  %v4775_v21 = vpop.f32.mrf.mxu2 }
  0xb8   :  { %v9649_v27 = vld [vmem:[%s16255_s1 + $0x1760] sm:$0xf]  ;;  %v808_v48 = vperm.slane %v806_v26, 0  ;;  %v10729_v51 = vld [vmem:[%s16255_s1 + $0x154c] sm:$0xf0]  ;;  %5017 = vmatpush.bf16.msrb.mxu1 %v9394_v39 }
  0xb9   :  { %v9249_v36 = vld [vmem:[%s16255_s1 + $0x1440] sm:$0xf]  ;;  %v9650_v50 = vor.u32 %v10797_v32, %v9649_v27  ;;  %v10761_v53 = vld [vmem:[%s16255_s1 + $0x164c] sm:$0xf0]  ;;  %5030 = vmatpush.bf16.msrb.mxu2 %v9522_v40  ;;  %v37_v32 = vld [vmem:[%s16256_s0 + $0x58] sm:$0xff] }
  0xba   :  { %v9377_v47 = vld [vmem:[%s16255_s1 + $0x1540] sm:$0xf]  ;;  %v10793_v55 = vld [vmem:[%s16255_s1 + $0x174c] sm:$0xf0]  ;;  %v9250_v56 = vor.u32 %v10697_v43, %v9249_v36  ;;  %v4750_v63 = vadd.f32 %v4749_v57, %v808_v48  ;;  %v4788_v36 = vpop.f32.mrf.mxu3  ;;  %v10075_v39 = vld [vmem:[%s16255_s1 + $0xe4] sm:$0xf] }
  0xbb   :  { %v9505_v52 = vld [vmem:[%s16255_s1 + $0x1640] sm:$0xf]  ;;  %v9378_v58 = vor.u32 %v10729_v51, %v9377_v47  ;;  %v10693_v61 = vld [vmem:[%s16255_s1 + $0x142c] sm:$0xf0]  ;;  %5043 = vmatpush.bf16.msrb.mxu3 %v9650_v50  ;;  %v6771_v40 = vld [vmem:[%s16255_s1 + $0xf0] sm:$0xf0] }
  0xbc   :  { %v9633_v54 = vld [vmem:[%s16255_s1 + $0x1740] sm:$0xf]  ;;  %v9506_v59 = vor.u32 %v10761_v53, %v9505_v52  ;;  %v10725_v2 = vld [vmem:[%s16255_s1 + $0x152c] sm:$0xf0]  ;;  %v4763_v8 = vadd.f32 %v4762_v0, %v4750_v63  ;;  %5005 = vmatpush.bf16.msrb.mxu0 %v9250_v56  ;;  %v10107_v43 = vld [vmem:[%s16255_s1 + $0x1e4] sm:$0xf]  ;;  %v6774_v63 = vor.u32 %v10075_v39, %v6771_v40  ;;  %v851_v0 = vunpack.c.h.b16 %v37_v32 }
  0xbd   :  { %v9233_v60 = vld [vmem:[%s16255_s1 + $0x1420] sm:$0xf]  ;;  %v9634_v1 = vor.u32 %v10793_v55, %v9633_v54  ;;  %v10757_v4 = vld [vmem:[%s16255_s1 + $0x162c] sm:$0xf0]  ;;  %5018 = vmatpush.bf16.msrb.mxu1 %v9378_v58  ;;  %v6899_v48 = vld [vmem:[%s16255_s1 + $0x1f0] sm:$0xf0]  ;;  %v4751_v54 = vpop.f32.mrf.mxu0 }
  0xbe   :  { %v9361_v62 = vld [vmem:[%s16255_s1 + $0x1520] sm:$0xf]  ;;  %v10789_v6 = vld [vmem:[%s16255_s1 + $0x172c] sm:$0xf0]  ;;  %v9234_v9 = vor.u32 %v10693_v61, %v9233_v60  ;;  %5031 = vmatpush.bf16.msrb.mxu2 %v9506_v59  ;;  %v4776_v34 = vadd.f32 %v4775_v21, %v4763_v8  ;;  %v10139_v50 = vld [vmem:[%s16255_s1 + $0x2e4] sm:$0xf]  ;;  %v850_v59 = vunpack.c.l.b16 %v37_v32  ;;  %v4764_v61 = vpop.f32.mrf.mxu1 }
  0xbf   :  { %v9489_v3 = vld [vmem:[%s16255_s1 + $0x1620] sm:$0xf]  ;;  %v10689_v10 = vld [vmem:[%s16255_s1 + $0x140c] sm:$0xf0]  ;;  %v9362_v13 = vor.u32 %v10725_v2, %v9361_v62  ;;  %5044 = vmatpush.bf16.msrb.mxu3 %v9634_v1  ;;  %v7027_v51 = vld [vmem:[%s16255_s1 + $0x2f0] sm:$0xf0]  ;;  %v6902_v1 = vor.u32 %v10107_v43, %v6899_v48 }
  0xc0   :  { %v9617_v5 = vld [vmem:[%s16255_s1 + $0x1720] sm:$0xf]  ;;  %v10721_v12 = vld [vmem:[%s16255_s1 + $0x150c] sm:$0xf0]  ;;  %v9490_v14 = vor.u32 %v10757_v4, %v9489_v3  ;;  %5006 = vmatpush.bf16.msrb.mxu0 %v9234_v9  ;;  %v12208_v53 = vadd.f32 %v4788_v36, %v4776_v34  ;;  %v10171_v57 = vld [vmem:[%s16255_s1 + $0x3e4] sm:$0xf]  ;;  %v7030_v2 = vor.u32 %v10139_v50, %v7027_v51 }
  0xc1   :  { %v9217_v7 = vld [vmem:[%s16255_s1 + $0x1400] sm:$0xf]  ;;  %v10753_v16 = vld [vmem:[%s16255_s1 + $0x160c] sm:$0xf0]  ;;  %v9618_v24 = vor.u32 %v10789_v6, %v9617_v5  ;;  %5019 = vmatpush.bf16.msrb.mxu1 %v9362_v13  ;;  %v7155_v58 = vld [vmem:[%s16255_s1 + $0x3f0] sm:$0xf0] }
  0xc2   :  { %v9345_v11 = vld [vmem:[%s16255_s1 + $0x1500] sm:$0xf]  ;;  %v36_v17 = vld [vmem:[%s16256_s0 + $0x50] sm:$0xff]  ;;  %v9218_v47 = vor.u32 %v10689_v10, %v9217_v7  ;;  %5032 = vmatpush.bf16.msrb.mxu2 %v9490_v14  ;;  %v10071_v3 = vld [vmem:[%s16255_s1 + $0xc4] sm:$0xf]  ;;  %v7158_v6 = vor.u32 %v10171_v57, %v7155_v58  ;;  %v4790_v21 = vpop.f32.mrf.mxu3 }
  0xc3   :  { %v9473_v15 = vld [vmem:[%s16255_s1 + $0x1600] sm:$0xf]  ;;  %v10785_v27 = vld [vmem:[%s16255_s1 + $0x170c] sm:$0xf0]  ;;  %v848_v52 = vunpack.c.l.b16 %v36_v17  ;;  %v9346_v55 = vor.u32 %v10721_v12, %v9345_v11  ;;  %v849_v60 = vunpack.c.h.b16 %v36_v17  ;;  %5045 = vmatpush.bf16.msrb.mxu3 %v9618_v24  ;;  %v6755_v4 = vld [vmem:[%s16255_s1 + $0xd0] sm:$0xf0]  ;;  %v12236_v11 = vpack.c.b16 %v850_v59, %v850_v59 }
  0xc4   :  { %v9601_v26 = vld [vmem:[%s16255_s1 + $0x1700] sm:$0xf]  ;;  %v9474_v56 = vor.u32 %v10753_v16, %v9473_v15  ;;  %v10103_v5 = vld [vmem:[%s16255_s1 + $0x1c4] sm:$0xf]  ;;  %5007 = vmatpush.bf16.msrb.mxu0 %v9218_v47  ;;  %v6883_v8 = vld [vmem:[%s16255_s1 + $0x1d0] sm:$0xf0]  ;;  %v4777_v15 = vpop.f32.mrf.mxu2  ;;  %v12246_v16 = vpack.c.b16 %v851_v0, %v851_v0  ;;  %v6758_v17 = vor.u32 %v10071_v3, %v6755_v4 }
  0xc5   :  { %v9602_v62 = vor.u32 %v10785_v27, %v9601_v26  ;;  %v12225_v7 = vpack.c.b16 %v848_v52, %v848_v52  ;;  %v10135_v9 = vld [vmem:[%s16255_s1 + $0x2c4] sm:$0xf]  ;;  %v7011_v10 = vld [vmem:[%s16255_s1 + $0x2d0] sm:$0xf0]  ;;  %5020 = vmatpush.bf16.msrb.mxu1 %v9346_v55  ;;  %v12238_v12 = vpack.c.b16 %v849_v60, %v849_v60  ;;  %v6886_v24 = vor.u32 %v10103_v5, %v6883_v8  ;;  %v4801_v0 = vpop.f32.mrf.mxu0 }
  0xc6   :  { %5033 = vmatpush.bf16.msrb.mxu2 %v9474_v56  ;;  %v10167_v13 = vld [vmem:[%s16255_s1 + $0x3c4] sm:$0xf]  ;;  %v7139_v14 = vld [vmem:[%s16255_s1 + $0x3d0] sm:$0xf0]  ;;  %v7014_v26 = vor.u32 %v10135_v9, %v7011_v10  ;;  %v4814_v8 = vpop.f32.mrf.mxu1 }
  0xc7   :  { %5046 = vmatpush.bf16.msrb.mxu3 %v9602_v62  ;;  %v10067_v27 = vld [vmem:[%s16255_s1 + $0xa4] sm:$0xf]  ;;  %v6739_v32 = vld [vmem:[%s16255_s1 + $0xb0] sm:$0xf0]  ;;  %5008 = vmatmul.bf16.vlgmr.msrb.gmra.mxu0 %v12225_v7  ;;  %v7142_v36 = vor.u32 %v10167_v13, %v7139_v14 }
  0xc8   :  { %5052 = vmatpush.bf16.msra.mxu0 %v6774_v63  ;;  %v10099_v34 = vld [vmem:[%s16255_s1 + $0x1a4] sm:$0xf]  ;;  %v6867_v39 = vld [vmem:[%s16255_s1 + $0x1b0] sm:$0xf0]  ;;  %5021 = vmatmul.bf16.vlgmr.msrb.gmra.mxu1 %v12238_v12  ;;  %v6742_v50 = vor.u32 %v10067_v27, %v6739_v32 }
  0xc9   :  { %5065 = vmatpush.bf16.msra.mxu1 %v6902_v1  ;;  %v10131_v40 = vld [vmem:[%s16255_s1 + $0x2a4] sm:$0xf]  ;;  %v6995_v43 = vld [vmem:[%s16255_s1 + $0x2b0] sm:$0xf0]  ;;  %5034 = vmatmul.bf16.vlgmr.msrb.gmra.mxu2 %v12236_v11  ;;  %v6870_v51 = vor.u32 %v10099_v34, %v6867_v39 }
  0xca   :  { %5078 = vmatpush.bf16.msra.mxu2 %v7030_v2  ;;  %v10163_v47 = vld [vmem:[%s16255_s1 + $0x3a4] sm:$0xf]  ;;  %v7123_v48 = vld [vmem:[%s16255_s1 + $0x3b0] sm:$0xf0]  ;;  %5047 = vmatmul.bf16.vlgmr.msrb.gmra.mxu3 %v12246_v16  ;;  %v6998_v52 = vor.u32 %v10131_v40, %v6995_v43 }
  0xcb   :  { %5091 = vmatpush.bf16.msra.mxu3 %v7158_v6  ;;  %v10063_v54 = vld [vmem:[%s16255_s1 + $0x84] sm:$0xf]  ;;  %v6723_v55 = vld [vmem:[%s16255_s1 + $0x90] sm:$0xf0]  ;;  %v7126_v57 = vor.u32 %v10163_v47, %v7123_v48  ;;  %v4802_v6 = vadd.f32 %v4801_v0, %v12208_v53 }
  0xcc   :  { %5053 = vmatpush.bf16.msra.mxu0 %v6758_v17  ;;  %v10095_v56 = vld [vmem:[%s16255_s1 + $0x184] sm:$0xf]  ;;  %v6851_v58 = vld [vmem:[%s16255_s1 + $0x190] sm:$0xf0]  ;;  %v6726_v63 = vor.u32 %v10063_v54, %v6723_v55 }
  0xcd   :  { %5066 = vmatpush.bf16.msra.mxu1 %v6886_v24  ;;  %v10127_v59 = vld [vmem:[%s16255_s1 + $0x284] sm:$0xf]  ;;  %v6979_v60 = vld [vmem:[%s16255_s1 + $0x290] sm:$0xf0]  ;;  %v6854_v1 = vor.u32 %v10095_v56, %v6851_v58  ;;  %v4815_v17 = vadd.f32 %v4814_v8, %v4802_v6  ;;  %v4803_v56 = vpop.f32.mrf.mxu0 }
  0xce   :  { %5079 = vmatpush.bf16.msra.mxu2 %v7014_v26  ;;  %v10159_v61 = vld [vmem:[%s16255_s1 + $0x384] sm:$0xf]  ;;  %v7107_v62 = vld [vmem:[%s16255_s1 + $0x390] sm:$0xf0]  ;;  %v6982_v2 = vor.u32 %v10127_v59, %v6979_v60 }
  0xcf   :  { %5092 = vmatpush.bf16.msra.mxu3 %v7142_v36  ;;  %v10059_v3 = vld [vmem:[%s16255_s1 + $0x64] sm:$0xf]  ;;  %v6707_v4 = vld [vmem:[%s16255_s1 + $0x70] sm:$0xf0]  ;;  %v7110_v9 = vor.u32 %v10159_v61, %v7107_v62  ;;  %v4827_v36 = vpop.f32.mrf.mxu2  ;;  %v4816_v62 = vpop.f32.mrf.mxu1 }
  0xd0   :  { %5054 = vmatpush.bf16.msra.mxu0 %v6742_v50  ;;  %v10091_v5 = vld [vmem:[%s16255_s1 + $0x164] sm:$0xf]  ;;  %v6835_v10 = vld [vmem:[%s16255_s1 + $0x170] sm:$0xf0]  ;;  %v6710_v21 = vor.u32 %v10059_v3, %v6707_v4  ;;  %v4828_v48 = vadd.f32 %v4827_v36, %v4815_v17  ;;  %v4840_v50 = vpop.f32.mrf.mxu3 }
  0xd1   :  { %5067 = vmatpush.bf16.msra.mxu1 %v6870_v51  ;;  %v10123_v13 = vld [vmem:[%s16255_s1 + $0x264] sm:$0xf]  ;;  %v6963_v14 = vld [vmem:[%s16255_s1 + $0x270] sm:$0xf0]  ;;  %v6838_v24 = vor.u32 %v10091_v5, %v6835_v10 }
  0xd2   :  { %5080 = vmatpush.bf16.msra.mxu2 %v6998_v52  ;;  %v10155_v15 = vld [vmem:[%s16255_s1 + $0x364] sm:$0xf]  ;;  %v7091_v53 = vld [vmem:[%s16255_s1 + $0x370] sm:$0xf0]  ;;  %v6966_v26 = vor.u32 %v10123_v13, %v6963_v14  ;;  %v12349_v55 = vadd.f32 %v4840_v50, %v4828_v48 }
  0xd3   :  { %5093 = vmatpush.bf16.msra.mxu3 %v7126_v57  ;;  %v10055_v27 = vld [vmem:[%s16255_s1 + $0x44] sm:$0xf]  ;;  %v6691_v32 = vld [vmem:[%s16255_s1 + $0x50] sm:$0xf0]  ;;  %v7094_v39 = vor.u32 %v10155_v15, %v7091_v53 }
  0xd4   :  { %5055 = vmatpush.bf16.msra.mxu0 %v6726_v63  ;;  %v10087_v34 = vld [vmem:[%s16255_s1 + $0x144] sm:$0xf]  ;;  %v6819_v40 = vld [vmem:[%s16255_s1 + $0x150] sm:$0xf0]  ;;  %v6694_v54 = vor.u32 %v10055_v27, %v6691_v32 }
  0xd5   :  { %5068 = vmatpush.bf16.msra.mxu1 %v6854_v1  ;;  %v10119_v43 = vld [vmem:[%s16255_s1 + $0x244] sm:$0xf]  ;;  %v6947_v47 = vld [vmem:[%s16255_s1 + $0x250] sm:$0xf0]  ;;  %v6822_v57 = vor.u32 %v10087_v34, %v6819_v40 }
  0xd6   :  { %5081 = vmatpush.bf16.msra.mxu2 %v6982_v2  ;;  %v10151_v51 = vld [vmem:[%s16255_s1 + $0x344] sm:$0xf]  ;;  %v7075_v52 = vld [vmem:[%s16255_s1 + $0x350] sm:$0xf0]  ;;  %v6950_v58 = vor.u32 %v10119_v43, %v6947_v47 }
  0xd7   :  { %5094 = vmatpush.bf16.msra.mxu3 %v7110_v9  ;;  %v10051_v59 = vld [vmem:[%s16255_s1 + $0x24] sm:$0xf]  ;;  %v6675_v60 = vld [vmem:[%s16255_s1 + $0x30] sm:$0xf0]  ;;  %v7078_v63 = vor.u32 %v10151_v51, %v7075_v52  ;;  %v4829_v53 = vpop.f32.mrf.mxu2 }
  0xd8   :  { %5056 = vmatpush.bf16.msra.mxu0 %v6710_v21  ;;  %v10083_v61 = vld [vmem:[%s16255_s1 + $0x124] sm:$0xf]  ;;  %v6803_v0 = vld [vmem:[%s16255_s1 + $0x130] sm:$0xf0]  ;;  %v6678_v5 = vor.u32 %v10051_v59, %v6675_v60  ;;  %v4842_v27 = vpop.f32.mrf.mxu3 }
  0xd9   :  { %5069 = vmatpush.bf16.msra.mxu1 %v6838_v24  ;;  %v10115_v1 = vld [vmem:[%s16255_s1 + $0x224] sm:$0xf]  ;;  %v6931_v2 = vld [vmem:[%s16255_s1 + $0x230] sm:$0xf0]  ;;  %v6806_v9 = vor.u32 %v10083_v61, %v6803_v0 }
  0xda   :  { %5082 = vmatpush.bf16.msra.mxu2 %v6966_v26  ;;  %v10147_v3 = vld [vmem:[%s16255_s1 + $0x324] sm:$0xf]  ;;  %v7059_v4 = vld [vmem:[%s16255_s1 + $0x330] sm:$0xf0]  ;;  %v6934_v10 = vor.u32 %v10115_v1, %v6931_v2 }
  0xdb   :  { %5095 = vmatpush.bf16.msra.mxu3 %v7094_v39  ;;  %v10047_v6 = vld [vmem:[%s16255_s1 + $0x4] sm:$0xf]  ;;  %v6659_v8 = vld [vmem:[%s16255_s1 + $0x10] sm:$0xf0]  ;;  %v7062_v17 = vor.u32 %v10147_v3, %v7059_v4 }
  0xdc   :  { %5057 = vmatpush.bf16.msra.mxu0 %v6694_v54  ;;  %v10079_v13 = vld [vmem:[%s16255_s1 + $0x104] sm:$0xf]  ;;  %v6787_v14 = vld [vmem:[%s16255_s1 + $0x110] sm:$0xf0]  ;;  %v6662_v39 = vor.u32 %v10047_v6, %v6659_v8 }
  0xdd   :  { %5070 = vmatpush.bf16.msra.mxu1 %v6822_v57  ;;  %v10111_v15 = vld [vmem:[%s16255_s1 + $0x204] sm:$0xf]  ;;  %v6915_v21 = vld [vmem:[%s16255_s1 + $0x210] sm:$0xf0]  ;;  %v6790_v48 = vor.u32 %v10079_v13, %v6787_v14 }
  0xde   :  { %5083 = vmatpush.bf16.msra.mxu2 %v6950_v58  ;;  %v10143_v24 = vld [vmem:[%s16255_s1 + $0x304] sm:$0xf]  ;;  %v7043_v26 = vld [vmem:[%s16255_s1 + $0x310] sm:$0xf0]  ;;  %v6918_v50 = vor.u32 %v10111_v15, %v6915_v21 }
  0xdf   :  { %5096 = vmatpush.bf16.msra.mxu3 %v7078_v63  ;;  %v10203_v32 = vld [vmem:[%s16255_s1 + $0x4e4] sm:$0xf]  ;;  %v7283_v34 = vld [vmem:[%s16255_s1 + $0x4f0] sm:$0xf0]  ;;  %v7046_v54 = vor.u32 %v10143_v24, %v7043_v26 }
  0xe0   :  { %v10235_v36 = vld [vmem:[%s16255_s1 + $0x5e4] sm:$0xf]  ;;  %5058 = vmatpush.bf16.msra.mxu0 %v6678_v5  ;;  %v7411_v40 = vld [vmem:[%s16255_s1 + $0x5f0] sm:$0xf0]  ;;  %v7286_v56 = vor.u32 %v10203_v32, %v7283_v34 }
  0xe1   :  { %v10267_v43 = vld [vmem:[%s16255_s1 + $0x6e4] sm:$0xf]  ;;  %v7539_v47 = vld [vmem:[%s16255_s1 + $0x6f0] sm:$0xf0]  ;;  %5071 = vmatpush.bf16.msra.mxu1 %v6806_v9  ;;  %v7414_v57 = vor.u32 %v10235_v36, %v7411_v40 }
  0xe2   :  { %5084 = vmatpush.bf16.msra.mxu2 %v6934_v10  ;;  %v10299_v51 = vld [vmem:[%s16255_s1 + $0x7e4] sm:$0xf]  ;;  %v7667_v52 = vld [vmem:[%s16255_s1 + $0x7f0] sm:$0xf0]  ;;  %v7542_v58 = vor.u32 %v10267_v43, %v7539_v47 }
  0xe3   :  { %5097 = vmatpush.bf16.msra.mxu3 %v7062_v17  ;;  %v10199_v59 = vld [vmem:[%s16255_s1 + $0x4c4] sm:$0xf]  ;;  %v7267_v60 = vld [vmem:[%s16255_s1 + $0x4d0] sm:$0xf0]  ;;  %v7670_v62 = vor.u32 %v10299_v51, %v7667_v52 }
  0xe4   :  { %v10231_v61 = vld [vmem:[%s16255_s1 + $0x5c4] sm:$0xf]  ;;  %5059 = vmatpush.bf16.msra.mxu0 %v6662_v39  ;;  %v7395_v63 = vld [vmem:[%s16255_s1 + $0x5d0] sm:$0xf0]  ;;  %v7270_v4 = vor.u32 %v10199_v59, %v7267_v60 }
  0xe5   :  { %v10263_v0 = vld [vmem:[%s16255_s1 + $0x6c4] sm:$0xf]  ;;  %v7523_v1 = vld [vmem:[%s16255_s1 + $0x6d0] sm:$0xf0]  ;;  %5072 = vmatpush.bf16.msra.mxu1 %v6790_v48  ;;  %v7398_v5 = vor.u32 %v10231_v61, %v7395_v63  ;;  %v4853_v48 = vpop.f32.mrf.mxu0 }
  0xe6   :  { %5085 = vmatpush.bf16.msra.mxu2 %v6918_v50  ;;  %v10295_v2 = vld [vmem:[%s16255_s1 + $0x7c4] sm:$0xf]  ;;  %v7651_v3 = vld [vmem:[%s16255_s1 + $0x7d0] sm:$0xf0]  ;;  %v7526_v6 = vor.u32 %v10263_v0, %v7523_v1  ;;  %v4854_v52 = vadd.f32 %v4853_v48, %v12349_v55 }
  0xe7   :  { %5098 = vmatpush.bf16.msra.mxu3 %v7046_v54  ;;  %v10195_v8 = vld [vmem:[%s16255_s1 + $0x4a4] sm:$0xf]  ;;  %v7251_v9 = vld [vmem:[%s16255_s1 + $0x4b0] sm:$0xf0]  ;;  %v7654_v13 = vor.u32 %v10295_v2, %v7651_v3  ;;  %5060 = vmatmul.bf16.vlgmr.msra.gmra.mxu0 %v11235_v19 }
  0xe8   :  { %5104 = vmatpush.bf16.msrb.mxu0 %v7286_v56  ;;  %v10227_v10 = vld [vmem:[%s16255_s1 + $0x5a4] sm:$0xf]  ;;  %v7379_v14 = vld [vmem:[%s16255_s1 + $0x5b0] sm:$0xf0]  ;;  %v7254_v24 = vor.u32 %v10195_v8, %v7251_v9  ;;  %5073 = vmatmul.bf16.vlgmr.msra.gmra.mxu1 %v11239_v22  ;;  %v4866_v56 = vpop.f32.mrf.mxu1 }
  0xe9   :  { %5117 = vmatpush.bf16.msrb.mxu1 %v7414_v57  ;;  %v10259_v15 = vld [vmem:[%s16255_s1 + $0x6a4] sm:$0xf]  ;;  %v7507_v53 = vld [vmem:[%s16255_s1 + $0x6b0] sm:$0xf0]  ;;  %5086 = vmatmul.bf16.vlgmr.msra.gmra.mxu2 %v11233_v18  ;;  %v7382_v26 = vor.u32 %v10227_v10, %v7379_v14  ;;  %v4879_v14 = vpop.f32.mrf.mxu2 }
  0xea   :  { %5130 = vmatpush.bf16.msrb.mxu2 %v7542_v58  ;;  %v10291_v17 = vld [vmem:[%s16255_s1 + $0x7a4] sm:$0xf]  ;;  %v7635_v21 = vld [vmem:[%s16255_s1 + $0x7b0] sm:$0xf0]  ;;  %5099 = vmatmul.bf16.vlgmr.msra.gmra.mxu3 %v11237_v20  ;;  %v7510_v27 = vor.u32 %v10259_v15, %v7507_v53 }
  0xeb   :  { %5143 = vmatpush.bf16.msrb.mxu3 %v7670_v62  ;;  %v10191_v32 = vld [vmem:[%s16255_s1 + $0x484] sm:$0xf]  ;;  %v7235_v34 = vld [vmem:[%s16255_s1 + $0x490] sm:$0xf0]  ;;  %v7638_v39 = vor.u32 %v10291_v17, %v7635_v21  ;;  %v4867_v62 = vadd.f32 %v4866_v56, %v4854_v52 }
  0xec   :  { %5105 = vmatpush.bf16.msrb.mxu0 %v7270_v4  ;;  %v10223_v36 = vld [vmem:[%s16255_s1 + $0x584] sm:$0xf]  ;;  %v7363_v40 = vld [vmem:[%s16255_s1 + $0x590] sm:$0xf0]  ;;  %v7238_v54 = vor.u32 %v10191_v32, %v7235_v34 }
  0xed   :  { %5118 = vmatpush.bf16.msrb.mxu1 %v7398_v5  ;;  %v10255_v43 = vld [vmem:[%s16255_s1 + $0x684] sm:$0xf]  ;;  %v7491_v47 = vld [vmem:[%s16255_s1 + $0x690] sm:$0xf0]  ;;  %v7366_v57 = vor.u32 %v10223_v36, %v7363_v40  ;;  %v4880_v21 = vadd.f32 %v4879_v14, %v4867_v62  ;;  %v4855_v32 = vpop.f32.mrf.mxu0 }
  0xee   :  { %5131 = vmatpush.bf16.msrb.mxu2 %v7526_v6  ;;  %v10287_v50 = vld [vmem:[%s16255_s1 + $0x784] sm:$0xf]  ;;  %v7619_v51 = vld [vmem:[%s16255_s1 + $0x790] sm:$0xf0]  ;;  %v7494_v58 = vor.u32 %v10255_v43, %v7491_v47 }
  0xef   :  { %5144 = vmatpush.bf16.msrb.mxu3 %v7654_v13  ;;  %v10187_v59 = vld [vmem:[%s16255_s1 + $0x464] sm:$0xf]  ;;  %v7219_v60 = vld [vmem:[%s16255_s1 + $0x470] sm:$0xf0]  ;;  %v7622_v55 = vor.u32 %v10287_v50, %v7619_v51 }
  0xf0   :  { %5106 = vmatpush.bf16.msrb.mxu0 %v7254_v24  ;;  %v10219_v61 = vld [vmem:[%s16255_s1 + $0x564] sm:$0xf]  ;;  %v7347_v63 = vld [vmem:[%s16255_s1 + $0x570] sm:$0xf0]  ;;  %v7222_v4 = vor.u32 %v10187_v59, %v7219_v60  ;;  %v4892_v24 = vpop.f32.mrf.mxu3  ;;  %v4868_v36 = vpop.f32.mrf.mxu1 }
  0xf1   :  { %5119 = vmatpush.bf16.msrb.mxu1 %v7382_v26  ;;  %v10251_v0 = vld [vmem:[%s16255_s1 + $0x664] sm:$0xf]  ;;  %v7475_v1 = vld [vmem:[%s16255_s1 + $0x670] sm:$0xf0]  ;;  %v7350_v5 = vor.u32 %v10219_v61, %v7347_v63 }
  0xf2   :  { %5132 = vmatpush.bf16.msrb.mxu2 %v7510_v27  ;;  %v10283_v2 = vld [vmem:[%s16255_s1 + $0x764] sm:$0xf]  ;;  %v7603_v3 = vld [vmem:[%s16255_s1 + $0x770] sm:$0xf0]  ;;  %v7478_v6 = vor.u32 %v10251_v0, %v7475_v1 }
  0xf3   :  { %5145 = vmatpush.bf16.msrb.mxu3 %v7638_v39  ;;  %v10183_v8 = vld [vmem:[%s16255_s1 + $0x444] sm:$0xf]  ;;  %v7203_v9 = vld [vmem:[%s16255_s1 + $0x450] sm:$0xf0]  ;;  %v7606_v13 = vor.u32 %v10283_v2, %v7603_v3  ;;  %v12548_v39 = vadd.f32 %v4892_v24, %v4880_v21 }
  0xf4   :  { %5107 = vmatpush.bf16.msrb.mxu0 %v7238_v54  ;;  %v10215_v10 = vld [vmem:[%s16255_s1 + $0x544] sm:$0xf]  ;;  %v7331_v15 = vld [vmem:[%s16255_s1 + $0x550] sm:$0xf0]  ;;  %v7206_v34 = vor.u32 %v10183_v8, %v7203_v9 }
  0xf5   :  { %5120 = vmatpush.bf16.msrb.mxu1 %v7366_v57  ;;  %v10247_v53 = vld [vmem:[%s16255_s1 + $0x644] sm:$0xf]  ;;  %v7459_v17 = vld [vmem:[%s16255_s1 + $0x650] sm:$0xf0]  ;;  %v7334_v40 = vor.u32 %v10215_v10, %v7331_v15 }
  0xf6   :  { %5133 = vmatpush.bf16.msrb.mxu2 %v7494_v58  ;;  %v10279_v26 = vld [vmem:[%s16255_s1 + $0x744] sm:$0xf]  ;;  %v7587_v27 = vld [vmem:[%s16255_s1 + $0x750] sm:$0xf0]  ;;  %v7462_v43 = vor.u32 %v10247_v53, %v7459_v17 }
  0xf7   :  { %5146 = vmatpush.bf16.msrb.mxu3 %v7622_v55  ;;  %v10179_v47 = vld [vmem:[%s16255_s1 + $0x424] sm:$0xf]  ;;  %v7187_v48 = vld [vmem:[%s16255_s1 + $0x430] sm:$0xf0]  ;;  %v7590_v51 = vor.u32 %v10279_v26, %v7587_v27 }
  0xf8   :  { %5108 = vmatpush.bf16.msrb.mxu0 %v7222_v4  ;;  %v10211_v50 = vld [vmem:[%s16255_s1 + $0x524] sm:$0xf]  ;;  %v7315_v52 = vld [vmem:[%s16255_s1 + $0x530] sm:$0xf0]  ;;  %v7190_v59 = vor.u32 %v10179_v47, %v7187_v48 }
  0xf9   :  { %5121 = vmatpush.bf16.msrb.mxu1 %v7350_v5  ;;  %v10243_v54 = vld [vmem:[%s16255_s1 + $0x624] sm:$0xf]  ;;  %v7443_v56 = vld [vmem:[%s16255_s1 + $0x630] sm:$0xf0]  ;;  %v7318_v55 = vor.u32 %v10211_v50, %v7315_v52 }
  0xfa   :  { %5134 = vmatpush.bf16.msrb.mxu2 %v7478_v6  ;;  %v10275_v57 = vld [vmem:[%s16255_s1 + $0x724] sm:$0xf]  ;;  %v7571_v58 = vld [vmem:[%s16255_s1 + $0x730] sm:$0xf0]  ;;  %v7446_v62 = vor.u32 %v10243_v54, %v7443_v56  ;;  %v4881_v6 = vpop.f32.mrf.mxu2 }
  0xfb   :  { %5147 = vmatpush.bf16.msrb.mxu3 %v7606_v13  ;;  %v10175_v60 = vld [vmem:[%s16255_s1 + $0x404] sm:$0xf]  ;;  %v7171_v61 = vld [vmem:[%s16255_s1 + $0x410] sm:$0xf0]  ;;  %v7574_v2 = vor.u32 %v10275_v57, %v7571_v58  ;;  %v4894_v13 = vpop.f32.mrf.mxu3 }
  0xfc   :  { %5109 = vmatpush.bf16.msrb.mxu0 %v7206_v34  ;;  %v10207_v63 = vld [vmem:[%s16255_s1 + $0x504] sm:$0xf]  ;;  %v7299_v0 = vld [vmem:[%s16255_s1 + $0x510] sm:$0xf0]  ;;  %v7174_v14 = vor.u32 %v10175_v60, %v7171_v61 }
  0xfd   :  { %5122 = vmatpush.bf16.msrb.mxu1 %v7334_v40  ;;  %v10239_v1 = vld [vmem:[%s16255_s1 + $0x604] sm:$0xf]  ;;  %v7427_v3 = vld [vmem:[%s16255_s1 + $0x610] sm:$0xf0]  ;;  %v7302_v21 = vor.u32 %v10207_v63, %v7299_v0 }
  0xfe   :  { %5135 = vmatpush.bf16.msrb.mxu2 %v7462_v43  ;;  %v10271_v4 = vld [vmem:[%s16255_s1 + $0x704] sm:$0xf]  ;;  %v7555_v5 = vld [vmem:[%s16255_s1 + $0x710] sm:$0xf0]  ;;  %v7430_v24 = vor.u32 %v10239_v1, %v7427_v3 }
  0xff   :  { %5148 = vmatpush.bf16.msrb.mxu3 %v7590_v51  ;;  %v10331_v8 = vld [vmem:[%s16255_s1 + $0x8e4] sm:$0xf]  ;;  %v7795_v9 = vld [vmem:[%s16255_s1 + $0x8f0] sm:$0xf0]  ;;  %v7558_v32 = vor.u32 %v10271_v4, %v7555_v5 }
 0x100   :  { %v10363_v10 = vld [vmem:[%s16255_s1 + $0x9e4] sm:$0xf]  ;;  %5110 = vmatpush.bf16.msrb.mxu0 %v7190_v59  ;;  %v7923_v15 = vld [vmem:[%s16255_s1 + $0x9f0] sm:$0xf0]  ;;  %v7798_v34 = vor.u32 %v10331_v8, %v7795_v9 }
 0x101   :  { %v10395_v53 = vld [vmem:[%s16255_s1 + $0xae4] sm:$0xf]  ;;  %v8051_v17 = vld [vmem:[%s16255_s1 + $0xaf0] sm:$0xf0]  ;;  %5123 = vmatpush.bf16.msrb.mxu1 %v7318_v55  ;;  %v7926_v36 = vor.u32 %v10363_v10, %v7923_v15 }
 0x102   :  { %5136 = vmatpush.bf16.msrb.mxu2 %v7446_v62  ;;  %v10427_v26 = vld [vmem:[%s16255_s1 + $0xbe4] sm:$0xf]  ;;  %v8179_v27 = vld [vmem:[%s16255_s1 + $0xbf0] sm:$0xf0]  ;;  %v8054_v40 = vor.u32 %v10395_v53, %v8051_v17 }
 0x103   :  { %5149 = vmatpush.bf16.msrb.mxu3 %v7574_v2  ;;  %v10327_v43 = vld [vmem:[%s16255_s1 + $0x8c4] sm:$0xf]  ;;  %v7779_v47 = vld [vmem:[%s16255_s1 + $0x8d0] sm:$0xf0]  ;;  %v8182_v50 = vor.u32 %v10427_v26, %v8179_v27 }
 0x104   :  { %v10359_v48 = vld [vmem:[%s16255_s1 + $0x9c4] sm:$0xf]  ;;  %5111 = vmatpush.bf16.msrb.mxu0 %v7174_v14  ;;  %v7907_v51 = vld [vmem:[%s16255_s1 + $0x9d0] sm:$0xf0]  ;;  %v7782_v58 = vor.u32 %v10327_v43, %v7779_v47 }
 0x105   :  { %v10391_v52 = vld [vmem:[%s16255_s1 + $0xac4] sm:$0xf]  ;;  %v8035_v54 = vld [vmem:[%s16255_s1 + $0xad0] sm:$0xf0]  ;;  %5124 = vmatpush.bf16.msrb.mxu1 %v7302_v21  ;;  %v7910_v59 = vor.u32 %v10359_v48, %v7907_v51  ;;  %v4905_v21 = vpop.f32.mrf.mxu0 }
 0x106   :  { %5137 = vmatpush.bf16.msrb.mxu2 %v7430_v24  ;;  %v10423_v56 = vld [vmem:[%s16255_s1 + $0xbc4] sm:$0xf]  ;;  %v8163_v57 = vld [vmem:[%s16255_s1 + $0xbd0] sm:$0xf0]  ;;  %v8038_v60 = vor.u32 %v10391_v52, %v8035_v54  ;;  %v4906_v27 = vadd.f32 %v4905_v21, %v12548_v39 }
 0x107   :  { %5150 = vmatpush.bf16.msrb.mxu3 %v7558_v32  ;;  %v10323_v61 = vld [vmem:[%s16255_s1 + $0x8a4] sm:$0xf]  ;;  %v7763_v55 = vld [vmem:[%s16255_s1 + $0x8b0] sm:$0xf0]  ;;  %v8166_v63 = vor.u32 %v10423_v56, %v8163_v57  ;;  %5112 = vmatmul.bf16.vlgmr.msrb.gmra.mxu0 %v11397_v41 }
 0x108   :  { %5156 = vmatpush.bf16.msra.mxu0 %v7798_v34  ;;  %v10355_v62 = vld [vmem:[%s16255_s1 + $0x9a4] sm:$0xf]  ;;  %v7891_v0 = vld [vmem:[%s16255_s1 + $0x9b0] sm:$0xf0]  ;;  %v7766_v5 = vor.u32 %v10323_v61, %v7763_v55  ;;  %5125 = vmatmul.bf16.vlgmr.msrb.gmra.mxu1 %v11401_v44  ;;  %v4918_v34 = vpop.f32.mrf.mxu1 }
 0x109   :  { %5169 = vmatpush.bf16.msra.mxu1 %v7926_v36  ;;  %5138 = vmatmul.bf16.vlgmr.msrb.gmra.mxu2 %v11389_v38  ;;  %v10387_v1 = vld [vmem:[%s16255_s1 + $0xaa4] sm:$0xf]  ;;  %v8019_v2 = vld [vmem:[%s16255_s1 + $0xab0] sm:$0xf0]  ;;  %v7894_v6 = vor.u32 %v10355_v62, %v7891_v0 }
 0x10a   :  { %5182 = vmatpush.bf16.msra.mxu2 %v8054_v40  ;;  %v10419_v3 = vld [vmem:[%s16255_s1 + $0xba4] sm:$0xf]  ;;  %v8147_v4 = vld [vmem:[%s16255_s1 + $0xbb0] sm:$0xf0]  ;;  %5151 = vmatmul.bf16.vlgmr.msrb.gmra.mxu3 %v11399_v42  ;;  %v8022_v8 = vor.u32 %v10387_v1, %v8019_v2 }
 0x10b   :  { %5195 = vmatpush.bf16.msra.mxu3 %v8182_v50  ;;  %v10319_v9 = vld [vmem:[%s16255_s1 + $0x884] sm:$0xf]  ;;  %v7747_v10 = vld [vmem:[%s16255_s1 + $0x890] sm:$0xf0]  ;;  %v8150_v14 = vor.u32 %v10419_v3, %v8147_v4  ;;  %v4919_v50 = vadd.f32 %v4918_v34, %v4906_v27 }
 0x10c   :  { %5157 = vmatpush.bf16.msra.mxu0 %v7782_v58  ;;  %v10351_v13 = vld [vmem:[%s16255_s1 + $0x984] sm:$0xf]  ;;  %v7875_v15 = vld [vmem:[%s16255_s1 + $0x990] sm:$0xf0]  ;;  %v7750_v32 = vor.u32 %v10319_v9, %v7747_v10  ;;  %v4931_v0 = vpop.f32.mrf.mxu2 }
 0x10d   :  { %5170 = vmatpush.bf16.msra.mxu1 %v7910_v59  ;;  %v10383_v53 = vld [vmem:[%s16255_s1 + $0xa84] sm:$0xf]  ;;  %v8003_v17 = vld [vmem:[%s16255_s1 + $0xa90] sm:$0xf0]  ;;  %v7878_v36 = vor.u32 %v10351_v13, %v7875_v15  ;;  %v4932_v4 = vadd.f32 %v4931_v0, %v4919_v50  ;;  %v4907_v9 = vpop.f32.mrf.mxu0 }
 0x10e   :  { %5183 = vmatpush.bf16.msra.mxu2 %v8038_v60  ;;  %v10415_v24 = vld [vmem:[%s16255_s1 + $0xb84] sm:$0xf]  ;;  %v8131_v26 = vld [vmem:[%s16255_s1 + $0xb90] sm:$0xf0]  ;;  %v8006_v40 = vor.u32 %v10383_v53, %v8003_v17 }
 0x10f   :  { %5196 = vmatpush.bf16.msra.mxu3 %v8166_v63  ;;  %v10315_v43 = vld [vmem:[%s16255_s1 + $0x864] sm:$0xf]  ;;  %v7731_v47 = vld [vmem:[%s16255_s1 + $0x870] sm:$0xf0]  ;;  %v8134_v39 = vor.u32 %v10415_v24, %v8131_v26 }
 0x110   :  { %5158 = vmatpush.bf16.msra.mxu0 %v7766_v5  ;;  %v10347_v48 = vld [vmem:[%s16255_s1 + $0x964] sm:$0xf]  ;;  %v7859_v51 = vld [vmem:[%s16255_s1 + $0x970] sm:$0xf0]  ;;  %v7734_v58 = vor.u32 %v10315_v43, %v7731_v47  ;;  %v4944_v5 = vpop.f32.mrf.mxu3  ;;  %v4920_v13 = vpop.f32.mrf.mxu1 }
 0x111   :  { %5171 = vmatpush.bf16.msra.mxu1 %v7894_v6  ;;  %v10379_v52 = vld [vmem:[%s16255_s1 + $0xa64] sm:$0xf]  ;;  %v7987_v54 = vld [vmem:[%s16255_s1 + $0xa70] sm:$0xf0]  ;;  %v7862_v59 = vor.u32 %v10347_v48, %v7859_v51 }
 0x112   :  { %5184 = vmatpush.bf16.msra.mxu2 %v8022_v8  ;;  %v10411_v56 = vld [vmem:[%s16255_s1 + $0xb64] sm:$0xf]  ;;  %v8115_v57 = vld [vmem:[%s16255_s1 + $0xb70] sm:$0xf0]  ;;  %v7990_v60 = vor.u32 %v10379_v52, %v7987_v54 }
 0x113   :  { %5197 = vmatpush.bf16.msra.mxu3 %v8150_v14  ;;  %v10311_v61 = vld [vmem:[%s16255_s1 + $0x844] sm:$0xf]  ;;  %v7715_v55 = vld [vmem:[%s16255_s1 + $0x850] sm:$0xf0]  ;;  %v8118_v63 = vor.u32 %v10411_v56, %v8115_v57  ;;  %v12747_v14 = vadd.f32 %v4944_v5, %v4932_v4 }
 0x114   :  { %5159 = vmatpush.bf16.msra.mxu0 %v7750_v32  ;;  %v10343_v62 = vld [vmem:[%s16255_s1 + $0x944] sm:$0xf]  ;;  %v7843_v1 = vld [vmem:[%s16255_s1 + $0x950] sm:$0xf0]  ;;  %v7718_v10 = vor.u32 %v10311_v61, %v7715_v55 }
 0x115   :  { %5172 = vmatpush.bf16.msra.mxu1 %v7878_v36  ;;  %v10375_v2 = vld [vmem:[%s16255_s1 + $0xa44] sm:$0xf]  ;;  %v7971_v3 = vld [vmem:[%s16255_s1 + $0xa50] sm:$0xf0]  ;;  %v7846_v15 = vor.u32 %v10343_v62, %v7843_v1 }
 0x116   :  { %5185 = vmatpush.bf16.msra.mxu2 %v8006_v40  ;;  %v10407_v6 = vld [vmem:[%s16255_s1 + $0xb44] sm:$0xf]  ;;  %v8099_v8 = vld [vmem:[%s16255_s1 + $0xb50] sm:$0xf0]  ;;  %v7974_v53 = vor.u32 %v10375_v2, %v7971_v3 }
 0x117   :  { %5198 = vmatpush.bf16.msra.mxu3 %v8134_v39  ;;  %v10307_v17 = vld [vmem:[%s16255_s1 + $0x824] sm:$0xf]  ;;  %v7699_v21 = vld [vmem:[%s16255_s1 + $0x830] sm:$0xf0]  ;;  %v8102_v26 = vor.u32 %v10407_v6, %v8099_v8 }
 0x118   :  { %5160 = vmatpush.bf16.msra.mxu0 %v7734_v58  ;;  %v10339_v24 = vld [vmem:[%s16255_s1 + $0x924] sm:$0xf]  ;;  %v7827_v27 = vld [vmem:[%s16255_s1 + $0x930] sm:$0xf0]  ;;  %v7702_v43 = vor.u32 %v10307_v17, %v7699_v21 }
 0x119   :  { %5173 = vmatpush.bf16.msra.mxu1 %v7862_v59  ;;  %v10371_v32 = vld [vmem:[%s16255_s1 + $0xa24] sm:$0xf]  ;;  %v7955_v34 = vld [vmem:[%s16255_s1 + $0xa30] sm:$0xf0]  ;;  %v7830_v39 = vor.u32 %v10339_v24, %v7827_v27 }
 0x11a   :  { %5186 = vmatpush.bf16.msra.mxu2 %v7990_v60  ;;  %v10403_v36 = vld [vmem:[%s16255_s1 + $0xb24] sm:$0xf]  ;;  %v8083_v40 = vld [vmem:[%s16255_s1 + $0xb30] sm:$0xf0]  ;;  %v7958_v50 = vor.u32 %v10371_v32, %v7955_v34  ;;  %v4933_v60 = vpop.f32.mrf.mxu2 }
 0x11b   :  { %5199 = vmatpush.bf16.msra.mxu3 %v8118_v63  ;;  %v10303_v47 = vld [vmem:[%s16255_s1 + $0x804] sm:$0xf]  ;;  %v7683_v48 = vld [vmem:[%s16255_s1 + $0x810] sm:$0xf0]  ;;  %v8086_v56 = vor.u32 %v10403_v36, %v8083_v40  ;;  %v4946_v63 = vpop.f32.mrf.mxu3 }
 0x11c   :  { %5161 = vmatpush.bf16.msra.mxu0 %v7718_v10  ;;  %v10335_v51 = vld [vmem:[%s16255_s1 + $0x904] sm:$0xf]  ;;  %v7811_v52 = vld [vmem:[%s16255_s1 + $0x910] sm:$0xf0]  ;;  %v7686_v0 = vor.u32 %v10303_v47, %v7683_v48 }
 0x11d   :  { %5174 = vmatpush.bf16.msra.mxu1 %v7846_v15  ;;  %v10367_v54 = vld [vmem:[%s16255_s1 + $0xa04] sm:$0xf]  ;;  %v7939_v57 = vld [vmem:[%s16255_s1 + $0xa10] sm:$0xf0]  ;;  %v7814_v4 = vor.u32 %v10335_v51, %v7811_v52 }
 0x11e   :  { %5187 = vmatpush.bf16.msra.mxu2 %v7974_v53  ;;  %v10399_v58 = vld [vmem:[%s16255_s1 + $0xb04] sm:$0xf]  ;;  %v8067_v59 = vld [vmem:[%s16255_s1 + $0xb10] sm:$0xf0]  ;;  %v7942_v5 = vor.u32 %v10367_v54, %v7939_v57 }
 0x11f   :  { %5200 = vmatpush.bf16.msra.mxu3 %v8102_v26  ;;  %v10459_v61 = vld [vmem:[%s16255_s1 + $0xce4] sm:$0xf]  ;;  %v8307_v55 = vld [vmem:[%s16255_s1 + $0xcf0] sm:$0xf0]  ;;  %v8070_v9 = vor.u32 %v10399_v58, %v8067_v59 }
 0x120   :  { %v10491_v62 = vld [vmem:[%s16255_s1 + $0xde4] sm:$0xf]  ;;  %5162 = vmatpush.bf16.msra.mxu0 %v7702_v43  ;;  %v8435_v1 = vld [vmem:[%s16255_s1 + $0xdf0] sm:$0xf0]  ;;  %v8310_v10 = vor.u32 %v10459_v61, %v8307_v55 }
 0x121   :  { %v10523_v2 = vld [vmem:[%s16255_s1 + $0xee4] sm:$0xf]  ;;  %v8563_v3 = vld [vmem:[%s16255_s1 + $0xef0] sm:$0xf0]  ;;  %5175 = vmatpush.bf16.msra.mxu1 %v7830_v39  ;;  %v8438_v13 = vor.u32 %v10491_v62, %v8435_v1 }
 0x122   :  { %5188 = vmatpush.bf16.msra.mxu2 %v7958_v50  ;;  %v10555_v6 = vld [vmem:[%s16255_s1 + $0xfe4] sm:$0xf]  ;;  %v8691_v8 = vld [vmem:[%s16255_s1 + $0xff0] sm:$0xf0]  ;;  %v8566_v15 = vor.u32 %v10523_v2, %v8563_v3 }
 0x123   :  { %5201 = vmatpush.bf16.msra.mxu3 %v8086_v56  ;;  %v10455_v53 = vld [vmem:[%s16255_s1 + $0xcc4] sm:$0xf]  ;;  %v8291_v17 = vld [vmem:[%s16255_s1 + $0xcd0] sm:$0xf0]  ;;  %v8694_v24 = vor.u32 %v10555_v6, %v8691_v8 }
 0x124   :  { %v10487_v21 = vld [vmem:[%s16255_s1 + $0xdc4] sm:$0xf]  ;;  %5163 = vmatpush.bf16.msra.mxu0 %v7686_v0  ;;  %v8419_v26 = vld [vmem:[%s16255_s1 + $0xdd0] sm:$0xf0]  ;;  %v8294_v40 = vor.u32 %v10455_v53, %v8291_v17 }
 0x125   :  { %v10519_v27 = vld [vmem:[%s16255_s1 + $0xec4] sm:$0xf]  ;;  %v8547_v32 = vld [vmem:[%s16255_s1 + $0xed0] sm:$0xf0]  ;;  %5176 = vmatpush.bf16.msra.mxu1 %v7814_v4  ;;  %v8422_v43 = vor.u32 %v10487_v21, %v8419_v26  ;;  %v4957_v4 = vpop.f32.mrf.mxu0 }
 0x126   :  { %5189 = vmatpush.bf16.msra.mxu2 %v7942_v5  ;;  %v10551_v34 = vld [vmem:[%s16255_s1 + $0xfc4] sm:$0xf]  ;;  %v8675_v36 = vld [vmem:[%s16255_s1 + $0xfd0] sm:$0xf0]  ;;  %v8550_v47 = vor.u32 %v10519_v27, %v8547_v32  ;;  %v4958_v8 = vadd.f32 %v4957_v4, %v12747_v14 }
 0x127   :  { %5202 = vmatpush.bf16.msra.mxu3 %v8070_v9  ;;  %v10451_v48 = vld [vmem:[%s16255_s1 + $0xca4] sm:$0xf]  ;;  %v8275_v39 = vld [vmem:[%s16255_s1 + $0xcb0] sm:$0xf0]  ;;  %5164 = vmatmul.bf16.vlgmr.msra.gmra.mxu0 %v11590_v25  ;;  %v8678_v51 = vor.u32 %v10551_v34, %v8675_v36 }
 0x128   :  { %5208 = vmatpush.bf16.msrb.mxu0 %v8310_v10  ;;  %v10483_v50 = vld [vmem:[%s16255_s1 + $0xda4] sm:$0xf]  ;;  %v8403_v52 = vld [vmem:[%s16255_s1 + $0xdb0] sm:$0xf0]  ;;  %5177 = vmatmul.bf16.vlgmr.msra.gmra.mxu1 %v11603_v30  ;;  %v8278_v59 = vor.u32 %v10451_v48, %v8275_v39  ;;  %v4970_v10 = vpop.f32.mrf.mxu1 }
 0x129   :  { %5221 = vmatpush.bf16.msrb.mxu1 %v8438_v13  ;;  %v10515_v54 = vld [vmem:[%s16255_s1 + $0xea4] sm:$0xf]  ;;  %v8531_v56 = vld [vmem:[%s16255_s1 + $0xeb0] sm:$0xf0]  ;;  %5190 = vmatmul.bf16.vlgmr.msra.gmra.mxu2 %v11601_v29  ;;  %v8406_v60 = vor.u32 %v10483_v50, %v8403_v52 }
 0x12a   :  { %5234 = vmatpush.bf16.msrb.mxu2 %v8566_v15  ;;  %v10547_v57 = vld [vmem:[%s16255_s1 + $0xfa4] sm:$0xf]  ;;  %v8659_v58 = vld [vmem:[%s16255_s1 + $0xfb0] sm:$0xf0]  ;;  %5203 = vmatmul.bf16.vlgmr.msra.gmra.mxu3 %v11611_v33  ;;  %v8534_v61 = vor.u32 %v10515_v54, %v8531_v56  ;;  %v4983_v52 = vpop.f32.mrf.mxu2 }
 0x12b   :  { %5247 = vmatpush.bf16.msrb.mxu3 %v8694_v24  ;;  %v10447_v55 = vld [vmem:[%s16255_s1 + $0xc84] sm:$0xf]  ;;  %v8259_v62 = vld [vmem:[%s16255_s1 + $0xc90] sm:$0xf0]  ;;  %v8662_v0 = vor.u32 %v10547_v57, %v8659_v58  ;;  %v4971_v24 = vadd.f32 %v4970_v10, %v4958_v8 }
 0x12c   :  { %5209 = vmatpush.bf16.msrb.mxu0 %v8294_v40  ;;  %v10479_v63 = vld [vmem:[%s16255_s1 + $0xd84] sm:$0xf]  ;;  %v8387_v1 = vld [vmem:[%s16255_s1 + $0xd90] sm:$0xf0]  ;;  %v8262_v9 = vor.u32 %v10447_v55, %v8259_v62 }
 0x12d   :  { %5222 = vmatpush.bf16.msrb.mxu1 %v8422_v43  ;;  %v10511_v2 = vld [vmem:[%s16255_s1 + $0xe84] sm:$0xf]  ;;  %v8515_v3 = vld [vmem:[%s16255_s1 + $0xe90] sm:$0xf0]  ;;  %v8390_v13 = vor.u32 %v10479_v63, %v8387_v1  ;;  %v4984_v58 = vadd.f32 %v4983_v52, %v4971_v24  ;;  %v4959_v55 = vpop.f32.mrf.mxu0 }
 0x12e   :  { %5235 = vmatpush.bf16.msrb.mxu2 %v8550_v47  ;;  %v10543_v5 = vld [vmem:[%s16255_s1 + $0xf84] sm:$0xf]  ;;  %v8643_v6 = vld [vmem:[%s16255_s1 + $0xf90] sm:$0xf0]  ;;  %v8518_v15 = vor.u32 %v10511_v2, %v8515_v3 }
 0x12f   :  { %5248 = vmatpush.bf16.msrb.mxu3 %v8678_v51  ;;  %v10443_v53 = vld [vmem:[%s16255_s1 + $0xc64] sm:$0xf]  ;;  %v8243_v17 = vld [vmem:[%s16255_s1 + $0xc70] sm:$0xf0]  ;;  %v8646_v14 = vor.u32 %v10543_v5, %v8643_v6 }
 0x130   :  { %5210 = vmatpush.bf16.msrb.mxu0 %v8278_v59  ;;  %v10475_v21 = vld [vmem:[%s16255_s1 + $0xd64] sm:$0xf]  ;;  %v8371_v26 = vld [vmem:[%s16255_s1 + $0xd70] sm:$0xf0]  ;;  %v8246_v40 = vor.u32 %v10443_v53, %v8243_v17  ;;  %v4996_v59 = vpop.f32.mrf.mxu3  ;;  %v4972_v63 = vpop.f32.mrf.mxu1 }
 0x131   :  { %5223 = vmatpush.bf16.msrb.mxu1 %v8406_v60  ;;  %v10507_v27 = vld [vmem:[%s16255_s1 + $0xe64] sm:$0xf]  ;;  %v8499_v32 = vld [vmem:[%s16255_s1 + $0xe70] sm:$0xf0]  ;;  %v8374_v43 = vor.u32 %v10475_v21, %v8371_v26 }
 0x132   :  { %5236 = vmatpush.bf16.msrb.mxu2 %v8534_v61  ;;  %v10539_v34 = vld [vmem:[%s16255_s1 + $0xf64] sm:$0xf]  ;;  %v8627_v36 = vld [vmem:[%s16255_s1 + $0xf70] sm:$0xf0]  ;;  %v8502_v47 = vor.u32 %v10507_v27, %v8499_v32 }
 0x133   :  { %5249 = vmatpush.bf16.msrb.mxu3 %v8662_v0  ;;  %v10439_v48 = vld [vmem:[%s16255_s1 + $0xc44] sm:$0xf]  ;;  %v8227_v39 = vld [vmem:[%s16255_s1 + $0xc50] sm:$0xf0]  ;;  %v8630_v51 = vor.u32 %v10539_v34, %v8627_v36  ;;  %v12946_v0 = vadd.f32 %v4996_v59, %v4984_v58 }
 0x134   :  { %5211 = vmatpush.bf16.msrb.mxu0 %v8262_v9  ;;  %v10471_v50 = vld [vmem:[%s16255_s1 + $0xd44] sm:$0xf]  ;;  %v8355_v54 = vld [vmem:[%s16255_s1 + $0xd50] sm:$0xf0]  ;;  %v8230_v62 = vor.u32 %v10439_v48, %v8227_v39 }
 0x135   :  { %5224 = vmatpush.bf16.msrb.mxu1 %v8390_v13  ;;  %v10503_v56 = vld [vmem:[%s16255_s1 + $0xe44] sm:$0xf]  ;;  %v8483_v57 = vld [vmem:[%s16255_s1 + $0xe50] sm:$0xf0]  ;;  %v8358_v1 = vor.u32 %v10471_v50, %v8355_v54 }
 0x136   :  { %5237 = vmatpush.bf16.msrb.mxu2 %v8518_v15  ;;  %v10535_v60 = vld [vmem:[%s16255_s1 + $0xf44] sm:$0xf]  ;;  %v8611_v61 = vld [vmem:[%s16255_s1 + $0xf50] sm:$0xf0]  ;;  %v8486_v2 = vor.u32 %v10503_v56, %v8483_v57 }
 0x137   :  { %5250 = vmatpush.bf16.msrb.mxu3 %v8646_v14  ;;  %v10435_v3 = vld [vmem:[%s16255_s1 + $0xc24] sm:$0xf]  ;;  %v8211_v4 = vld [vmem:[%s16255_s1 + $0xc30] sm:$0xf0]  ;;  %v8614_v6 = vor.u32 %v10535_v60, %v8611_v61 }
 0x138   :  { %5212 = vmatpush.bf16.msrb.mxu0 %v8246_v40  ;;  %v10467_v5 = vld [vmem:[%s16255_s1 + $0xd24] sm:$0xf]  ;;  %v8339_v8 = vld [vmem:[%s16255_s1 + $0xd30] sm:$0xf0]  ;;  %v8214_v53 = vor.u32 %v10435_v3, %v8211_v4 }
 0x139   :  { %5225 = vmatpush.bf16.msrb.mxu1 %v8374_v43  ;;  %v10499_v9 = vld [vmem:[%s16255_s1 + $0xe24] sm:$0xf]  ;;  %v8467_v10 = vld [vmem:[%s16255_s1 + $0xe30] sm:$0xf0]  ;;  %v8342_v14 = vor.u32 %v10467_v5, %v8339_v8 }
 0x13a   :  { %5238 = vmatpush.bf16.msrb.mxu2 %v8502_v47  ;;  %v10531_v13 = vld [vmem:[%s16255_s1 + $0xf24] sm:$0xf]  ;;  %v8595_v15 = vld [vmem:[%s16255_s1 + $0xf30] sm:$0xf0]  ;;  %v8470_v24 = vor.u32 %v10499_v9, %v8467_v10  ;;  %v4985_v47 = vpop.f32.mrf.mxu2 }
 0x13b   :  { %5251 = vmatpush.bf16.msrb.mxu3 %v8630_v51  ;;  %v10431_v17 = vld [vmem:[%s16255_s1 + $0xc04] sm:$0xf]  ;;  %v8195_v21 = vld [vmem:[%s16255_s1 + $0xc10] sm:$0xf0]  ;;  %v8598_v34 = vor.u32 %v10531_v13, %v8595_v15  ;;  %v4998_v51 = vpop.f32.mrf.mxu3 }
 0x13c   :  { %5213 = vmatpush.bf16.msrb.mxu0 %v8230_v62  ;;  %v10463_v26 = vld [vmem:[%s16255_s1 + $0xd04] sm:$0xf]  ;;  %v8323_v27 = vld [vmem:[%s16255_s1 + $0xd10] sm:$0xf0]  ;;  %v8198_v52 = vor.u32 %v10431_v17, %v8195_v21 }
 0x13d   :  { %5226 = vmatpush.bf16.msrb.mxu1 %v8358_v1  ;;  %v10495_v32 = vld [vmem:[%s16255_s1 + $0xe04] sm:$0xf]  ;;  %v8451_v36 = vld [vmem:[%s16255_s1 + $0xe10] sm:$0xf0]  ;;  %v8326_v58 = vor.u32 %v10463_v26, %v8323_v27 }
 0x13e   :  { %5239 = vmatpush.bf16.msrb.mxu2 %v8486_v2  ;;  %v10527_v40 = vld [vmem:[%s16255_s1 + $0xf04] sm:$0xf]  ;;  %v8579_v43 = vld [vmem:[%s16255_s1 + $0xf10] sm:$0xf0]  ;;  %v8454_v59 = vor.u32 %v10495_v32, %v8451_v36 }
 0x13f   :  { %5252 = vmatpush.bf16.msrb.mxu3 %v8614_v6  ;;  %v10587_v48 = vld [vmem:[%s16255_s1 + $0x10e4] sm:$0xf]  ;;  %v8819_v39 = vld [vmem:[%s16255_s1 + $0x10f0] sm:$0xf0]  ;;  %v8582_v55 = vor.u32 %v10527_v40, %v8579_v43 }
 0x140   :  { %v10619_v50 = vld [vmem:[%s16255_s1 + $0x11e4] sm:$0xf]  ;;  %5214 = vmatpush.bf16.msrb.mxu0 %v8214_v53  ;;  %v8947_v54 = vld [vmem:[%s16255_s1 + $0x11f0] sm:$0xf0]  ;;  %v8822_v62 = vor.u32 %v10587_v48, %v8819_v39 }
 0x141   :  { %v10651_v56 = vld [vmem:[%s16255_s1 + $0x12e4] sm:$0xf]  ;;  %v9075_v57 = vld [vmem:[%s16255_s1 + $0x12f0] sm:$0xf0]  ;;  %5227 = vmatpush.bf16.msrb.mxu1 %v8342_v14  ;;  %v8950_v63 = vor.u32 %v10619_v50, %v8947_v54 }
 0x142   :  { %5240 = vmatpush.bf16.msrb.mxu2 %v8470_v24  ;;  %v10683_v60 = vld [vmem:[%s16255_s1 + $0x13e4] sm:$0xf]  ;;  %v9203_v61 = vld [vmem:[%s16255_s1 + $0x13f0] sm:$0xf0]  ;;  %v9078_v1 = vor.u32 %v10651_v56, %v9075_v57 }
 0x143   :  { %5253 = vmatpush.bf16.msrb.mxu3 %v8598_v34  ;;  %v10583_v2 = vld [vmem:[%s16255_s1 + $0x10c4] sm:$0xf]  ;;  %v8803_v3 = vld [vmem:[%s16255_s1 + $0x10d0] sm:$0xf0]  ;;  %v9206_v5 = vor.u32 %v10683_v60, %v9203_v61 }
 0x144   :  { %v10615_v4 = vld [vmem:[%s16255_s1 + $0x11c4] sm:$0xf]  ;;  %5215 = vmatpush.bf16.msrb.mxu0 %v8198_v52  ;;  %v8931_v6 = vld [vmem:[%s16255_s1 + $0x11d0] sm:$0xf0]  ;;  %v8806_v15 = vor.u32 %v10583_v2, %v8803_v3 }
 0x145   :  { %v10647_v8 = vld [vmem:[%s16255_s1 + $0x12c4] sm:$0xf]  ;;  %v9059_v9 = vld [vmem:[%s16255_s1 + $0x12d0] sm:$0xf0]  ;;  %5228 = vmatpush.bf16.msrb.mxu1 %v8326_v58  ;;  %v8934_v53 = vor.u32 %v10615_v4, %v8931_v6  ;;  %v5009_v58 = vpop.f32.mrf.mxu0 }
 0x146   :  { %5241 = vmatpush.bf16.msrb.mxu2 %v8454_v59  ;;  %v10679_v10 = vld [vmem:[%s16255_s1 + $0x13c4] sm:$0xf]  ;;  %v9187_v13 = vld [vmem:[%s16255_s1 + $0x13d0] sm:$0xf0]  ;;  %v9062_v17 = vor.u32 %v10647_v8, %v9059_v9  ;;  %v5010_v61 = vadd.f32 %v5009_v58, %v12946_v0 }
 0x147   :  { %5254 = vmatpush.bf16.msrb.mxu3 %v8582_v55  ;;  %v10579_v21 = vld [vmem:[%s16255_s1 + $0x10a4] sm:$0xf]  ;;  %v8787_v14 = vld [vmem:[%s16255_s1 + $0x10b0] sm:$0xf0]  ;;  %5216 = vmatmul.bf16.vlgmr.msrb.gmra.mxu0 %v11800_v23  ;;  %v9190_v26 = vor.u32 %v10679_v10, %v9187_v13 }
 0x148   :  { %5260 = vmatpush.bf16.msra.mxu0 %v8822_v62  ;;  %v10611_v24 = vld [vmem:[%s16255_s1 + $0x11a4] sm:$0xf]  ;;  %v8915_v27 = vld [vmem:[%s16255_s1 + $0x11b0] sm:$0xf0]  ;;  %5229 = vmatmul.bf16.vlgmr.msrb.gmra.mxu1 %v11813_v31  ;;  %v8790_v43 = vor.u32 %v10579_v21, %v8787_v14  ;;  %v5022_v62 = vpop.f32.mrf.mxu1 }
 0x149   :  { %5273 = vmatpush.bf16.msra.mxu1 %v8950_v63  ;;  %v10643_v32 = vld [vmem:[%s16255_s1 + $0x12a4] sm:$0xf]  ;;  %v9043_v34 = vld [vmem:[%s16255_s1 + $0x12b0] sm:$0xf0]  ;;  %5242 = vmatmul.bf16.vlgmr.msrb.gmra.mxu2 %v11811_v28  ;;  %v8918_v47 = vor.u32 %v10611_v24, %v8915_v27 }
 0x14a   :  { %5286 = vmatpush.bf16.msra.mxu2 %v9078_v1  ;;  %v10675_v36 = vld [vmem:[%s16255_s1 + $0x13a4] sm:$0xf]  ;;  %v9171_v40 = vld [vmem:[%s16255_s1 + $0x13b0] sm:$0xf0]  ;;  %5255 = vmatmul.bf16.vlgmr.msrb.gmra.mxu3 %v11821_v35  ;;  %v9046_v48 = vor.u32 %v10643_v32, %v9043_v34 }
 0x14b   :  { %5299 = vmatpush.bf16.msra.mxu3 %v9206_v5  ;;  %v10575_v39 = vld [vmem:[%s16255_s1 + $0x1084] sm:$0xf]  ;;  %v8771_v50 = vld [vmem:[%s16255_s1 + $0x1090] sm:$0xf0]  ;;  %v9174_v52 = vor.u32 %v10675_v36, %v9171_v40  ;;  %v5023_v5 = vadd.f32 %v5022_v62, %v5010_v61 }
 0x14c   :  { %5261 = vmatpush.bf16.msra.mxu0 %v8806_v15  ;;  %v10607_v51 = vld [vmem:[%s16255_s1 + $0x1184] sm:$0xf]  ;;  %v8899_v54 = vld [vmem:[%s16255_s1 + $0x1190] sm:$0xf0]  ;;  %v8774_v55 = vor.u32 %v10575_v39, %v8771_v50  ;;  %v5035_v27 = vpop.f32.mrf.mxu2 }
 0x14d   :  { %5274 = vmatpush.bf16.msra.mxu1 %v8934_v53  ;;  %v10639_v56 = vld [vmem:[%s16255_s1 + $0x1284] sm:$0xf]  ;;  %v9027_v57 = vld [vmem:[%s16255_s1 + $0x1290] sm:$0xf0]  ;;  %v8902_v63 = vor.u32 %v10607_v51, %v8899_v54  ;;  %v5036_v40 = vadd.f32 %v5035_v27, %v5023_v5  ;;  %v5011_v39 = vpop.f32.mrf.mxu0 }
 0x14e   :  { %5287 = vmatpush.bf16.msra.mxu2 %v9062_v17  ;;  %v10671_v59 = vld [vmem:[%s16255_s1 + $0x1384] sm:$0xf]  ;;  %v9155_v60 = vld [vmem:[%s16255_s1 + $0x1390] sm:$0xf0]  ;;  %v9030_v1 = vor.u32 %v10639_v56, %v9027_v57 }
 0x14f   :  { %5300 = vmatpush.bf16.msra.mxu3 %v9190_v26  ;;  %v10571_v2 = vld [vmem:[%s16255_s1 + $0x1064] sm:$0xf]  ;;  %v8755_v3 = vld [vmem:[%s16255_s1 + $0x1070] sm:$0xf0]  ;;  %v9158_v0 = vor.u32 %v10671_v59, %v9155_v60 }
 0x150   :  { %5262 = vmatpush.bf16.msra.mxu0 %v8790_v43  ;;  %v10603_v4 = vld [vmem:[%s16255_s1 + $0x1164] sm:$0xf]  ;;  %v8883_v6 = vld [vmem:[%s16255_s1 + $0x1170] sm:$0xf0]  ;;  %v8758_v15 = vor.u32 %v10571_v2, %v8755_v3  ;;  %v5048_v43 = vpop.f32.mrf.mxu3  ;;  %v5024_v51 = vpop.f32.mrf.mxu1 }
 0x151   :  { %5275 = vmatpush.bf16.msra.mxu1 %v8918_v47  ;;  %v10635_v8 = vld [vmem:[%s16255_s1 + $0x1264] sm:$0xf]  ;;  %v9011_v9 = vld [vmem:[%s16255_s1 + $0x1270] sm:$0xf0]  ;;  %v8886_v53 = vor.u32 %v10603_v4, %v8883_v6 }
 0x152   :  { %5288 = vmatpush.bf16.msra.mxu2 %v9046_v48  ;;  %v10667_v10 = vld [vmem:[%s16255_s1 + $0x1364] sm:$0xf]  ;;  %v9139_v13 = vld [vmem:[%s16255_s1 + $0x1370] sm:$0xf0]  ;;  %v9014_v17 = vor.u32 %v10635_v8, %v9011_v9 }
 0x153   :  { %5301 = vmatpush.bf16.msra.mxu3 %v9174_v52  ;;  %v10567_v21 = vld [vmem:[%s16255_s1 + $0x1044] sm:$0xf]  ;;  %v8739_v14 = vld [vmem:[%s16255_s1 + $0x1050] sm:$0xf0]  ;;  %v9142_v26 = vor.u32 %v10667_v10, %v9139_v13  ;;  %v13145_v52 = vadd.f32 %v5048_v43, %v5036_v40 }
 0x154   :  { %5263 = vmatpush.bf16.msra.mxu0 %v8774_v55  ;;  %v10599_v24 = vld [vmem:[%s16255_s1 + $0x1144] sm:$0xf]  ;;  %v8867_v32 = vld [vmem:[%s16255_s1 + $0x1150] sm:$0xf0]  ;;  %v8742_v50 = vor.u32 %v10567_v21, %v8739_v14 }
 0x155   :  { %5276 = vmatpush.bf16.msra.mxu1 %v8902_v63  ;;  %v10631_v34 = vld [vmem:[%s16255_s1 + $0x1244] sm:$0xf]  ;;  %v8995_v36 = vld [vmem:[%s16255_s1 + $0x1250] sm:$0xf0]  ;;  %v8870_v54 = vor.u32 %v10599_v24, %v8867_v32 }
 0x156   :  { %5289 = vmatpush.bf16.msra.mxu2 %v9030_v1  ;;  %v10663_v47 = vld [vmem:[%s16255_s1 + $0x1344] sm:$0xf]  ;;  %v9123_v48 = vld [vmem:[%s16255_s1 + $0x1350] sm:$0xf0]  ;;  %v8998_v56 = vor.u32 %v10631_v34, %v8995_v36 }
 0x157   :  { %5302 = vmatpush.bf16.msra.mxu3 %v9158_v0  ;;  %v10563_v57 = vld [vmem:[%s16255_s1 + $0x1024] sm:$0xf]  ;;  %v8723_v58 = vld [vmem:[%s16255_s1 + $0x1030] sm:$0xf0]  ;;  %v9126_v60 = vor.u32 %v10663_v47, %v9123_v48 }
 0x158   :  { %5264 = vmatpush.bf16.msra.mxu0 %v8758_v15  ;;  %v10595_v59 = vld [vmem:[%s16255_s1 + $0x1124] sm:$0xf]  ;;  %v8851_v61 = vld [vmem:[%s16255_s1 + $0x1130] sm:$0xf0]  ;;  %v8726_v2 = vor.u32 %v10563_v57, %v8723_v58 }
 0x159   :  { %5277 = vmatpush.bf16.msra.mxu1 %v8886_v53  ;;  %v10627_v55 = vld [vmem:[%s16255_s1 + $0x1224] sm:$0xf]  ;;  %v8979_v62 = vld [vmem:[%s16255_s1 + $0x1230] sm:$0xf0]  ;;  %v8854_v0 = vor.u32 %v10595_v59, %v8851_v61 }
 0x15a   :  { %5290 = vmatpush.bf16.msra.mxu2 %v9014_v17  ;;  %v10659_v63 = vld [vmem:[%s16255_s1 + $0x1324] sm:$0xf]  ;;  %v9107_v1 = vld [vmem:[%s16255_s1 + $0x1330] sm:$0xf0]  ;;  %v8982_v5 = vor.u32 %v10627_v55, %v8979_v62  ;;  %v5037_v17 = vpop.f32.mrf.mxu2 }
 0x15b   :  { %5303 = vmatpush.bf16.msra.mxu3 %v9142_v26  ;;  %v10559_v3 = vld [vmem:[%s16255_s1 + $0x1004] sm:$0xf]  ;;  %v8707_v4 = vld [vmem:[%s16255_s1 + $0x1010] sm:$0xf0]  ;;  %v9110_v10 = vor.u32 %v10659_v63, %v9107_v1  ;;  %v5050_v26 = vpop.f32.mrf.mxu3 }
 0x15c   :  { %5265 = vmatpush.bf16.msra.mxu0 %v8742_v50  ;;  %v10591_v6 = vld [vmem:[%s16255_s1 + $0x1104] sm:$0xf]  ;;  %v8835_v8 = vld [vmem:[%s16255_s1 + $0x1110] sm:$0xf0]  ;;  %v8710_v27 = vor.u32 %v10559_v3, %v8707_v4 }
 0x15d   :  { %5278 = vmatpush.bf16.msra.mxu1 %v8870_v54  ;;  %v10623_v9 = vld [vmem:[%s16255_s1 + $0x1204] sm:$0xf]  ;;  %v8963_v13 = vld [vmem:[%s16255_s1 + $0x1210] sm:$0xf0]  ;;  %v8838_v40 = vor.u32 %v10591_v6, %v8835_v8 }
 0x15e   :  { %5291 = vmatpush.bf16.msra.mxu2 %v8998_v56  ;;  %v10655_v15 = vld [vmem:[%s16255_s1 + $0x1304] sm:$0xf]  ;;  %v9091_v53 = vld [vmem:[%s16255_s1 + $0x1310] sm:$0xf0]  ;;  %v8966_v43 = vor.u32 %v10623_v9, %v8963_v13 }
 0x15f   :  { %5304 = vmatpush.bf16.msra.mxu3 %v9126_v60  ;;  %v10715_v21 = vld [vmem:[%s16255_s1 + $0x14e4] sm:$0xf]  ;;  %v9331_v14 = vld [vmem:[%s16255_s1 + $0x14f0] sm:$0xf0]  ;;  %v9094_v39 = vor.u32 %v10655_v15, %v9091_v53 }
 0x160   :  { %v10747_v24 = vld [vmem:[%s16255_s1 + $0x15e4] sm:$0xf]  ;;  %5266 = vmatpush.bf16.msra.mxu0 %v8726_v2  ;;  %v9459_v32 = vld [vmem:[%s16255_s1 + $0x15f0] sm:$0xf0]  ;;  %v9334_v50 = vor.u32 %v10715_v21, %v9331_v14 }
 0x161   :  { %v10779_v34 = vld [vmem:[%s16255_s1 + $0x16e4] sm:$0xf]  ;;  %v9587_v36 = vld [vmem:[%s16255_s1 + $0x16f0] sm:$0xf0]  ;;  %5279 = vmatpush.bf16.msra.mxu1 %v8854_v0  ;;  %v9462_v51 = vor.u32 %v10747_v24, %v9459_v32 }
 0x162   :  { %5292 = vmatpush.bf16.msra.mxu2 %v8982_v5  ;;  %v10811_v47 = vld [vmem:[%s16255_s1 + $0x17e4] sm:$0xf]  ;;  %v9715_v48 = vld [vmem:[%s16255_s1 + $0x17f0] sm:$0xf0]  ;;  %v9590_v54 = vor.u32 %v10779_v34, %v9587_v36 }
 0x163   :  { %5305 = vmatpush.bf16.msra.mxu3 %v9110_v10  ;;  %v10711_v56 = vld [vmem:[%s16255_s1 + $0x14c4] sm:$0xf]  ;;  %v9315_v57 = vld [vmem:[%s16255_s1 + $0x14d0] sm:$0xf0]  ;;  %v9718_v59 = vor.u32 %v10811_v47, %v9715_v48 }
 0x164   :  { %v10743_v58 = vld [vmem:[%s16255_s1 + $0x15c4] sm:$0xf]  ;;  %5267 = vmatpush.bf16.msra.mxu0 %v8710_v27  ;;  %v9443_v60 = vld [vmem:[%s16255_s1 + $0x15d0] sm:$0xf0]  ;;  %v9318_v1 = vor.u32 %v10711_v56, %v9315_v57  ;;  %v10896_v27 = vld [vmem:[%s16257_s2] sm:$0xf] }
 0x165   :  { %v10775_v61 = vld [vmem:[%s16255_s1 + $0x16c4] sm:$0xf]  ;;  %v9571_v55 = vld [vmem:[%s16255_s1 + $0x16d0] sm:$0xf0]  ;;  %5280 = vmatpush.bf16.msra.mxu1 %v8838_v40  ;;  %v9446_v2 = vor.u32 %v10743_v58, %v9443_v60  ;;  %v809_v32 = vperm.slane %v10896_v27, 1  ;;  %v5074_v60 = vpop.f32.mrf.mxu1 }
 0x166   :  { %5293 = vmatpush.bf16.msra.mxu2 %v8966_v43  ;;  %v10807_v62 = vld [vmem:[%s16255_s1 + $0x17c4] sm:$0xf]  ;;  %v9699_v63 = vld [vmem:[%s16255_s1 + $0x17d0] sm:$0xf0]  ;;  %v9574_v3 = vor.u32 %v10775_v61, %v9571_v55 }
 0x167   :  { %5306 = vmatpush.bf16.msra.mxu3 %v9094_v39  ;;  %v10707_v4 = vld [vmem:[%s16255_s1 + $0x14a4] sm:$0xf]  ;;  %v9299_v0 = vld [vmem:[%s16255_s1 + $0x14b0] sm:$0xf0]  ;;  %5268 = vmatmul.bf16.vlgmr.msra.gmra.mxu0 %v12010_v37  ;;  %v9702_v6 = vor.u32 %v10807_v62, %v9699_v63 }
 0x168   :  { %5312 = vmatpush.bf16.msrb.mxu0 %v9334_v50  ;;  %v10739_v5 = vld [vmem:[%s16255_s1 + $0x15a4] sm:$0xf]  ;;  %v9427_v8 = vld [vmem:[%s16255_s1 + $0x15b0] sm:$0xf0]  ;;  %5281 = vmatmul.bf16.vlgmr.msra.gmra.mxu1 %v12023_v46  ;;  %v9302_v53 = vor.u32 %v10707_v4, %v9299_v0  ;;  %v5061_v50 = vpop.f32.mrf.mxu0 }
 0x169   :  { %5325 = vmatpush.bf16.msrb.mxu1 %v9462_v51  ;;  %v10771_v9 = vld [vmem:[%s16255_s1 + $0x16a4] sm:$0xf]  ;;  %v9555_v10 = vld [vmem:[%s16255_s1 + $0x16b0] sm:$0xf0]  ;;  %5294 = vmatmul.bf16.vlgmr.msra.gmra.mxu2 %v12021_v45  ;;  %v9430_v21 = vor.u32 %v10739_v5, %v9427_v8 }
 0x16a   :  { %5338 = vmatpush.bf16.msrb.mxu2 %v9590_v54  ;;  %v10803_v13 = vld [vmem:[%s16255_s1 + $0x17a4] sm:$0xf]  ;;  %v9683_v15 = vld [vmem:[%s16255_s1 + $0x17b0] sm:$0xf0]  ;;  %5307 = vmatmul.bf16.vlgmr.msra.gmra.mxu3 %v12031_v49  ;;  %v9558_v14 = vor.u32 %v10771_v9, %v9555_v10 }
 0x16b   :  { %5351 = vmatpush.bf16.msrb.mxu3 %v9718_v59  ;;  %v10703_v17 = vld [vmem:[%s16255_s1 + $0x1484] sm:$0xf]  ;;  %v9283_v24 = vld [vmem:[%s16255_s1 + $0x1490] sm:$0xf0]  ;;  %v9686_v34 = vor.u32 %v10803_v13, %v9683_v15  ;;  %v5062_v59 = vadd.f32 %v5061_v50, %v809_v32 }
 0x16c   :  { %5313 = vmatpush.bf16.msrb.mxu0 %v9318_v1  ;;  %v10735_v26 = vld [vmem:[%s16255_s1 + $0x1584] sm:$0xf]  ;;  %v9411_v36 = vld [vmem:[%s16255_s1 + $0x1590] sm:$0xf0]  ;;  %v9286_v39 = vor.u32 %v10703_v17, %v9283_v24  ;;  %v5087_v10 = vpop.f32.mrf.mxu2 }
 0x16d   :  { %5326 = vmatpush.bf16.msrb.mxu1 %v9446_v2  ;;  %v10767_v40 = vld [vmem:[%s16255_s1 + $0x1684] sm:$0xf]  ;;  %v9539_v43 = vld [vmem:[%s16255_s1 + $0x1690] sm:$0xf0]  ;;  %v9414_v51 = vor.u32 %v10735_v26, %v9411_v36 }
 0x16e   :  { %5339 = vmatpush.bf16.msrb.mxu2 %v9574_v3  ;;  %v10799_v47 = vld [vmem:[%s16255_s1 + $0x1784] sm:$0xf]  ;;  %v9667_v48 = vld [vmem:[%s16255_s1 + $0x1790] sm:$0xf0]  ;;  %v9542_v54 = vor.u32 %v10767_v40, %v9539_v43  ;;  %v5075_v3 = vadd.f32 %v5074_v60, %v5062_v59 }
 0x16f   :  { %5352 = vmatpush.bf16.msrb.mxu3 %v9702_v6  ;;  %v10699_v56 = vld [vmem:[%s16255_s1 + $0x1464] sm:$0xf]  ;;  %v9267_v57 = vld [vmem:[%s16255_s1 + $0x1470] sm:$0xf0]  ;;  %v9670_v61 = vor.u32 %v10799_v47, %v9667_v48 }
 0x170   :  { %5314 = vmatpush.bf16.msrb.mxu0 %v9302_v53  ;;  %v10731_v58 = vld [vmem:[%s16255_s1 + $0x1564] sm:$0xf]  ;;  %v9395_v55 = vld [vmem:[%s16255_s1 + $0x1570] sm:$0xf0]  ;;  %v9270_v4 = vor.u32 %v10699_v56, %v9267_v57 }
 0x171   :  { %5327 = vmatpush.bf16.msrb.mxu1 %v9430_v21  ;;  %v10763_v62 = vld [vmem:[%s16255_s1 + $0x1664] sm:$0xf]  ;;  %v9523_v63 = vld [vmem:[%s16255_s1 + $0x1670] sm:$0xf0]  ;;  %v9398_v0 = vor.u32 %v10731_v58, %v9395_v55  ;;  %v5088_v21 = vadd.f32 %v5087_v10, %v5075_v3  ;;  %v10078_v10 = vld [vmem:[%s16255_s1 + $0xf4] sm:$0xf0] }
 0x172   :  { %5340 = vmatpush.bf16.msrb.mxu2 %v9558_v14  ;;  %v10795_v1 = vld [vmem:[%s16255_s1 + $0x1764] sm:$0xf]  ;;  %v9651_v2 = vld [vmem:[%s16255_s1 + $0x1770] sm:$0xf0]  ;;  %v9526_v5 = vor.u32 %v10763_v62, %v9523_v63  ;;  %v5100_v14 = vpop.f32.mrf.mxu3 }
 0x173   :  { %5353 = vmatpush.bf16.msrb.mxu3 %v9686_v34  ;;  %v10695_v6 = vld [vmem:[%s16255_s1 + $0x1444] sm:$0xf]  ;;  %v9251_v8 = vld [vmem:[%s16255_s1 + $0x1450] sm:$0xf0]  ;;  %v9654_v13 = vor.u32 %v10795_v1, %v9651_v2  ;;  %v13346_v32 = vadd.f32 %v5100_v14, %v5088_v21  ;;  %v5063_v34 = vpop.f32.mrf.mxu0  ;;  %v10142_v21 = vld [vmem:[%s16255_s1 + $0x2f4] sm:$0xf0] }
 0x174   :  { %5315 = vmatpush.bf16.msrb.mxu0 %v9286_v39  ;;  %v10727_v9 = vld [vmem:[%s16255_s1 + $0x1544] sm:$0xf]  ;;  %v9379_v15 = vld [vmem:[%s16255_s1 + $0x1550] sm:$0xf0]  ;;  %v9254_v27 = vor.u32 %v10695_v6, %v9251_v8  ;;  %v5076_v39 = vpop.f32.mrf.mxu1  ;;  %v5089_v3 = vpop.f32.mrf.mxu2 }
 0x175   :  { %5328 = vmatpush.bf16.msrb.mxu1 %v9414_v51  ;;  %v10759_v53 = vld [vmem:[%s16255_s1 + $0x1644] sm:$0xf]  ;;  %v9507_v17 = vld [vmem:[%s16255_s1 + $0x1650] sm:$0xf0]  ;;  %v9382_v36 = vor.u32 %v10727_v9, %v9379_v15  ;;  %v6777_v9 = vld [vmem:[%s16255_s1 + $0xe8] sm:$0xf] }
 0x176   :  { %5341 = vmatpush.bf16.msrb.mxu2 %v9542_v54  ;;  %v10791_v24 = vld [vmem:[%s16255_s1 + $0x1744] sm:$0xf]  ;;  %v9635_v26 = vld [vmem:[%s16255_s1 + $0x1750] sm:$0xf0]  ;;  %v9510_v40 = vor.u32 %v10759_v53, %v9507_v17  ;;  %v10110_v53 = vld [vmem:[%s16255_s1 + $0x1f4] sm:$0xf0] }
 0x177   :  { %5354 = vmatpush.bf16.msrb.mxu3 %v9670_v61  ;;  %v10691_v43 = vld [vmem:[%s16255_s1 + $0x1424] sm:$0xf]  ;;  %v9235_v47 = vld [vmem:[%s16255_s1 + $0x1430] sm:$0xf0]  ;;  %v9638_v50 = vor.u32 %v10791_v24, %v9635_v26  ;;  %v7033_v17 = vld [vmem:[%s16255_s1 + $0x2e8] sm:$0xf] }
 0x178   :  { %5316 = vmatpush.bf16.msrb.mxu0 %v9270_v4  ;;  %v10723_v48 = vld [vmem:[%s16255_s1 + $0x1524] sm:$0xf]  ;;  %v9363_v51 = vld [vmem:[%s16255_s1 + $0x1530] sm:$0xf0]  ;;  %v9238_v59 = vor.u32 %v10691_v43, %v9235_v47  ;;  %v7161_v26 = vld [vmem:[%s16255_s1 + $0x3e8] sm:$0xf]  ;;  %v7034_v43 = vor.u32 %v10142_v21, %v7033_v17 }
 0x179   :  { %5329 = vmatpush.bf16.msrb.mxu1 %v9398_v0  ;;  %v10755_v54 = vld [vmem:[%s16255_s1 + $0x1624] sm:$0xf]  ;;  %v9491_v56 = vld [vmem:[%s16255_s1 + $0x1630] sm:$0xf0]  ;;  %v9366_v55 = vor.u32 %v10723_v48, %v9363_v51  ;;  %v6761_v47 = vld [vmem:[%s16255_s1 + $0xc8] sm:$0xf] }
 0x17a   :  { %5342 = vmatpush.bf16.msrb.mxu2 %v9526_v5  ;;  %v10787_v57 = vld [vmem:[%s16255_s1 + $0x1724] sm:$0xf]  ;;  %v9619_v58 = vld [vmem:[%s16255_s1 + $0x1730] sm:$0xf0]  ;;  %v9494_v62 = vor.u32 %v10755_v54, %v9491_v56  ;;  %v5102_v8 = vpop.f32.mrf.mxu3  ;;  %v10074_v48 = vld [vmem:[%s16255_s1 + $0xd4] sm:$0xf0] }
 0x17b   :  { %5355 = vmatpush.bf16.msrb.mxu3 %v9654_v13  ;;  %v10687_v60 = vld [vmem:[%s16255_s1 + $0x1404] sm:$0xf]  ;;  %v9219_v61 = vld [vmem:[%s16255_s1 + $0x1410] sm:$0xf0]  ;;  %v9622_v4 = vor.u32 %v10787_v57, %v9619_v58  ;;  %v6905_v13 = vld [vmem:[%s16255_s1 + $0x1e8] sm:$0xf] }
 0x17c   :  { %5317 = vmatpush.bf16.msrb.mxu0 %v9254_v27  ;;  %v10719_v63 = vld [vmem:[%s16255_s1 + $0x1504] sm:$0xf]  ;;  %v9347_v1 = vld [vmem:[%s16255_s1 + $0x1510] sm:$0xf0]  ;;  %v9222_v15 = vor.u32 %v10687_v60, %v9219_v61  ;;  %v10174_v27 = vld [vmem:[%s16255_s1 + $0x3f4] sm:$0xf0] }
 0x17d   :  { %5330 = vmatpush.bf16.msrb.mxu1 %v9382_v36  ;;  %v10751_v2 = vld [vmem:[%s16255_s1 + $0x1604] sm:$0xf]  ;;  %v9475_v0 = vld [vmem:[%s16255_s1 + $0x1610] sm:$0xf0]  ;;  %v9350_v14 = vor.u32 %v10719_v63, %v9347_v1  ;;  %v6778_v36 = vor.u32 %v10078_v10, %v6777_v9  ;;  %v6889_v39 = vld [vmem:[%s16255_s1 + $0x1c8] sm:$0xf] }
 0x17e   :  { %5343 = vmatpush.bf16.msrb.mxu2 %v9510_v40  ;;  %v10783_v5 = vld [vmem:[%s16255_s1 + $0x1704] sm:$0xf]  ;;  %v9603_v6 = vld [vmem:[%s16255_s1 + $0x1710] sm:$0xf0]  ;;  %v9478_v24 = vor.u32 %v10751_v2, %v9475_v0  ;;  %v6906_v40 = vor.u32 %v10110_v53, %v6905_v13  ;;  %v10106_v51 = vld [vmem:[%s16255_s1 + $0x1d4] sm:$0xf0] }
 0x17f   :  { %5356 = vmatpush.bf16.msrb.mxu3 %v9638_v50  ;;  %v9606_v34 = vor.u32 %v10783_v5, %v9603_v6  ;;  %v7162_v50 = vor.u32 %v10174_v27, %v7161_v26  ;;  %v7017_v54 = vld [vmem:[%s16255_s1 + $0x2c8] sm:$0xf]  ;;  %v10138_v56 = vld [vmem:[%s16255_s1 + $0x2d4] sm:$0xf0]  ;;  %v6890_v60 = vor.u32 %v10106_v51, %v6889_v39 }
 0x180   :  { %5318 = vmatpush.bf16.msrb.mxu0 %v9238_v59  ;;  %v7145_v57 = vld [vmem:[%s16255_s1 + $0x3c8] sm:$0xf]  ;;  %v10170_v58 = vld [vmem:[%s16255_s1 + $0x3d4] sm:$0xf0]  ;;  %v6762_v59 = vor.u32 %v10074_v48, %v6761_v47  ;;  %v7018_v61 = vor.u32 %v10138_v56, %v7017_v54 }
 0x181   :  { %5331 = vmatpush.bf16.msrb.mxu1 %v9366_v55  ;;  %v6745_v55 = vld [vmem:[%s16255_s1 + $0xa8] sm:$0xf]  ;;  %v7146_v1 = vor.u32 %v10170_v58, %v7145_v57  ;;  %v10102_v2 = vld [vmem:[%s16255_s1 + $0x1b4] sm:$0xf0] }
 0x182   :  { %5344 = vmatpush.bf16.msrb.mxu2 %v9494_v62  ;;  %v10070_v62 = vld [vmem:[%s16255_s1 + $0xb4] sm:$0xf0]  ;;  %v6873_v63 = vld [vmem:[%s16255_s1 + $0x1a8] sm:$0xf] }
 0x183   :  { %5357 = vmatpush.bf16.msrb.mxu3 %v9622_v4  ;;  %v7001_v3 = vld [vmem:[%s16255_s1 + $0x2a8] sm:$0xf]  ;;  %v10134_v4 = vld [vmem:[%s16255_s1 + $0x2b4] sm:$0xf0]  ;;  %v6746_v6 = vor.u32 %v10070_v62, %v6745_v55  ;;  %v6874_v8 = vor.u32 %v10102_v2, %v6873_v63 }
 0x184   :  { %5319 = vmatpush.bf16.msrb.mxu0 %v9222_v15  ;;  %v7129_v0 = vld [vmem:[%s16255_s1 + $0x3a8] sm:$0xf]  ;;  %v10166_v5 = vld [vmem:[%s16255_s1 + $0x3b4] sm:$0xf0]  ;;  %v7002_v9 = vor.u32 %v10134_v4, %v7001_v3 }
 0x185   :  { %5332 = vmatpush.bf16.msrb.mxu1 %v9350_v14  ;;  %v6729_v10 = vld [vmem:[%s16255_s1 + $0x88] sm:$0xf]  ;;  %v10066_v13 = vld [vmem:[%s16255_s1 + $0x94] sm:$0xf0]  ;;  %v7130_v53 = vor.u32 %v10166_v5, %v7129_v0 }
 0x186   :  { %5345 = vmatpush.bf16.msrb.mxu2 %v9478_v24  ;;  %v6857_v15 = vld [vmem:[%s16255_s1 + $0x188] sm:$0xf]  ;;  %v10098_v17 = vld [vmem:[%s16255_s1 + $0x194] sm:$0xf0]  ;;  %v6730_v27 = vor.u32 %v10066_v13, %v6729_v10 }
 0x187   :  { %5358 = vmatpush.bf16.msrb.mxu3 %v9606_v34  ;;  %5320 = vmatmul.bf16.vlgmr.msrb.gmra.mxu0 %v12225_v7  ;;  %v6985_v21 = vld [vmem:[%s16255_s1 + $0x288] sm:$0xf]  ;;  %v10130_v14 = vld [vmem:[%s16255_s1 + $0x294] sm:$0xf0]  ;;  %v5113_v34 = vpop.f32.mrf.mxu0 }
 0x188   :  { %5364 = vmatpush.bf16.msra.mxu0 %v6778_v36  ;;  %5333 = vmatmul.bf16.vlgmr.msrb.gmra.mxu1 %v12238_v12  ;;  %v7113_v24 = vld [vmem:[%s16255_s1 + $0x388] sm:$0xf]  ;;  %v10162_v26 = vld [vmem:[%s16255_s1 + $0x394] sm:$0xf0]  ;;  %v6858_v36 = vor.u32 %v10098_v17, %v6857_v15  ;;  %v5114_v39 = vadd.f32 %v5113_v34, %v13346_v32 }
 0x189   :  { %5377 = vmatpush.bf16.msra.mxu1 %v6906_v40  ;;  %5346 = vmatmul.bf16.vlgmr.msrb.gmra.mxu2 %v12236_v11  ;;  %v6986_v40 = vor.u32 %v10130_v14, %v6985_v21  ;;  %v10062_v47 = vld [vmem:[%s16255_s1 + $0x74] sm:$0xf0]  ;;  %v6841_v48 = vld [vmem:[%s16255_s1 + $0x168] sm:$0xf]  ;;  %v7114_v51 = vor.u32 %v10162_v26, %v7113_v24 }
 0x18a   :  { %5390 = vmatpush.bf16.msra.mxu2 %v7034_v43  ;;  %5359 = vmatmul.bf16.vlgmr.msrb.gmra.mxu3 %v12246_v16  ;;  %v6713_v43 = vld [vmem:[%s16255_s1 + $0x68] sm:$0xf]  ;;  %v10094_v54 = vld [vmem:[%s16255_s1 + $0x174] sm:$0xf0] }
 0x18b   :  { %5403 = vmatpush.bf16.msra.mxu3 %v7162_v50  ;;  %v5126_v50 = vpop.f32.mrf.mxu1  ;;  %v6969_v56 = vld [vmem:[%s16255_s1 + $0x268] sm:$0xf]  ;;  %v10126_v57 = vld [vmem:[%s16255_s1 + $0x274] sm:$0xf0] }
 0x18c   :  { %5365 = vmatpush.bf16.msra.mxu0 %v6762_v59  ;;  %v7097_v58 = vld [vmem:[%s16255_s1 + $0x368] sm:$0xf]  ;;  %v10158_v32 = vld [vmem:[%s16255_s1 + $0x374] sm:$0xf0]  ;;  %v5127_v59 = vadd.f32 %v5126_v50, %v5114_v39  ;;  %v6970_v55 = vor.u32 %v10126_v57, %v6969_v56  ;;  %v5139_v2 = vpop.f32.mrf.mxu2 }
 0x18d   :  { %5378 = vmatpush.bf16.msra.mxu1 %v6890_v60  ;;  %v6714_v60 = vor.u32 %v10062_v47, %v6713_v43  ;;  %v6697_v62 = vld [vmem:[%s16255_s1 + $0x48] sm:$0xf]  ;;  %v10058_v63 = vld [vmem:[%s16255_s1 + $0x54] sm:$0xf0]  ;;  %v7098_v3 = vor.u32 %v10158_v32, %v7097_v58 }
 0x18e   :  { %5391 = vmatpush.bf16.msra.mxu2 %v7018_v61  ;;  %v6842_v61 = vor.u32 %v10094_v54, %v6841_v48  ;;  %v10090_v4 = vld [vmem:[%s16255_s1 + $0x154] sm:$0xf0]  ;;  %v6953_v0 = vld [vmem:[%s16255_s1 + $0x248] sm:$0xf]  ;;  %v6698_v13 = vor.u32 %v10058_v63, %v6697_v62 }
 0x18f   :  { %5404 = vmatpush.bf16.msra.mxu3 %v7146_v1  ;;  %v6825_v1 = vld [vmem:[%s16255_s1 + $0x148] sm:$0xf]  ;;  %v10122_v5 = vld [vmem:[%s16255_s1 + $0x254] sm:$0xf0] }
 0x190   :  { %5366 = vmatpush.bf16.msra.mxu0 %v6746_v6  ;;  %v5140_v6 = vadd.f32 %v5139_v2, %v5127_v59  ;;  %v10154_v10 = vld [vmem:[%s16255_s1 + $0x354] sm:$0xf0]  ;;  %v6826_v17 = vor.u32 %v10090_v4, %v6825_v1  ;;  %v6954_v21 = vor.u32 %v10122_v5, %v6953_v0  ;;  %v6681_v14 = vld [vmem:[%s16255_s1 + $0x28] sm:$0xf] }
 0x191   :  { %5379 = vmatpush.bf16.msra.mxu1 %v6874_v8  ;;  %v5152_v8 = vpop.f32.mrf.mxu3  ;;  %v10054_v24 = vld [vmem:[%s16255_s1 + $0x34] sm:$0xf0]  ;;  %v6809_v26 = vld [vmem:[%s16255_s1 + $0x128] sm:$0xf] }
 0x192   :  { %5392 = vmatpush.bf16.msra.mxu2 %v7002_v9  ;;  %v7081_v9 = vld [vmem:[%s16255_s1 + $0x348] sm:$0xf]  ;;  %v13545_v15 = vadd.f32 %v5152_v8, %v5140_v6  ;;  %v10118_v43 = vld [vmem:[%s16255_s1 + $0x234] sm:$0xf0]  ;;  %v6682_v39 = vor.u32 %v10054_v24, %v6681_v14 }
 0x193   :  { %5405 = vmatpush.bf16.msra.mxu3 %v7130_v53  ;;  %v5115_v53 = vpop.f32.mrf.mxu0  ;;  %v7082_v34 = vor.u32 %v10154_v10, %v7081_v9  ;;  %v7065_v47 = vld [vmem:[%s16255_s1 + $0x328] sm:$0xf]  ;;  %v10150_v48 = vld [vmem:[%s16255_s1 + $0x334] sm:$0xf0] }
 0x194   :  { %5367 = vmatpush.bf16.msra.mxu0 %v6730_v27  ;;  %v5128_v27 = vpop.f32.mrf.mxu1  ;;  %v6665_v50 = vld [vmem:[%s16255_s1 + $0x8] sm:$0xf]  ;;  %v10082_v58 = vld [vmem:[%s16255_s1 + $0x114] sm:$0xf0]  ;;  %v5141_v59 = vpop.f32.mrf.mxu2 }
 0x195   :  { %5380 = vmatpush.bf16.msra.mxu1 %v6858_v36  ;;  %v10086_v36 = vld [vmem:[%s16255_s1 + $0x134] sm:$0xf0]  ;;  %v6793_v57 = vld [vmem:[%s16255_s1 + $0x108] sm:$0xf] }
 0x196   :  { %5393 = vmatpush.bf16.msra.mxu2 %v6986_v40  ;;  %v6937_v40 = vld [vmem:[%s16255_s1 + $0x228] sm:$0xf]  ;;  %v6810_v54 = vor.u32 %v10086_v36, %v6809_v26  ;;  %v10146_v62 = vld [vmem:[%s16255_s1 + $0x314] sm:$0xf0]  ;;  %v6794_v8 = vor.u32 %v10082_v58, %v6793_v57 }
 0x197   :  { %5406 = vmatpush.bf16.msra.mxu3 %v7114_v51  ;;  %v10050_v51 = vld [vmem:[%s16255_s1 + $0x14] sm:$0xf0]  ;;  %v6938_v56 = vor.u32 %v10118_v43, %v6937_v40  ;;  %v6921_v32 = vld [vmem:[%s16255_s1 + $0x208] sm:$0xf] }
 0x198   :  { %5368 = vmatpush.bf16.msra.mxu0 %v6714_v60  ;;  %v7066_v60 = vor.u32 %v10150_v48, %v7065_v47  ;;  %v7289_v1 = vld [vmem:[%s16255_s1 + $0x4e8] sm:$0xf]  ;;  %v10206_v2 = vld [vmem:[%s16255_s1 + $0x4f4] sm:$0xf0]  ;;  %v6666_v4 = vor.u32 %v10050_v51, %v6665_v50 }
 0x199   :  { %5381 = vmatpush.bf16.msra.mxu1 %v6842_v61  ;;  %v10114_v61 = vld [vmem:[%s16255_s1 + $0x214] sm:$0xf0]  ;;  %v5154_v63 = vpop.f32.mrf.mxu3  ;;  %v7545_v5 = vld [vmem:[%s16255_s1 + $0x6e8] sm:$0xf] }
 0x19a   :  { %5394 = vmatpush.bf16.msra.mxu2 %v6970_v55  ;;  %v7049_v55 = vld [vmem:[%s16255_s1 + $0x308] sm:$0xf]  ;;  %v10238_v0 = vld [vmem:[%s16255_s1 + $0x5f4] sm:$0xf0]  ;;  %v6922_v9 = vor.u32 %v10114_v61, %v6921_v32 }
 0x19b   :  { %5407 = vmatpush.bf16.msra.mxu3 %v7098_v3  ;;  %v7417_v3 = vld [vmem:[%s16255_s1 + $0x5e8] sm:$0xf]  ;;  %v10270_v6 = vld [vmem:[%s16255_s1 + $0x6f4] sm:$0xf0]  ;;  %v7050_v53 = vor.u32 %v10146_v62, %v7049_v55 }
 0x19c   :  { %5369 = vmatpush.bf16.msra.mxu0 %v6698_v13  ;;  %v7673_v10 = vld [vmem:[%s16255_s1 + $0x7e8] sm:$0xf]  ;;  %v10302_v13 = vld [vmem:[%s16255_s1 + $0x7f4] sm:$0xf0]  ;;  %v7546_v14 = vor.u32 %v10270_v6, %v7545_v5 }
 0x19d   :  { %5382 = vmatpush.bf16.msra.mxu1 %v6826_v17  ;;  %v7290_v17 = vor.u32 %v10206_v2, %v7289_v1  ;;  %v7273_v24 = vld [vmem:[%s16255_s1 + $0x4c8] sm:$0xf]  ;;  %v10202_v26 = vld [vmem:[%s16255_s1 + $0x4d4] sm:$0xf0] }
 0x19e   :  { %5395 = vmatpush.bf16.msra.mxu2 %v6954_v21  ;;  %v7418_v21 = vor.u32 %v10238_v0, %v7417_v3  ;;  %v7401_v27 = vld [vmem:[%s16255_s1 + $0x5c8] sm:$0xf]  ;;  %v10234_v36 = vld [vmem:[%s16255_s1 + $0x5d4] sm:$0xf0] }
 0x19f   :  { %5408 = vmatpush.bf16.msra.mxu3 %v7082_v34  ;;  %v7674_v34 = vor.u32 %v10302_v13, %v7673_v10  ;;  %v7529_v40 = vld [vmem:[%s16255_s1 + $0x6c8] sm:$0xf]  ;;  %v10266_v43 = vld [vmem:[%s16255_s1 + $0x6d4] sm:$0xf0]  ;;  %v7402_v50 = vor.u32 %v10234_v36, %v7401_v27 }
 0x1a0   :  { %5370 = vmatpush.bf16.msra.mxu0 %v6682_v39  ;;  %v7657_v47 = vld [vmem:[%s16255_s1 + $0x7c8] sm:$0xf]  ;;  %v10298_v48 = vld [vmem:[%s16255_s1 + $0x7d4] sm:$0xf0]  ;;  %v7274_v39 = vor.u32 %v10202_v26, %v7273_v24  ;;  %v7530_v51 = vor.u32 %v10266_v43, %v7529_v40 }
 0x1a1   :  { %5383 = vmatpush.bf16.msra.mxu1 %v6810_v54  ;;  %v7257_v54 = vld [vmem:[%s16255_s1 + $0x4a8] sm:$0xf]  ;;  %v7658_v58 = vor.u32 %v10298_v48, %v7657_v47  ;;  %v10230_v32 = vld [vmem:[%s16255_s1 + $0x5b4] sm:$0xf0] }
 0x1a2   :  { %5396 = vmatpush.bf16.msra.mxu2 %v6938_v56  ;;  %v10198_v56 = vld [vmem:[%s16255_s1 + $0x4b4] sm:$0xf0]  ;;  %v7385_v57 = vld [vmem:[%s16255_s1 + $0x5a8] sm:$0xf] }
 0x1a3   :  { %5409 = vmatpush.bf16.msra.mxu3 %v7066_v60  ;;  %v7513_v59 = vld [vmem:[%s16255_s1 + $0x6a8] sm:$0xf]  ;;  %v10262_v60 = vld [vmem:[%s16255_s1 + $0x6b4] sm:$0xf0]  ;;  %v7258_v62 = vor.u32 %v10198_v56, %v7257_v54  ;;  %v7386_v63 = vor.u32 %v10230_v32, %v7385_v57 }
 0x1a4   :  { %5371 = vmatpush.bf16.msra.mxu0 %v6666_v4  ;;  %v7641_v61 = vld [vmem:[%s16255_s1 + $0x7a8] sm:$0xf]  ;;  %v10294_v55 = vld [vmem:[%s16255_s1 + $0x7b4] sm:$0xf0]  ;;  %v7514_v1 = vor.u32 %v10262_v60, %v7513_v59 }
 0x1a5   :  { %5384 = vmatpush.bf16.msra.mxu1 %v6794_v8  ;;  %v7241_v2 = vld [vmem:[%s16255_s1 + $0x488] sm:$0xf]  ;;  %v10194_v3 = vld [vmem:[%s16255_s1 + $0x494] sm:$0xf0]  ;;  %v7642_v0 = vor.u32 %v10294_v55, %v7641_v61 }
 0x1a6   :  { %5397 = vmatpush.bf16.msra.mxu2 %v6922_v9  ;;  %v7369_v4 = vld [vmem:[%s16255_s1 + $0x588] sm:$0xf]  ;;  %v10226_v5 = vld [vmem:[%s16255_s1 + $0x594] sm:$0xf0]  ;;  %v5165_v9 = vpop.f32.mrf.mxu0 }
 0x1a7   :  { %5410 = vmatpush.bf16.msra.mxu3 %v7050_v53  ;;  %5372 = vmatmul.bf16.vlgmr.msra.gmra.mxu0 %v11235_v19  ;;  %v7497_v6 = vld [vmem:[%s16255_s1 + $0x688] sm:$0xf]  ;;  %v10258_v8 = vld [vmem:[%s16255_s1 + $0x694] sm:$0xf0]  ;;  %v5166_v53 = vadd.f32 %v5165_v9, %v13545_v15 }
 0x1a8   :  { %5416 = vmatpush.bf16.msrb.mxu0 %v7290_v17  ;;  %5385 = vmatmul.bf16.vlgmr.msra.gmra.mxu1 %v11239_v22  ;;  %v7625_v10 = vld [vmem:[%s16255_s1 + $0x788] sm:$0xf]  ;;  %v10290_v13 = vld [vmem:[%s16255_s1 + $0x794] sm:$0xf0]  ;;  %v7242_v17 = vor.u32 %v10194_v3, %v7241_v2  ;;  %v7498_v24 = vor.u32 %v10258_v8, %v7497_v6 }
 0x1a9   :  { %5429 = vmatpush.bf16.msrb.mxu1 %v7418_v21  ;;  %5398 = vmatmul.bf16.vlgmr.msra.gmra.mxu2 %v11233_v18  ;;  %v5178_v21 = vpop.f32.mrf.mxu1  ;;  %v7225_v26 = vld [vmem:[%s16255_s1 + $0x468] sm:$0xf]  ;;  %v10190_v27 = vld [vmem:[%s16255_s1 + $0x474] sm:$0xf0]  ;;  %v7626_v15 = vor.u32 %v10290_v13, %v7625_v10 }
 0x1aa   :  { %5442 = vmatpush.bf16.msrb.mxu2 %v7546_v14  ;;  %5411 = vmatmul.bf16.vlgmr.msra.gmra.mxu3 %v11237_v20  ;;  %v7370_v14 = vor.u32 %v10226_v5, %v7369_v4  ;;  %v5179_v36 = vadd.f32 %v5178_v21, %v5166_v53  ;;  %v10222_v40 = vld [vmem:[%s16255_s1 + $0x574] sm:$0xf0]  ;;  %v7481_v43 = vld [vmem:[%s16255_s1 + $0x668] sm:$0xf] }
 0x1ab   :  { %5455 = vmatpush.bf16.msrb.mxu3 %v7674_v34  ;;  %v7353_v34 = vld [vmem:[%s16255_s1 + $0x568] sm:$0xf]  ;;  %v10254_v47 = vld [vmem:[%s16255_s1 + $0x674] sm:$0xf0] }
 0x1ac   :  { %5417 = vmatpush.bf16.msrb.mxu0 %v7274_v39  ;;  %v7609_v48 = vld [vmem:[%s16255_s1 + $0x768] sm:$0xf]  ;;  %v10286_v39 = vld [vmem:[%s16255_s1 + $0x774] sm:$0xf0]  ;;  %v7482_v54 = vor.u32 %v10254_v47, %v7481_v43  ;;  %v5191_v59 = vpop.f32.mrf.mxu2 }
 0x1ad   :  { %5430 = vmatpush.bf16.msrb.mxu1 %v7402_v50  ;;  %v7226_v50 = vor.u32 %v10190_v27, %v7225_v26  ;;  %v7209_v56 = vld [vmem:[%s16255_s1 + $0x448] sm:$0xf]  ;;  %v10186_v57 = vld [vmem:[%s16255_s1 + $0x454] sm:$0xf0]  ;;  %v7610_v32 = vor.u32 %v10286_v39, %v7609_v48 }
 0x1ae   :  { %5443 = vmatpush.bf16.msrb.mxu2 %v7530_v51  ;;  %v7354_v51 = vor.u32 %v10222_v40, %v7353_v34  ;;  %v10218_v60 = vld [vmem:[%s16255_s1 + $0x554] sm:$0xf0]  ;;  %v7465_v61 = vld [vmem:[%s16255_s1 + $0x648] sm:$0xf]  ;;  %v5167_v3 = vpop.f32.mrf.mxu0  ;;  %v7210_v4 = vor.u32 %v10186_v57, %v7209_v56 }
 0x1af   :  { %5456 = vmatpush.bf16.msrb.mxu3 %v7658_v58  ;;  %v7337_v58 = vld [vmem:[%s16255_s1 + $0x548] sm:$0xf]  ;;  %v10250_v55 = vld [vmem:[%s16255_s1 + $0x654] sm:$0xf0] }
 0x1b0   :  { %5418 = vmatpush.bf16.msrb.mxu0 %v7258_v62  ;;  %v5192_v62 = vadd.f32 %v5191_v59, %v5179_v36  ;;  %v10282_v2 = vld [vmem:[%s16255_s1 + $0x754] sm:$0xf0]  ;;  %v7338_v6 = vor.u32 %v10218_v60, %v7337_v58  ;;  %v7466_v8 = vor.u32 %v10250_v55, %v7465_v61  ;;  %v7193_v9 = vld [vmem:[%s16255_s1 + $0x428] sm:$0xf] }
 0x1b1   :  { %5431 = vmatpush.bf16.msrb.mxu1 %v7386_v63  ;;  %v5204_v63 = vpop.f32.mrf.mxu3  ;;  %v10182_v10 = vld [vmem:[%s16255_s1 + $0x434] sm:$0xf0]  ;;  %v7321_v13 = vld [vmem:[%s16255_s1 + $0x528] sm:$0xf] }
 0x1b2   :  { %5444 = vmatpush.bf16.msrb.mxu2 %v7514_v1  ;;  %v7593_v1 = vld [vmem:[%s16255_s1 + $0x748] sm:$0xf]  ;;  %v13744_v5 = vadd.f32 %v5204_v63, %v5192_v62  ;;  %v10278_v26 = vld [vmem:[%s16255_s1 + $0x734] sm:$0xf0]  ;;  %v7194_v27 = vor.u32 %v10182_v10, %v7193_v9 }
 0x1b3   :  { %5457 = vmatpush.bf16.msrb.mxu3 %v7642_v0  ;;  %v5180_v0 = vpop.f32.mrf.mxu1  ;;  %v7594_v53 = vor.u32 %v10282_v2, %v7593_v1  ;;  %v7449_v21 = vld [vmem:[%s16255_s1 + $0x628] sm:$0xf]  ;;  %v10210_v47 = vld [vmem:[%s16255_s1 + $0x514] sm:$0xf0] }
 0x1b4   :  { %5419 = vmatpush.bf16.msrb.mxu0 %v7242_v17  ;;  %v10214_v17 = vld [vmem:[%s16255_s1 + $0x534] sm:$0xf0]  ;;  %v7177_v34 = vld [vmem:[%s16255_s1 + $0x408] sm:$0xf]  ;;  %v5193_v56 = vpop.f32.mrf.mxu2 }
 0x1b5   :  { %5432 = vmatpush.bf16.msrb.mxu1 %v7370_v14  ;;  %v10246_v14 = vld [vmem:[%s16255_s1 + $0x634] sm:$0xf0]  ;;  %v7322_v36 = vor.u32 %v10214_v17, %v7321_v13  ;;  %v7305_v43 = vld [vmem:[%s16255_s1 + $0x508] sm:$0xf] }
 0x1b6   :  { %5445 = vmatpush.bf16.msrb.mxu2 %v7498_v24  ;;  %v7577_v24 = vld [vmem:[%s16255_s1 + $0x728] sm:$0xf]  ;;  %v7450_v40 = vor.u32 %v10246_v14, %v7449_v21  ;;  %v10334_v58 = vld [vmem:[%s16255_s1 + $0x8f4] sm:$0xf0]  ;;  %v7306_v63 = vor.u32 %v10210_v47, %v7305_v43 }
 0x1b7   :  { %5458 = vmatpush.bf16.msrb.mxu3 %v7626_v15  ;;  %v10178_v15 = vld [vmem:[%s16255_s1 + $0x414] sm:$0xf0]  ;;  %v7433_v48 = vld [vmem:[%s16255_s1 + $0x608] sm:$0xf]  ;;  %v7578_v39 = vor.u32 %v10278_v26, %v7577_v24 }
 0x1b8   :  { %5420 = vmatpush.bf16.msrb.mxu0 %v7226_v50  ;;  %v10242_v50 = vld [vmem:[%s16255_s1 + $0x614] sm:$0xf0]  ;;  %v7801_v57 = vld [vmem:[%s16255_s1 + $0x8e8] sm:$0xf]  ;;  %v7178_v60 = vor.u32 %v10178_v15, %v7177_v34 }
 0x1b9   :  { %5433 = vmatpush.bf16.msrb.mxu1 %v7354_v51  ;;  %v7561_v51 = vld [vmem:[%s16255_s1 + $0x708] sm:$0xf]  ;;  %v5206_v59 = vpop.f32.mrf.mxu3  ;;  %v10366_v61 = vld [vmem:[%s16255_s1 + $0x9f4] sm:$0xf0]  ;;  %v7434_v1 = vor.u32 %v10242_v50, %v7433_v48  ;;  %v7802_v0 = vor.u32 %v10334_v58, %v7801_v57 }
 0x1ba   :  { %5446 = vmatpush.bf16.msrb.mxu2 %v7482_v54  ;;  %v10274_v54 = vld [vmem:[%s16255_s1 + $0x714] sm:$0xf0]  ;;  %v8057_v55 = vld [vmem:[%s16255_s1 + $0xae8] sm:$0xf] }
 0x1bb   :  { %5459 = vmatpush.bf16.msrb.mxu3 %v7610_v32  ;;  %v7929_v32 = vld [vmem:[%s16255_s1 + $0x9e8] sm:$0xf]  ;;  %v10398_v62 = vld [vmem:[%s16255_s1 + $0xaf4] sm:$0xf0] }
 0x1bc   :  { %5421 = vmatpush.bf16.msrb.mxu0 %v7210_v4  ;;  %v8185_v2 = vld [vmem:[%s16255_s1 + $0xbe8] sm:$0xf]  ;;  %v10430_v3 = vld [vmem:[%s16255_s1 + $0xbf4] sm:$0xf0]  ;;  %v7562_v4 = vor.u32 %v10274_v54, %v7561_v51 }
 0x1bd   :  { %5434 = vmatpush.bf16.msrb.mxu1 %v7338_v6  ;;  %v7930_v6 = vor.u32 %v10366_v61, %v7929_v32  ;;  %v7785_v9 = vld [vmem:[%s16255_s1 + $0x8c8] sm:$0xf]  ;;  %v10330_v10 = vld [vmem:[%s16255_s1 + $0x8d4] sm:$0xf0] }
 0x1be   :  { %5447 = vmatpush.bf16.msrb.mxu2 %v7466_v8  ;;  %v8058_v8 = vor.u32 %v10398_v62, %v8057_v55  ;;  %v7913_v13 = vld [vmem:[%s16255_s1 + $0x9c8] sm:$0xf]  ;;  %v10362_v17 = vld [vmem:[%s16255_s1 + $0x9d4] sm:$0xf0] }
 0x1bf   :  { %5460 = vmatpush.bf16.msrb.mxu3 %v7594_v53  ;;  %v8186_v53 = vor.u32 %v10430_v3, %v8185_v2  ;;  %v8041_v21 = vld [vmem:[%s16255_s1 + $0xac8] sm:$0xf]  ;;  %v10394_v14 = vld [vmem:[%s16255_s1 + $0xad4] sm:$0xf0]  ;;  %v7914_v34 = vor.u32 %v10362_v17, %v7913_v13 }
 0x1c0   :  { %5422 = vmatpush.bf16.msrb.mxu0 %v7194_v27  ;;  %v8169_v24 = vld [vmem:[%s16255_s1 + $0xbc8] sm:$0xf]  ;;  %v10426_v26 = vld [vmem:[%s16255_s1 + $0xbd4] sm:$0xf0]  ;;  %v7786_v27 = vor.u32 %v10330_v10, %v7785_v9  ;;  %v8042_v15 = vor.u32 %v10394_v14, %v8041_v21 }
 0x1c1   :  { %5435 = vmatpush.bf16.msrb.mxu1 %v7322_v36  ;;  %v7769_v36 = vld [vmem:[%s16255_s1 + $0x8a8] sm:$0xf]  ;;  %v8170_v47 = vor.u32 %v10426_v26, %v8169_v24  ;;  %v10358_v48 = vld [vmem:[%s16255_s1 + $0x9b4] sm:$0xf0] }
 0x1c2   :  { %5448 = vmatpush.bf16.msrb.mxu2 %v7450_v40  ;;  %v10326_v40 = vld [vmem:[%s16255_s1 + $0x8b4] sm:$0xf0]  ;;  %v7897_v43 = vld [vmem:[%s16255_s1 + $0x9a8] sm:$0xf] }
 0x1c3   :  { %5461 = vmatpush.bf16.msrb.mxu3 %v7578_v39  ;;  %v8025_v39 = vld [vmem:[%s16255_s1 + $0xaa8] sm:$0xf]  ;;  %v10390_v50 = vld [vmem:[%s16255_s1 + $0xab4] sm:$0xf0]  ;;  %v7770_v56 = vor.u32 %v10326_v40, %v7769_v36  ;;  %v7898_v57 = vor.u32 %v10358_v48, %v7897_v43 }
 0x1c4   :  { %5423 = vmatpush.bf16.msrb.mxu0 %v7178_v60  ;;  %v8153_v51 = vld [vmem:[%s16255_s1 + $0xba8] sm:$0xf]  ;;  %v10422_v54 = vld [vmem:[%s16255_s1 + $0xbb4] sm:$0xf0]  ;;  %v8026_v58 = vor.u32 %v10390_v50, %v8025_v39 }
 0x1c5   :  { %5436 = vmatpush.bf16.msrb.mxu1 %v7306_v63  ;;  %v7753_v32 = vld [vmem:[%s16255_s1 + $0x888] sm:$0xf]  ;;  %v10322_v59 = vld [vmem:[%s16255_s1 + $0x894] sm:$0xf0]  ;;  %v8154_v61 = vor.u32 %v10422_v54, %v8153_v51 }
 0x1c6   :  { %5449 = vmatpush.bf16.msrb.mxu2 %v7434_v1  ;;  %v7881_v60 = vld [vmem:[%s16255_s1 + $0x988] sm:$0xf]  ;;  %v10354_v55 = vld [vmem:[%s16255_s1 + $0x994] sm:$0xf0]  ;;  %v5217_v1 = vpop.f32.mrf.mxu0 }
 0x1c7   :  { %5462 = vmatpush.bf16.msrb.mxu3 %v7562_v4  ;;  %5424 = vmatmul.bf16.vlgmr.msrb.gmra.mxu0 %v11397_v41  ;;  %v8009_v62 = vld [vmem:[%s16255_s1 + $0xa88] sm:$0xf]  ;;  %v10386_v63 = vld [vmem:[%s16255_s1 + $0xa94] sm:$0xf0]  ;;  %v5218_v4 = vadd.f32 %v5217_v1, %v13744_v5 }
 0x1c8   :  { %5468 = vmatpush.bf16.msra.mxu0 %v7802_v0  ;;  %5437 = vmatmul.bf16.vlgmr.msrb.gmra.mxu1 %v11401_v44  ;;  %v8137_v2 = vld [vmem:[%s16255_s1 + $0xb88] sm:$0xf]  ;;  %v10418_v3 = vld [vmem:[%s16255_s1 + $0xb94] sm:$0xf0]  ;;  %v7754_v0 = vor.u32 %v10322_v59, %v7753_v32  ;;  %v8010_v9 = vor.u32 %v10386_v63, %v8009_v62 }
 0x1c9   :  { %5481 = vmatpush.bf16.msra.mxu1 %v7930_v6  ;;  %5450 = vmatmul.bf16.vlgmr.msrb.gmra.mxu2 %v11389_v38  ;;  %v5230_v6 = vpop.f32.mrf.mxu1  ;;  %v7737_v10 = vld [vmem:[%s16255_s1 + $0x868] sm:$0xf]  ;;  %v10318_v13 = vld [vmem:[%s16255_s1 + $0x874] sm:$0xf0]  ;;  %v8138_v5 = vor.u32 %v10418_v3, %v8137_v2 }
 0x1ca   :  { %5494 = vmatpush.bf16.msra.mxu2 %v8058_v8  ;;  %5463 = vmatmul.bf16.vlgmr.msrb.gmra.mxu3 %v11399_v42  ;;  %v7882_v8 = vor.u32 %v10354_v55, %v7881_v60  ;;  %v5231_v17 = vadd.f32 %v5230_v6, %v5218_v4  ;;  %v10350_v21 = vld [vmem:[%s16255_s1 + $0x974] sm:$0xf0]  ;;  %v7993_v14 = vld [vmem:[%s16255_s1 + $0xa68] sm:$0xf] }
 0x1cb   :  { %5507 = vmatpush.bf16.msra.mxu3 %v8186_v53  ;;  %v7865_v53 = vld [vmem:[%s16255_s1 + $0x968] sm:$0xf]  ;;  %v10382_v24 = vld [vmem:[%s16255_s1 + $0xa74] sm:$0xf0] }
 0x1cc   :  { %5469 = vmatpush.bf16.msra.mxu0 %v7786_v27  ;;  %v8121_v26 = vld [vmem:[%s16255_s1 + $0xb68] sm:$0xf]  ;;  %v10414_v27 = vld [vmem:[%s16255_s1 + $0xb74] sm:$0xf0]  ;;  %v7994_v36 = vor.u32 %v10382_v24, %v7993_v14  ;;  %v5243_v39 = vpop.f32.mrf.mxu2 }
 0x1cd   :  { %5482 = vmatpush.bf16.msra.mxu1 %v7914_v34  ;;  %v7738_v34 = vor.u32 %v10318_v13, %v7737_v10  ;;  %v7721_v40 = vld [vmem:[%s16255_s1 + $0x848] sm:$0xf]  ;;  %v10314_v43 = vld [vmem:[%s16255_s1 + $0x854] sm:$0xf0]  ;;  %v8122_v48 = vor.u32 %v10414_v27, %v8121_v26 }
 0x1ce   :  { %5495 = vmatpush.bf16.msra.mxu2 %v8042_v15  ;;  %v7866_v15 = vor.u32 %v10350_v21, %v7865_v53  ;;  %v10346_v50 = vld [vmem:[%s16255_s1 + $0x954] sm:$0xf0]  ;;  %v7977_v51 = vld [vmem:[%s16255_s1 + $0xa48] sm:$0xf]  ;;  %v5219_v59 = vpop.f32.mrf.mxu0  ;;  %v7722_v60 = vor.u32 %v10314_v43, %v7721_v40 }
 0x1cf   :  { %5508 = vmatpush.bf16.msra.mxu3 %v8170_v47  ;;  %v7849_v47 = vld [vmem:[%s16255_s1 + $0x948] sm:$0xf]  ;;  %v10378_v54 = vld [vmem:[%s16255_s1 + $0xa54] sm:$0xf0] }
 0x1d0   :  { %5470 = vmatpush.bf16.msra.mxu0 %v7770_v56  ;;  %v5244_v56 = vadd.f32 %v5243_v39, %v5231_v17  ;;  %v10410_v32 = vld [vmem:[%s16255_s1 + $0xb54] sm:$0xf0]  ;;  %v7850_v62 = vor.u32 %v10346_v50, %v7849_v47  ;;  %v7978_v63 = vor.u32 %v10378_v54, %v7977_v51  ;;  %v7705_v1 = vld [vmem:[%s16255_s1 + $0x828] sm:$0xf] }
 0x1d1   :  { %5483 = vmatpush.bf16.msra.mxu1 %v7898_v57  ;;  %v5256_v57 = vpop.f32.mrf.mxu3  ;;  %v10310_v2 = vld [vmem:[%s16255_s1 + $0x834] sm:$0xf0]  ;;  %v7833_v3 = vld [vmem:[%s16255_s1 + $0x928] sm:$0xf] }
 0x1d2   :  { %5496 = vmatpush.bf16.msra.mxu2 %v8026_v58  ;;  %v8105_v58 = vld [vmem:[%s16255_s1 + $0xb48] sm:$0xf]  ;;  %v13943_v55 = vadd.f32 %v5256_v57, %v5244_v56  ;;  %v10406_v10 = vld [vmem:[%s16255_s1 + $0xb34] sm:$0xf0]  ;;  %v7706_v13 = vor.u32 %v10310_v2, %v7705_v1 }
 0x1d3   :  { %5509 = vmatpush.bf16.msra.mxu3 %v8154_v61  ;;  %v5232_v61 = vpop.f32.mrf.mxu1  ;;  %v8106_v4 = vor.u32 %v10410_v32, %v8105_v58  ;;  %v7961_v6 = vld [vmem:[%s16255_s1 + $0xa28] sm:$0xf]  ;;  %v10338_v24 = vld [vmem:[%s16255_s1 + $0x914] sm:$0xf0] }
 0x1d4   :  { %5471 = vmatpush.bf16.msra.mxu0 %v7754_v0  ;;  %v10342_v0 = vld [vmem:[%s16255_s1 + $0x934] sm:$0xf0]  ;;  %v7689_v53 = vld [vmem:[%s16255_s1 + $0x808] sm:$0xf]  ;;  %v5245_v40 = vpop.f32.mrf.mxu2 }
 0x1d5   :  { %5484 = vmatpush.bf16.msra.mxu1 %v7882_v8  ;;  %v10374_v8 = vld [vmem:[%s16255_s1 + $0xa34] sm:$0xf0]  ;;  %v7834_v17 = vor.u32 %v10342_v0, %v7833_v3  ;;  %v7817_v14 = vld [vmem:[%s16255_s1 + $0x908] sm:$0xf] }
 0x1d6   :  { %5497 = vmatpush.bf16.msra.mxu2 %v8010_v9  ;;  %v8089_v9 = vld [vmem:[%s16255_s1 + $0xb28] sm:$0xf]  ;;  %v7962_v21 = vor.u32 %v10374_v8, %v7961_v6  ;;  %v10462_v47 = vld [vmem:[%s16255_s1 + $0xcf4] sm:$0xf0]  ;;  %v7818_v57 = vor.u32 %v10338_v24, %v7817_v14 }
 0x1d7   :  { %5510 = vmatpush.bf16.msra.mxu3 %v8138_v5  ;;  %v10306_v5 = vld [vmem:[%s16255_s1 + $0x814] sm:$0xf0]  ;;  %v7945_v26 = vld [vmem:[%s16255_s1 + $0xa08] sm:$0xf]  ;;  %v8090_v27 = vor.u32 %v10406_v10, %v8089_v9 }
 0x1d8   :  { %5472 = vmatpush.bf16.msra.mxu0 %v7738_v34  ;;  %v10370_v34 = vld [vmem:[%s16255_s1 + $0xa14] sm:$0xf0]  ;;  %v8313_v43 = vld [vmem:[%s16255_s1 + $0xce8] sm:$0xf]  ;;  %v7690_v50 = vor.u32 %v10306_v5, %v7689_v53 }
 0x1d9   :  { %5485 = vmatpush.bf16.msra.mxu1 %v7866_v15  ;;  %v8073_v15 = vld [vmem:[%s16255_s1 + $0xb08] sm:$0xf]  ;;  %v5258_v39 = vpop.f32.mrf.mxu3  ;;  %v10494_v51 = vld [vmem:[%s16255_s1 + $0xdf4] sm:$0xf0]  ;;  %v7946_v58 = vor.u32 %v10370_v34, %v7945_v26  ;;  %v8314_v61 = vor.u32 %v10462_v47, %v8313_v43 }
 0x1da   :  { %5498 = vmatpush.bf16.msra.mxu2 %v7994_v36  ;;  %v10402_v36 = vld [vmem:[%s16255_s1 + $0xb14] sm:$0xf0]  ;;  %v8569_v54 = vld [vmem:[%s16255_s1 + $0xee8] sm:$0xf] }
 0x1db   :  { %5511 = vmatpush.bf16.msra.mxu3 %v8122_v48  ;;  %v8441_v48 = vld [vmem:[%s16255_s1 + $0xde8] sm:$0xf]  ;;  %v10526_v56 = vld [vmem:[%s16255_s1 + $0xef4] sm:$0xf0] }
 0x1dc   :  { %5473 = vmatpush.bf16.msra.mxu0 %v7722_v60  ;;  %v8697_v32 = vld [vmem:[%s16255_s1 + $0xfe8] sm:$0xf]  ;;  %v10558_v59 = vld [vmem:[%s16255_s1 + $0xff4] sm:$0xf0]  ;;  %v8074_v60 = vor.u32 %v10402_v36, %v8073_v15 }
 0x1dd   :  { %5486 = vmatpush.bf16.msra.mxu1 %v7850_v62  ;;  %v8442_v62 = vor.u32 %v10494_v51, %v8441_v48  ;;  %v8297_v1 = vld [vmem:[%s16255_s1 + $0xcc8] sm:$0xf]  ;;  %v10458_v2 = vld [vmem:[%s16255_s1 + $0xcd4] sm:$0xf0] }
 0x1de   :  { %5499 = vmatpush.bf16.msra.mxu2 %v7978_v63  ;;  %v8570_v63 = vor.u32 %v10526_v56, %v8569_v54  ;;  %v8425_v3 = vld [vmem:[%s16255_s1 + $0xdc8] sm:$0xf]  ;;  %v10490_v0 = vld [vmem:[%s16255_s1 + $0xdd4] sm:$0xf0] }
 0x1df   :  { %5512 = vmatpush.bf16.msra.mxu3 %v8106_v4  ;;  %v8698_v4 = vor.u32 %v10558_v59, %v8697_v32  ;;  %v8553_v6 = vld [vmem:[%s16255_s1 + $0xec8] sm:$0xf]  ;;  %v10522_v8 = vld [vmem:[%s16255_s1 + $0xed4] sm:$0xf0]  ;;  %v8426_v53 = vor.u32 %v10490_v0, %v8425_v3 }
 0x1e0   :  { %5474 = vmatpush.bf16.msra.mxu0 %v7706_v13  ;;  %v8681_v9 = vld [vmem:[%s16255_s1 + $0xfc8] sm:$0xf]  ;;  %v10554_v10 = vld [vmem:[%s16255_s1 + $0xfd4] sm:$0xf0]  ;;  %v8298_v13 = vor.u32 %v10458_v2, %v8297_v1  ;;  %v8554_v5 = vor.u32 %v10522_v8, %v8553_v6 }
 0x1e1   :  { %5487 = vmatpush.bf16.msra.mxu1 %v7834_v17  ;;  %v8281_v17 = vld [vmem:[%s16255_s1 + $0xca8] sm:$0xf]  ;;  %v8682_v24 = vor.u32 %v10554_v10, %v8681_v9  ;;  %v10486_v26 = vld [vmem:[%s16255_s1 + $0xdb4] sm:$0xf0] }
 0x1e2   :  { %5500 = vmatpush.bf16.msra.mxu2 %v7962_v21  ;;  %v10454_v21 = vld [vmem:[%s16255_s1 + $0xcb4] sm:$0xf0]  ;;  %v8409_v14 = vld [vmem:[%s16255_s1 + $0xda8] sm:$0xf] }
 0x1e3   :  { %5513 = vmatpush.bf16.msra.mxu3 %v8090_v27  ;;  %v8537_v27 = vld [vmem:[%s16255_s1 + $0xea8] sm:$0xf]  ;;  %v10518_v34 = vld [vmem:[%s16255_s1 + $0xeb4] sm:$0xf0]  ;;  %v8282_v40 = vor.u32 %v10454_v21, %v8281_v17  ;;  %v8410_v43 = vor.u32 %v10486_v26, %v8409_v14 }
 0x1e4   :  { %5475 = vmatpush.bf16.msra.mxu0 %v7690_v50  ;;  %v8665_v15 = vld [vmem:[%s16255_s1 + $0xfa8] sm:$0xf]  ;;  %v10550_v36 = vld [vmem:[%s16255_s1 + $0xfb4] sm:$0xf0]  ;;  %v8538_v47 = vor.u32 %v10518_v34, %v8537_v27 }
 0x1e5   :  { %5488 = vmatpush.bf16.msra.mxu1 %v7818_v57  ;;  %v8265_v48 = vld [vmem:[%s16255_s1 + $0xc88] sm:$0xf]  ;;  %v10450_v39 = vld [vmem:[%s16255_s1 + $0xc94] sm:$0xf0]  ;;  %v8666_v51 = vor.u32 %v10550_v36, %v8665_v15 }
 0x1e6   :  { %5501 = vmatpush.bf16.msra.mxu2 %v7946_v58  ;;  %v8393_v50 = vld [vmem:[%s16255_s1 + $0xd88] sm:$0xf]  ;;  %v10482_v54 = vld [vmem:[%s16255_s1 + $0xd94] sm:$0xf0]  ;;  %v5269_v58 = vpop.f32.mrf.mxu0 }
 0x1e7   :  { %5514 = vmatpush.bf16.msra.mxu3 %v8074_v60  ;;  %5476 = vmatmul.bf16.vlgmr.msra.gmra.mxu0 %v11590_v25  ;;  %v8521_v56 = vld [vmem:[%s16255_s1 + $0xe88] sm:$0xf]  ;;  %v10514_v57 = vld [vmem:[%s16255_s1 + $0xe94] sm:$0xf0]  ;;  %v5270_v60 = vadd.f32 %v5269_v58, %v13943_v55 }
 0x1e8   :  { %5520 = vmatpush.bf16.msrb.mxu0 %v8314_v61  ;;  %5489 = vmatmul.bf16.vlgmr.msra.gmra.mxu1 %v11603_v30  ;;  %v8649_v32 = vld [vmem:[%s16255_s1 + $0xf88] sm:$0xf]  ;;  %v10546_v59 = vld [vmem:[%s16255_s1 + $0xf94] sm:$0xf0]  ;;  %v8266_v61 = vor.u32 %v10450_v39, %v8265_v48  ;;  %v8522_v1 = vor.u32 %v10514_v57, %v8521_v56 }
 0x1e9   :  { %5533 = vmatpush.bf16.msrb.mxu1 %v8442_v62  ;;  %5502 = vmatmul.bf16.vlgmr.msra.gmra.mxu2 %v11601_v29  ;;  %v5282_v62 = vpop.f32.mrf.mxu1  ;;  %v8249_v2 = vld [vmem:[%s16255_s1 + $0xc68] sm:$0xf]  ;;  %v10446_v3 = vld [vmem:[%s16255_s1 + $0xc74] sm:$0xf0]  ;;  %v8650_v55 = vor.u32 %v10546_v59, %v8649_v32 }
 0x1ea   :  { %5546 = vmatpush.bf16.msrb.mxu2 %v8570_v63  ;;  %5515 = vmatmul.bf16.vlgmr.msra.gmra.mxu3 %v11611_v33  ;;  %v8394_v63 = vor.u32 %v10482_v54, %v8393_v50  ;;  %v5283_v0 = vadd.f32 %v5282_v62, %v5270_v60  ;;  %v10478_v6 = vld [vmem:[%s16255_s1 + $0xd74] sm:$0xf0]  ;;  %v8505_v8 = vld [vmem:[%s16255_s1 + $0xe68] sm:$0xf] }
 0x1eb   :  { %5559 = vmatpush.bf16.msrb.mxu3 %v8698_v4  ;;  %v8377_v4 = vld [vmem:[%s16255_s1 + $0xd68] sm:$0xf]  ;;  %v10510_v9 = vld [vmem:[%s16255_s1 + $0xe74] sm:$0xf0] }
 0x1ec   :  { %5521 = vmatpush.bf16.msrb.mxu0 %v8298_v13  ;;  %v8633_v10 = vld [vmem:[%s16255_s1 + $0xf68] sm:$0xf]  ;;  %v10542_v13 = vld [vmem:[%s16255_s1 + $0xf74] sm:$0xf0]  ;;  %v8506_v17 = vor.u32 %v10510_v9, %v8505_v8  ;;  %v5295_v27 = vpop.f32.mrf.mxu2 }
 0x1ed   :  { %5534 = vmatpush.bf16.msrb.mxu1 %v8426_v53  ;;  %v8250_v53 = vor.u32 %v10446_v3, %v8249_v2  ;;  %v8233_v21 = vld [vmem:[%s16255_s1 + $0xc48] sm:$0xf]  ;;  %v10442_v14 = vld [vmem:[%s16255_s1 + $0xc54] sm:$0xf0]  ;;  %v8634_v26 = vor.u32 %v10542_v13, %v8633_v10 }
 0x1ee   :  { %5547 = vmatpush.bf16.msrb.mxu2 %v8554_v5  ;;  %v8378_v5 = vor.u32 %v10478_v6, %v8377_v4  ;;  %v10474_v34 = vld [vmem:[%s16255_s1 + $0xd54] sm:$0xf0]  ;;  %v8489_v15 = vld [vmem:[%s16255_s1 + $0xe48] sm:$0xf]  ;;  %v5271_v39 = vpop.f32.mrf.mxu0  ;;  %v8234_v50 = vor.u32 %v10442_v14, %v8233_v21 }
 0x1ef   :  { %5560 = vmatpush.bf16.msrb.mxu3 %v8682_v24  ;;  %v8361_v24 = vld [vmem:[%s16255_s1 + $0xd48] sm:$0xf]  ;;  %v10506_v36 = vld [vmem:[%s16255_s1 + $0xe54] sm:$0xf0] }
 0x1f0   :  { %5522 = vmatpush.bf16.msrb.mxu0 %v8282_v40  ;;  %v5296_v40 = vadd.f32 %v5295_v27, %v5283_v0  ;;  %v10538_v48 = vld [vmem:[%s16255_s1 + $0xf54] sm:$0xf0]  ;;  %v8362_v56 = vor.u32 %v10474_v34, %v8361_v24  ;;  %v8490_v57 = vor.u32 %v10506_v36, %v8489_v15  ;;  %v8217_v58 = vld [vmem:[%s16255_s1 + $0xc28] sm:$0xf] }
 0x1f1   :  { %5535 = vmatpush.bf16.msrb.mxu1 %v8410_v43  ;;  %v5308_v43 = vpop.f32.mrf.mxu3  ;;  %v10438_v32 = vld [vmem:[%s16255_s1 + $0xc34] sm:$0xf0]  ;;  %v8345_v59 = vld [vmem:[%s16255_s1 + $0xd28] sm:$0xf] }
 0x1f2   :  { %5548 = vmatpush.bf16.msrb.mxu2 %v8538_v47  ;;  %v8617_v47 = vld [vmem:[%s16255_s1 + $0xf48] sm:$0xf]  ;;  %v14142_v54 = vadd.f32 %v5308_v43, %v5296_v40  ;;  %v10534_v2 = vld [vmem:[%s16255_s1 + $0xf34] sm:$0xf0]  ;;  %v8218_v3 = vor.u32 %v10438_v32, %v8217_v58 }
 0x1f3   :  { %5561 = vmatpush.bf16.msrb.mxu3 %v8666_v51  ;;  %v5284_v51 = vpop.f32.mrf.mxu1  ;;  %v8618_v60 = vor.u32 %v10538_v48, %v8617_v47  ;;  %v8473_v62 = vld [vmem:[%s16255_s1 + $0xe28] sm:$0xf]  ;;  %v10466_v9 = vld [vmem:[%s16255_s1 + $0xd14] sm:$0xf0] }
 0x1f4   :  { %5523 = vmatpush.bf16.msrb.mxu0 %v8266_v61  ;;  %v10470_v61 = vld [vmem:[%s16255_s1 + $0xd34] sm:$0xf0]  ;;  %v8201_v4 = vld [vmem:[%s16255_s1 + $0xc08] sm:$0xf]  ;;  %v5297_v21 = vpop.f32.mrf.mxu2 }
 0x1f5   :  { %5536 = vmatpush.bf16.msrb.mxu1 %v8394_v63  ;;  %v10502_v63 = vld [vmem:[%s16255_s1 + $0xe34] sm:$0xf0]  ;;  %v8346_v0 = vor.u32 %v10470_v61, %v8345_v59  ;;  %v8329_v8 = vld [vmem:[%s16255_s1 + $0xd08] sm:$0xf] }
 0x1f6   :  { %5549 = vmatpush.bf16.msrb.mxu2 %v8522_v1  ;;  %v8601_v1 = vld [vmem:[%s16255_s1 + $0xf28] sm:$0xf]  ;;  %v8474_v6 = vor.u32 %v10502_v63, %v8473_v62  ;;  %v10590_v24 = vld [vmem:[%s16255_s1 + $0x10f4] sm:$0xf0]  ;;  %v8330_v43 = vor.u32 %v10466_v9, %v8329_v8 }
 0x1f7   :  { %5562 = vmatpush.bf16.msrb.mxu3 %v8650_v55  ;;  %v10434_v55 = vld [vmem:[%s16255_s1 + $0xc14] sm:$0xf0]  ;;  %v8457_v10 = vld [vmem:[%s16255_s1 + $0xe08] sm:$0xf]  ;;  %v8602_v13 = vor.u32 %v10534_v2, %v8601_v1 }
 0x1f8   :  { %5524 = vmatpush.bf16.msrb.mxu0 %v8250_v53  ;;  %v10498_v53 = vld [vmem:[%s16255_s1 + $0xe14] sm:$0xf0]  ;;  %v8825_v14 = vld [vmem:[%s16255_s1 + $0x10e8] sm:$0xf]  ;;  %v8202_v34 = vor.u32 %v10434_v55, %v8201_v4 }
 0x1f9   :  { %5537 = vmatpush.bf16.msrb.mxu1 %v8378_v5  ;;  %v8585_v5 = vld [vmem:[%s16255_s1 + $0xf08] sm:$0xf]  ;;  %v5310_v27 = vpop.f32.mrf.mxu3  ;;  %v10622_v15 = vld [vmem:[%s16255_s1 + $0x11f4] sm:$0xf0]  ;;  %v8458_v47 = vor.u32 %v10498_v53, %v8457_v10  ;;  %v8826_v51 = vor.u32 %v10590_v24, %v8825_v14 }
 0x1fa   :  { %5550 = vmatpush.bf16.msrb.mxu2 %v8506_v17  ;;  %v10530_v17 = vld [vmem:[%s16255_s1 + $0xf14] sm:$0xf0]  ;;  %v9081_v36 = vld [vmem:[%s16255_s1 + $0x12e8] sm:$0xf] }
 0x1fb   :  { %5563 = vmatpush.bf16.msrb.mxu3 %v8634_v26  ;;  %v8953_v26 = vld [vmem:[%s16255_s1 + $0x11e8] sm:$0xf]  ;;  %v10654_v40 = vld [vmem:[%s16255_s1 + $0x12f4] sm:$0xf0] }
 0x1fc   :  { %5525 = vmatpush.bf16.msrb.mxu0 %v8234_v50  ;;  %v9209_v48 = vld [vmem:[%s16255_s1 + $0x13e8] sm:$0xf]  ;;  %v10686_v39 = vld [vmem:[%s16255_s1 + $0x13f4] sm:$0xf0]  ;;  %v8586_v50 = vor.u32 %v10530_v17, %v8585_v5 }
 0x1fd   :  { %5538 = vmatpush.bf16.msrb.mxu1 %v8362_v56  ;;  %v8954_v56 = vor.u32 %v10622_v15, %v8953_v26  ;;  %v8809_v58 = vld [vmem:[%s16255_s1 + $0x10c8] sm:$0xf]  ;;  %v10586_v32 = vld [vmem:[%s16255_s1 + $0x10d4] sm:$0xf0] }
 0x1fe   :  { %5551 = vmatpush.bf16.msrb.mxu2 %v8490_v57  ;;  %v9082_v57 = vor.u32 %v10654_v40, %v9081_v36  ;;  %v8937_v59 = vld [vmem:[%s16255_s1 + $0x11c8] sm:$0xf]  ;;  %v10618_v61 = vld [vmem:[%s16255_s1 + $0x11d4] sm:$0xf0] }
 0x1ff   :  { %5564 = vmatpush.bf16.msrb.mxu3 %v8618_v60  ;;  %v9210_v60 = vor.u32 %v10686_v39, %v9209_v48  ;;  %v9065_v62 = vld [vmem:[%s16255_s1 + $0x12c8] sm:$0xf]  ;;  %v10650_v63 = vld [vmem:[%s16255_s1 + $0x12d4] sm:$0xf0]  ;;  %v8938_v4 = vor.u32 %v10618_v61, %v8937_v59 }
 0x200   :  { %5526 = vmatpush.bf16.msrb.mxu0 %v8218_v3  ;;  %v9193_v1 = vld [vmem:[%s16255_s1 + $0x13c8] sm:$0xf]  ;;  %v10682_v2 = vld [vmem:[%s16255_s1 + $0x13d4] sm:$0xf0]  ;;  %v8810_v3 = vor.u32 %v10586_v32, %v8809_v58  ;;  %v9066_v55 = vor.u32 %v10650_v63, %v9065_v62 }
 0x201   :  { %5539 = vmatpush.bf16.msrb.mxu1 %v8346_v0  ;;  %v8793_v0 = vld [vmem:[%s16255_s1 + $0x10a8] sm:$0xf]  ;;  %v9194_v9 = vor.u32 %v10682_v2, %v9193_v1  ;;  %v10614_v10 = vld [vmem:[%s16255_s1 + $0x11b4] sm:$0xf0] }
 0x202   :  { %5552 = vmatpush.bf16.msrb.mxu2 %v8474_v6  ;;  %v10582_v6 = vld [vmem:[%s16255_s1 + $0x10b4] sm:$0xf0]  ;;  %v8921_v8 = vld [vmem:[%s16255_s1 + $0x11a8] sm:$0xf] }
 0x203   :  { %5565 = vmatpush.bf16.msrb.mxu3 %v8602_v13  ;;  %v9049_v13 = vld [vmem:[%s16255_s1 + $0x12a8] sm:$0xf]  ;;  %v10646_v53 = vld [vmem:[%s16255_s1 + $0x12b4] sm:$0xf0]  ;;  %v8794_v21 = vor.u32 %v10582_v6, %v8793_v0  ;;  %v8922_v14 = vor.u32 %v10614_v10, %v8921_v8 }
 0x204   :  { %5527 = vmatpush.bf16.msrb.mxu0 %v8202_v34  ;;  %v9177_v5 = vld [vmem:[%s16255_s1 + $0x13a8] sm:$0xf]  ;;  %v10678_v17 = vld [vmem:[%s16255_s1 + $0x13b4] sm:$0xf0]  ;;  %v9050_v24 = vor.u32 %v10646_v53, %v9049_v13 }
 0x205   :  { %5540 = vmatpush.bf16.msrb.mxu1 %v8330_v43  ;;  %v8777_v26 = vld [vmem:[%s16255_s1 + $0x1088] sm:$0xf]  ;;  %v10578_v27 = vld [vmem:[%s16255_s1 + $0x1094] sm:$0xf0]  ;;  %v9178_v15 = vor.u32 %v10678_v17, %v9177_v5 }
 0x206   :  { %5553 = vmatpush.bf16.msrb.mxu2 %v8458_v47  ;;  %v8905_v34 = vld [vmem:[%s16255_s1 + $0x1188] sm:$0xf]  ;;  %v10610_v36 = vld [vmem:[%s16255_s1 + $0x1194] sm:$0xf0]  ;;  %v5321_v47 = vpop.f32.mrf.mxu0 }
 0x207   :  { %5566 = vmatpush.bf16.msrb.mxu3 %v8586_v50  ;;  %5528 = vmatmul.bf16.vlgmr.msrb.gmra.mxu0 %v11800_v23  ;;  %v9033_v40 = vld [vmem:[%s16255_s1 + $0x1288] sm:$0xf]  ;;  %v10642_v43 = vld [vmem:[%s16255_s1 + $0x1294] sm:$0xf0]  ;;  %v5322_v50 = vadd.f32 %v5321_v47, %v14142_v54 }
 0x208   :  { %5572 = vmatpush.bf16.msra.mxu0 %v8826_v51  ;;  %5541 = vmatmul.bf16.vlgmr.msrb.gmra.mxu1 %v11813_v31  ;;  %v9161_v48 = vld [vmem:[%s16255_s1 + $0x1388] sm:$0xf]  ;;  %v10674_v39 = vld [vmem:[%s16255_s1 + $0x1394] sm:$0xf0]  ;;  %v8778_v51 = vor.u32 %v10578_v27, %v8777_v26  ;;  %v9034_v58 = vor.u32 %v10642_v43, %v9033_v40 }
 0x209   :  { %5585 = vmatpush.bf16.msra.mxu1 %v8954_v56  ;;  %5554 = vmatmul.bf16.vlgmr.msrb.gmra.mxu2 %v11811_v28  ;;  %v5334_v56 = vpop.f32.mrf.mxu1  ;;  %v8761_v32 = vld [vmem:[%s16255_s1 + $0x1068] sm:$0xf]  ;;  %v10574_v59 = vld [vmem:[%s16255_s1 + $0x1074] sm:$0xf0]  ;;  %v9162_v54 = vor.u32 %v10674_v39, %v9161_v48 }
 0x20a   :  { %5598 = vmatpush.bf16.msra.mxu2 %v9082_v57  ;;  %5567 = vmatmul.bf16.vlgmr.msrb.gmra.mxu3 %v11821_v35  ;;  %v8906_v57 = vor.u32 %v10610_v36, %v8905_v34  ;;  %v5335_v61 = vadd.f32 %v5334_v56, %v5322_v50  ;;  %v10606_v62 = vld [vmem:[%s16255_s1 + $0x1174] sm:$0xf0]  ;;  %v9017_v63 = vld [vmem:[%s16255_s1 + $0x1268] sm:$0xf] }
 0x20b   :  { %5611 = vmatpush.bf16.msra.mxu3 %v9210_v60  ;;  %v8889_v60 = vld [vmem:[%s16255_s1 + $0x1168] sm:$0xf]  ;;  %v10638_v1 = vld [vmem:[%s16255_s1 + $0x1274] sm:$0xf0] }
 0x20c   :  { %5573 = vmatpush.bf16.msra.mxu0 %v8810_v3  ;;  %v9145_v2 = vld [vmem:[%s16255_s1 + $0x1368] sm:$0xf]  ;;  %v10670_v3 = vld [vmem:[%s16255_s1 + $0x1374] sm:$0xf0]  ;;  %v9018_v0 = vor.u32 %v10638_v1, %v9017_v63  ;;  %v5347_v13 = vpop.f32.mrf.mxu2 }
 0x20d   :  { %5586 = vmatpush.bf16.msra.mxu1 %v8938_v4  ;;  %v8762_v4 = vor.u32 %v10574_v59, %v8761_v32  ;;  %v8745_v6 = vld [vmem:[%s16255_s1 + $0x1048] sm:$0xf]  ;;  %v10570_v8 = vld [vmem:[%s16255_s1 + $0x1054] sm:$0xf0]  ;;  %v9146_v10 = vor.u32 %v10670_v3, %v9145_v2 }
 0x20e   :  { %5599 = vmatpush.bf16.msra.mxu2 %v9066_v55  ;;  %v8890_v55 = vor.u32 %v10606_v62, %v8889_v60  ;;  %v10602_v53 = vld [vmem:[%s16255_s1 + $0x1154] sm:$0xf0]  ;;  %v9001_v5 = vld [vmem:[%s16255_s1 + $0x1248] sm:$0xf]  ;;  %v5323_v27 = vpop.f32.mrf.mxu0  ;;  %v8746_v34 = vor.u32 %v10570_v8, %v8745_v6 }
 0x20f   :  { %5612 = vmatpush.bf16.msra.mxu3 %v9194_v9  ;;  %v8873_v9 = vld [vmem:[%s16255_s1 + $0x1148] sm:$0xf]  ;;  %v10634_v17 = vld [vmem:[%s16255_s1 + $0x1254] sm:$0xf0] }
 0x210   :  { %5574 = vmatpush.bf16.msra.mxu0 %v8794_v21  ;;  %v5348_v21 = vadd.f32 %v5347_v13, %v5335_v61  ;;  %v10666_v26 = vld [vmem:[%s16255_s1 + $0x1354] sm:$0xf0]  ;;  %v8874_v40 = vor.u32 %v10602_v53, %v8873_v9  ;;  %v9002_v43 = vor.u32 %v10634_v17, %v9001_v5  ;;  %v8729_v47 = vld [vmem:[%s16255_s1 + $0x1028] sm:$0xf] }
 0x211   :  { %5587 = vmatpush.bf16.msra.mxu1 %v8922_v14  ;;  %v5360_v14 = vpop.f32.mrf.mxu3  ;;  %v10566_v48 = vld [vmem:[%s16255_s1 + $0x1034] sm:$0xf0]  ;;  %v8857_v39 = vld [vmem:[%s16255_s1 + $0x1128] sm:$0xf] }
 0x212   :  { %5600 = vmatpush.bf16.msra.mxu2 %v9050_v24  ;;  %v9129_v24 = vld [vmem:[%s16255_s1 + $0x1348] sm:$0xf]  ;;  %v14341_v36 = vadd.f32 %v5360_v14, %v5348_v21  ;;  %v10662_v32 = vld [vmem:[%s16255_s1 + $0x1334] sm:$0xf0]  ;;  %v8730_v59 = vor.u32 %v10566_v48, %v8729_v47 }
 0x213   :  { %5613 = vmatpush.bf16.msra.mxu3 %v9178_v15  ;;  %v5336_v15 = vpop.f32.mrf.mxu1  ;;  %v9130_v50 = vor.u32 %v10666_v26, %v9129_v24  ;;  %v8985_v56 = vld [vmem:[%s16255_s1 + $0x1228] sm:$0xf]  ;;  %v10594_v1 = vld [vmem:[%s16255_s1 + $0x1114] sm:$0xf0] }
 0x214   :  { %5575 = vmatpush.bf16.msra.mxu0 %v8778_v51  ;;  %v10598_v51 = vld [vmem:[%s16255_s1 + $0x1134] sm:$0xf0]  ;;  %v8713_v60 = vld [vmem:[%s16255_s1 + $0x1008] sm:$0xf]  ;;  %v5349_v6 = vpop.f32.mrf.mxu2 }
 0x215   :  { %5588 = vmatpush.bf16.msra.mxu1 %v8906_v57  ;;  %v10630_v57 = vld [vmem:[%s16255_s1 + $0x1234] sm:$0xf0]  ;;  %v8858_v61 = vor.u32 %v10598_v51, %v8857_v39  ;;  %v8841_v63 = vld [vmem:[%s16255_s1 + $0x1108] sm:$0xf] }
 0x216   :  { %5601 = vmatpush.bf16.msra.mxu2 %v9034_v58  ;;  %v9113_v58 = vld [vmem:[%s16255_s1 + $0x1328] sm:$0xf]  ;;  %v8986_v62 = vor.u32 %v10630_v57, %v8985_v56  ;;  %v10718_v9 = vld [vmem:[%s16255_s1 + $0x14f4] sm:$0xf0]  ;;  %v8842_v14 = vor.u32 %v10594_v1, %v8841_v63 }
 0x217   :  { %5614 = vmatpush.bf16.msra.mxu3 %v9162_v54  ;;  %v10562_v54 = vld [vmem:[%s16255_s1 + $0x1014] sm:$0xf0]  ;;  %v8969_v2 = vld [vmem:[%s16255_s1 + $0x1208] sm:$0xf]  ;;  %v9114_v3 = vor.u32 %v10662_v32, %v9113_v58 }
 0x218   :  { %5576 = vmatpush.bf16.msra.mxu0 %v8762_v4  ;;  %v10626_v4 = vld [vmem:[%s16255_s1 + $0x1214] sm:$0xf0]  ;;  %v9337_v8 = vld [vmem:[%s16255_s1 + $0x14e8] sm:$0xf]  ;;  %v8714_v53 = vor.u32 %v10562_v54, %v8713_v60 }
 0x219   :  { %5589 = vmatpush.bf16.msra.mxu1 %v8890_v55  ;;  %v9097_v55 = vld [vmem:[%s16255_s1 + $0x1308] sm:$0xf]  ;;  %v5362_v13 = vpop.f32.mrf.mxu3  ;;  %v10750_v5 = vld [vmem:[%s16255_s1 + $0x15f4] sm:$0xf0]  ;;  %v8970_v24 = vor.u32 %v10626_v4, %v8969_v2  ;;  %v9338_v15 = vor.u32 %v10718_v9, %v9337_v8 }
 0x21a   :  { %5602 = vmatpush.bf16.msra.mxu2 %v9018_v0  ;;  %v10658_v0 = vld [vmem:[%s16255_s1 + $0x1314] sm:$0xf0]  ;;  %v9593_v17 = vld [vmem:[%s16255_s1 + $0x16e8] sm:$0xf] }
 0x21b   :  { %5615 = vmatpush.bf16.msra.mxu3 %v9146_v10  ;;  %v9465_v10 = vld [vmem:[%s16255_s1 + $0x15e8] sm:$0xf]  ;;  %v10782_v21 = vld [vmem:[%s16255_s1 + $0x16f4] sm:$0xf0] }
 0x21c   :  { %5577 = vmatpush.bf16.msra.mxu0 %v8746_v34  ;;  %v9721_v26 = vld [vmem:[%s16255_s1 + $0x17e8] sm:$0xf]  ;;  %v10814_v27 = vld [vmem:[%s16255_s1 + $0x17f4] sm:$0xf0]  ;;  %v9098_v34 = vor.u32 %v10658_v0, %v9097_v55 }
 0x21d   :  { %5590 = vmatpush.bf16.msra.mxu1 %v8874_v40  ;;  %v9466_v40 = vor.u32 %v10750_v5, %v9465_v10  ;;  %v9321_v47 = vld [vmem:[%s16255_s1 + $0x14c8] sm:$0xf]  ;;  %v10714_v48 = vld [vmem:[%s16255_s1 + $0x14d4] sm:$0xf0]  ;;  %v10897_v5 = vld [vmem:[%s16257_s2] sm:$0xf] }
 0x21e   :  { %5603 = vmatpush.bf16.msra.mxu2 %v9002_v43  ;;  %v9594_v43 = vor.u32 %v10782_v21, %v9593_v17  ;;  %v9449_v39 = vld [vmem:[%s16255_s1 + $0x15c8] sm:$0xf]  ;;  %v10746_v51 = vld [vmem:[%s16255_s1 + $0x15d4] sm:$0xf0]  ;;  %v810_v17 = vperm.slane %v10897_v5, 2 }
 0x21f   :  { %5616 = vmatpush.bf16.msra.mxu3 %v9130_v50  ;;  %v9722_v50 = vor.u32 %v10814_v27, %v9721_v26  ;;  %v9577_v56 = vld [vmem:[%s16255_s1 + $0x16c8] sm:$0xf]  ;;  %v10778_v57 = vld [vmem:[%s16255_s1 + $0x16d4] sm:$0xf0]  ;;  %v9450_v60 = vor.u32 %v10746_v51, %v9449_v39 }
 0x220   :  { %5578 = vmatpush.bf16.msra.mxu0 %v8730_v59  ;;  %v9705_v58 = vld [vmem:[%s16255_s1 + $0x17c8] sm:$0xf]  ;;  %v10810_v32 = vld [vmem:[%s16255_s1 + $0x17d4] sm:$0xf0]  ;;  %v9322_v59 = vor.u32 %v10714_v48, %v9321_v47  ;;  %v9578_v54 = vor.u32 %v10778_v57, %v9577_v56 }
 0x221   :  { %5591 = vmatpush.bf16.msra.mxu1 %v8858_v61  ;;  %v9305_v61 = vld [vmem:[%s16255_s1 + $0x14a8] sm:$0xf]  ;;  %v9706_v1 = vor.u32 %v10810_v32, %v9705_v58  ;;  %v10742_v2 = vld [vmem:[%s16255_s1 + $0x15b4] sm:$0xf0] }
 0x222   :  { %5604 = vmatpush.bf16.msra.mxu2 %v8986_v62  ;;  %v10710_v62 = vld [vmem:[%s16255_s1 + $0x14b4] sm:$0xf0]  ;;  %v9433_v63 = vld [vmem:[%s16255_s1 + $0x15a8] sm:$0xf] }
 0x223   :  { %5617 = vmatpush.bf16.msra.mxu3 %v9114_v3  ;;  %v9561_v3 = vld [vmem:[%s16255_s1 + $0x16a8] sm:$0xf]  ;;  %v10774_v4 = vld [vmem:[%s16255_s1 + $0x16b4] sm:$0xf0]  ;;  %v9306_v6 = vor.u32 %v10710_v62, %v9305_v61  ;;  %v9434_v9 = vor.u32 %v10742_v2, %v9433_v63 }
 0x224   :  { %5579 = vmatpush.bf16.msra.mxu0 %v8714_v53  ;;  %v9689_v55 = vld [vmem:[%s16255_s1 + $0x17a8] sm:$0xf]  ;;  %v10806_v0 = vld [vmem:[%s16255_s1 + $0x17b4] sm:$0xf0]  ;;  %v9562_v10 = vor.u32 %v10774_v4, %v9561_v3 }
 0x225   :  { %5592 = vmatpush.bf16.msra.mxu1 %v8842_v14  ;;  %v9289_v8 = vld [vmem:[%s16255_s1 + $0x1488] sm:$0xf]  ;;  %v10706_v13 = vld [vmem:[%s16255_s1 + $0x1494] sm:$0xf0]  ;;  %v9690_v21 = vor.u32 %v10806_v0, %v9689_v55  ;;  %v5386_v56 = vpop.f32.mrf.mxu1 }
 0x226   :  { %5605 = vmatpush.bf16.msra.mxu2 %v8970_v24  ;;  %v9417_v53 = vld [vmem:[%s16255_s1 + $0x1588] sm:$0xf]  ;;  %v10738_v14 = vld [vmem:[%s16255_s1 + $0x1594] sm:$0xf0] }
 0x227   :  { %5618 = vmatpush.bf16.msra.mxu3 %v9098_v34  ;;  %5580 = vmatmul.bf16.vlgmr.msra.gmra.mxu0 %v12010_v37  ;;  %v9545_v24 = vld [vmem:[%s16255_s1 + $0x1688] sm:$0xf]  ;;  %v10770_v26 = vld [vmem:[%s16255_s1 + $0x1694] sm:$0xf0] }
 0x228   :  { %5624 = vmatpush.bf16.msrb.mxu0 %v9338_v15  ;;  %5593 = vmatmul.bf16.vlgmr.msra.gmra.mxu1 %v12023_v46  ;;  %v9673_v27 = vld [vmem:[%s16255_s1 + $0x1788] sm:$0xf]  ;;  %v10802_v34 = vld [vmem:[%s16255_s1 + $0x1794] sm:$0xf0]  ;;  %v9290_v15 = vor.u32 %v10706_v13, %v9289_v8  ;;  %v9546_v47 = vor.u32 %v10770_v26, %v9545_v24 }
 0x229   :  { %5637 = vmatpush.bf16.msrb.mxu1 %v9466_v40  ;;  %5606 = vmatmul.bf16.vlgmr.msra.gmra.mxu2 %v12021_v45  ;;  %v5373_v40 = vpop.f32.mrf.mxu0  ;;  %v9273_v48 = vld [vmem:[%s16255_s1 + $0x1468] sm:$0xf]  ;;  %v10702_v39 = vld [vmem:[%s16255_s1 + $0x1474] sm:$0xf0]  ;;  %v9674_v57 = vor.u32 %v10802_v34, %v9673_v27 }
 0x22a   :  { %5650 = vmatpush.bf16.msrb.mxu2 %v9594_v43  ;;  %5619 = vmatmul.bf16.vlgmr.msra.gmra.mxu3 %v12031_v49  ;;  %v9418_v43 = vor.u32 %v10738_v14, %v9417_v53  ;;  %v5374_v51 = vadd.f32 %v5373_v40, %v810_v17  ;;  %v10734_v58 = vld [vmem:[%s16255_s1 + $0x1574] sm:$0xf0]  ;;  %v9529_v32 = vld [vmem:[%s16255_s1 + $0x1668] sm:$0xf]  ;;  %v9274_v62 = vor.u32 %v10702_v39, %v9273_v48 }
 0x22b   :  { %5663 = vmatpush.bf16.msrb.mxu3 %v9722_v50  ;;  %v9401_v50 = vld [vmem:[%s16255_s1 + $0x1568] sm:$0xf]  ;;  %v10698_v3 = vld [vmem:[%s16255_s1 + $0x1454] sm:$0xf0] }
 0x22c   :  { %5625 = vmatpush.bf16.msrb.mxu0 %v9322_v59  ;;  %v10766_v59 = vld [vmem:[%s16255_s1 + $0x1674] sm:$0xf0]  ;;  %v5387_v61 = vadd.f32 %v5386_v56, %v5374_v51  ;;  %v9402_v63 = vor.u32 %v10734_v58, %v9401_v50  ;;  %v9257_v2 = vld [vmem:[%s16255_s1 + $0x1448] sm:$0xf]  ;;  %v5399_v55 = vpop.f32.mrf.mxu2 }
 0x22d   :  { %5638 = vmatpush.bf16.msrb.mxu1 %v9450_v60  ;;  %v9657_v60 = vld [vmem:[%s16255_s1 + $0x1768] sm:$0xf]  ;;  %v5412_v13 = vpop.f32.mrf.mxu3  ;;  %v10794_v5 = vld [vmem:[%s16255_s1 + $0x1754] sm:$0xf0]  ;;  %v9258_v17 = vor.u32 %v10698_v3, %v9257_v2  ;;  %v5388_v40 = vpop.f32.mrf.mxu1 }
 0x22e   :  { %5651 = vmatpush.bf16.msrb.mxu2 %v9578_v54  ;;  %v10798_v54 = vld [vmem:[%s16255_s1 + $0x1774] sm:$0xf0]  ;;  %v9385_v4 = vld [vmem:[%s16255_s1 + $0x1548] sm:$0xf]  ;;  %v6763_v40 = vld [vmem:[%s16255_s1 + $0xd8] sm:$0xf0] }
 0x22f   :  { %5664 = vmatpush.bf16.msrb.mxu3 %v9706_v1  ;;  %v9530_v1 = vor.u32 %v10766_v59, %v9529_v32  ;;  %v9658_v0 = vor.u32 %v10798_v54, %v9657_v60  ;;  %v9513_v8 = vld [vmem:[%s16255_s1 + $0x1648] sm:$0xf]  ;;  %v10694_v34 = vld [vmem:[%s16255_s1 + $0x1434] sm:$0xf0] }
 0x230   :  { %5626 = vmatpush.bf16.msrb.mxu0 %v9306_v6  ;;  %v10730_v6 = vld [vmem:[%s16255_s1 + $0x1554] sm:$0xf0]  ;;  %v9641_v53 = vld [vmem:[%s16255_s1 + $0x1748] sm:$0xf] }
 0x231   :  { %5639 = vmatpush.bf16.msrb.mxu1 %v9434_v9  ;;  %v10762_v9 = vld [vmem:[%s16255_s1 + $0x1654] sm:$0xf0]  ;;  %v5375_v14 = vpop.f32.mrf.mxu0  ;;  %v9386_v24 = vor.u32 %v10730_v6, %v9385_v4  ;;  %v9241_v27 = vld [vmem:[%s16255_s1 + $0x1428] sm:$0xf]  ;;  %v10108_v6 = vld [vmem:[%s16255_s1 + $0x1ec] sm:$0xf] }
 0x232   :  { %5652 = vmatpush.bf16.msrb.mxu2 %v9562_v10  ;;  %v5400_v10 = vadd.f32 %v5399_v55, %v5387_v61  ;;  %v9514_v26 = vor.u32 %v10762_v9, %v9513_v8  ;;  %v9497_v48 = vld [vmem:[%s16255_s1 + $0x1628] sm:$0xf]  ;;  %v10758_v39 = vld [vmem:[%s16255_s1 + $0x1634] sm:$0xf0]  ;;  %v9242_v56 = vor.u32 %v10694_v34, %v9241_v27  ;;  %v10076_v55 = vld [vmem:[%s16255_s1 + $0xec] sm:$0xf] }
 0x233   :  { %5665 = vmatpush.bf16.msrb.mxu3 %v9690_v21  ;;  %v9625_v50 = vld [vmem:[%s16255_s1 + $0x1728] sm:$0xf]  ;;  %v10790_v51 = vld [vmem:[%s16255_s1 + $0x1734] sm:$0xf0]  ;;  %v9498_v59 = vor.u32 %v10758_v39, %v9497_v48  ;;  %v6907_v9 = vld [vmem:[%s16255_s1 + $0x1f8] sm:$0xf0] }
 0x234   :  { %5627 = vmatpush.bf16.msrb.mxu0 %v9290_v15  ;;  %v14542_v21 = vadd.f32 %v5412_v13, %v5400_v10  ;;  %v9369_v15 = vld [vmem:[%s16255_s1 + $0x1528] sm:$0xf]  ;;  %v10690_v58 = vld [vmem:[%s16255_s1 + $0x1414] sm:$0xf0]  ;;  %v10140_v10 = vld [vmem:[%s16255_s1 + $0x2ec] sm:$0xf]  ;;  %v6910_v27 = vor.u32 %v10108_v6, %v6907_v9 }
 0x235   :  { %5640 = vmatpush.bf16.msrb.mxu1 %v9418_v43  ;;  %v9642_v43 = vor.u32 %v10794_v5, %v9641_v53  ;;  %v9353_v60 = vld [vmem:[%s16255_s1 + $0x1508] sm:$0xf]  ;;  %v10722_v54 = vld [vmem:[%s16255_s1 + $0x1514] sm:$0xf0]  ;;  %v5414_v4 = vpop.f32.mrf.mxu3  ;;  %v7035_v13 = vld [vmem:[%s16255_s1 + $0x2f8] sm:$0xf0] }
 0x236   :  { %5653 = vmatpush.bf16.msrb.mxu2 %v9546_v47  ;;  %v10726_v47 = vld [vmem:[%s16255_s1 + $0x1534] sm:$0xf0]  ;;  %v9481_v61 = vld [vmem:[%s16255_s1 + $0x1608] sm:$0xf]  ;;  %v9354_v53 = vor.u32 %v10722_v54, %v9353_v60  ;;  %v7163_v14 = vld [vmem:[%s16255_s1 + $0x3f8] sm:$0xf0]  ;;  %v7038_v34 = vor.u32 %v10140_v10, %v7035_v13 }
 0x237   :  { %5666 = vmatpush.bf16.msrb.mxu3 %v9674_v57  ;;  %v9225_v57 = vld [vmem:[%s16255_s1 + $0x1408] sm:$0xf]  ;;  %v9370_v32 = vor.u32 %v10726_v47, %v9369_v15  ;;  %v10786_v3 = vld [vmem:[%s16255_s1 + $0x1714] sm:$0xf0]  ;;  %v10072_v15 = vld [vmem:[%s16255_s1 + $0xcc] sm:$0xf] }
 0x238   :  { %5628 = vmatpush.bf16.msrb.mxu0 %v9274_v62  ;;  %v5401_v62 = vpop.f32.mrf.mxu2  ;;  %v9609_v2 = vld [vmem:[%s16255_s1 + $0x1708] sm:$0xf]  ;;  %v9226_v8 = vor.u32 %v10690_v58, %v9225_v57  ;;  %v6891_v48 = vld [vmem:[%s16255_s1 + $0x1d8] sm:$0xf0]  ;;  %v10136_v39 = vld [vmem:[%s16255_s1 + $0x2cc] sm:$0xf]  ;;  %v6766_v57 = vor.u32 %v10072_v15, %v6763_v40 }
 0x239   :  { %5641 = vmatpush.bf16.msrb.mxu1 %v9402_v63  ;;  %v9626_v63 = vor.u32 %v10790_v51, %v9625_v50  ;;  %v7019_v50 = vld [vmem:[%s16255_s1 + $0x2d8] sm:$0xf0]  ;;  %v10168_v51 = vld [vmem:[%s16255_s1 + $0x3cc] sm:$0xf] }
 0x23a   :  { %5654 = vmatpush.bf16.msrb.mxu2 %v9530_v1  ;;  %v10754_v1 = vld [vmem:[%s16255_s1 + $0x1614] sm:$0xf0]  ;;  %v6747_v60 = vld [vmem:[%s16255_s1 + $0xb8] sm:$0xf0]  ;;  %v10100_v54 = vld [vmem:[%s16255_s1 + $0x1ac] sm:$0xf] }
 0x23b   :  { %5667 = vmatpush.bf16.msrb.mxu3 %v9658_v0  ;;  %v6779_v0 = vld [vmem:[%s16255_s1 + $0xf8] sm:$0xf0]  ;;  %v9482_v5 = vor.u32 %v10754_v1, %v9481_v61  ;;  %v10064_v6 = vld [vmem:[%s16255_s1 + $0x8c] sm:$0xf] }
 0x23c   :  { %5629 = vmatpush.bf16.msrb.mxu0 %v9258_v17  ;;  %v10172_v17 = vld [vmem:[%s16255_s1 + $0x3ec] sm:$0xf]  ;;  %v6875_v62 = vld [vmem:[%s16255_s1 + $0x1b8] sm:$0xf0] }
 0x23d   :  { %5642 = vmatpush.bf16.msrb.mxu1 %v9386_v24  ;;  %v9610_v24 = vor.u32 %v10786_v3, %v9609_v2  ;;  %v7166_v47 = vor.u32 %v10172_v17, %v7163_v14  ;;  %v7003_v1 = vld [vmem:[%s16255_s1 + $0x2b8] sm:$0xf0]  ;;  %v10164_v2 = vld [vmem:[%s16255_s1 + $0x3ac] sm:$0xf] }
 0x23e   :  { %5655 = vmatpush.bf16.msrb.mxu2 %v9514_v26  ;;  %v6782_v26 = vor.u32 %v10076_v55, %v6779_v0  ;;  %v7131_v3 = vld [vmem:[%s16255_s1 + $0x3b8] sm:$0xf0]  ;;  %v6878_v55 = vor.u32 %v10100_v54, %v6875_v62  ;;  %v10096_v9 = vld [vmem:[%s16255_s1 + $0x18c] sm:$0xf] }
 0x23f   :  { %5668 = vmatpush.bf16.msrb.mxu3 %v9642_v43  ;;  %v10104_v43 = vld [vmem:[%s16255_s1 + $0x1cc] sm:$0xf]  ;;  %v7134_v10 = vor.u32 %v10164_v2, %v7131_v3  ;;  %v6859_v13 = vld [vmem:[%s16255_s1 + $0x198] sm:$0xf0] }
 0x240   :  { %5630 = vmatpush.bf16.msrb.mxu0 %v9242_v56  ;;  %v7147_v56 = vld [vmem:[%s16255_s1 + $0x3d8] sm:$0xf0]  ;;  %v6894_v58 = vor.u32 %v10104_v43, %v6891_v48  ;;  %v10160_v17 = vld [vmem:[%s16255_s1 + $0x38c] sm:$0xf] }
 0x241   :  { %5643 = vmatpush.bf16.msrb.mxu1 %v9370_v32  ;;  %v7022_v32 = vor.u32 %v10136_v39, %v7019_v50  ;;  %v7150_v61 = vor.u32 %v10168_v51, %v7147_v56  ;;  %v7115_v14 = vld [vmem:[%s16255_s1 + $0x398] sm:$0xf0]  ;;  %v10060_v15 = vld [vmem:[%s16255_s1 + $0x6c] sm:$0xf] }
 0x242   :  { %5656 = vmatpush.bf16.msrb.mxu2 %v9498_v59  ;;  %v10068_v59 = vld [vmem:[%s16255_s1 + $0xac] sm:$0xf]  ;;  %v6715_v40 = vld [vmem:[%s16255_s1 + $0x78] sm:$0xf0]  ;;  %v7118_v39 = vor.u32 %v10160_v17, %v7115_v14 }
 0x243   :  { %5669 = vmatpush.bf16.msrb.mxu3 %v9626_v63  ;;  %v10132_v63 = vld [vmem:[%s16255_s1 + $0x2ac] sm:$0xf]  ;;  %v6750_v4 = vor.u32 %v10068_v59, %v6747_v60  ;;  %v6843_v50 = vld [vmem:[%s16255_s1 + $0x178] sm:$0xf0] }
 0x244   :  { %5631 = vmatpush.bf16.msrb.mxu0 %v9226_v8  ;;  %v7006_v0 = vor.u32 %v10132_v63, %v7003_v1  ;;  %v6731_v8 = vld [vmem:[%s16255_s1 + $0x98] sm:$0xf0]  ;;  %v10092_v43 = vld [vmem:[%s16255_s1 + $0x16c] sm:$0xf] }
 0x245   :  { %5644 = vmatpush.bf16.msrb.mxu1 %v9354_v53  ;;  %v10128_v53 = vld [vmem:[%s16255_s1 + $0x28c] sm:$0xf]  ;;  %v5438_v48 = vpop.f32.mrf.mxu1  ;;  %v6971_v56 = vld [vmem:[%s16255_s1 + $0x278] sm:$0xf0]  ;;  %v6846_v59 = vor.u32 %v10092_v43, %v6843_v50 }
 0x246   :  { %5657 = vmatpush.bf16.msrb.mxu2 %v9482_v5  ;;  %v6987_v5 = vld [vmem:[%s16255_s1 + $0x298] sm:$0xf0]  ;;  %v10124_v51 = vld [vmem:[%s16255_s1 + $0x26c] sm:$0xf] }
 0x247   :  { %5670 = vmatpush.bf16.msrb.mxu3 %v9610_v24  ;;  %5632 = vmatmul.bf16.vlgmr.msrb.gmra.mxu0 %v12225_v7  ;;  %v6734_v24 = vor.u32 %v10064_v6, %v6731_v8  ;;  %v6974_v60 = vor.u32 %v10124_v51, %v6971_v56  ;;  %v10056_v54 = vld [vmem:[%s16255_s1 + $0x4c] sm:$0xf]  ;;  %v6827_v2 = vld [vmem:[%s16255_s1 + $0x158] sm:$0xf0] }
 0x248   :  { %5676 = vmatpush.bf16.msra.mxu0 %v6782_v26  ;;  %5645 = vmatmul.bf16.vlgmr.msrb.gmra.mxu1 %v12238_v12  ;;  %v5425_v26 = vpop.f32.mrf.mxu0  ;;  %v10088_v62 = vld [vmem:[%s16255_s1 + $0x14c] sm:$0xf]  ;;  %v7083_v8 = vld [vmem:[%s16255_s1 + $0x358] sm:$0xf0] }
 0x249   :  { %5689 = vmatpush.bf16.msra.mxu1 %v6910_v27  ;;  %5658 = vmatmul.bf16.vlgmr.msrb.gmra.mxu2 %v12236_v11  ;;  %v6862_v27 = vor.u32 %v10096_v9, %v6859_v13  ;;  %v10120_v3 = vld [vmem:[%s16255_s1 + $0x24c] sm:$0xf]  ;;  %v6683_v14 = vld [vmem:[%s16255_s1 + $0x38] sm:$0xf0] }
 0x24a   :  { %5702 = vmatpush.bf16.msra.mxu2 %v7038_v34  ;;  %5671 = vmatmul.bf16.vlgmr.msrb.gmra.mxu3 %v12246_v16  ;;  %v6990_v34 = vor.u32 %v10128_v53, %v6987_v5  ;;  %v10152_v6 = vld [vmem:[%s16255_s1 + $0x34c] sm:$0xf]  ;;  %v6830_v53 = vor.u32 %v10088_v62, %v6827_v2  ;;  %v6667_v50 = vld [vmem:[%s16255_s1 + $0x18] sm:$0xf0] }
 0x24b   :  { %5715 = vmatpush.bf16.msra.mxu3 %v7166_v47  ;;  %v5426_v47 = vadd.f32 %v5425_v26, %v14542_v21  ;;  %v7099_v21 = vld [vmem:[%s16255_s1 + $0x378] sm:$0xf0]  ;;  %v10052_v17 = vld [vmem:[%s16255_s1 + $0x2c] sm:$0xf] }
 0x24c   :  { %5677 = vmatpush.bf16.msra.mxu0 %v6766_v57  ;;  %v10156_v57 = vld [vmem:[%s16255_s1 + $0x36c] sm:$0xf]  ;;  %v5451_v63 = vpop.f32.mrf.mxu2 }
 0x24d   :  { %5690 = vmatpush.bf16.msra.mxu1 %v6894_v58  ;;  %v5439_v58 = vadd.f32 %v5438_v48, %v5426_v47  ;;  %v7102_v1 = vor.u32 %v10156_v57, %v7099_v21  ;;  %v5440_v26 = vpop.f32.mrf.mxu1  ;;  %v10148_v43 = vld [vmem:[%s16255_s1 + $0x32c] sm:$0xf]  ;;  %v7067_v47 = vld [vmem:[%s16255_s1 + $0x338] sm:$0xf0]  ;;  %v6686_v48 = vor.u32 %v10052_v17, %v6683_v14 }
 0x24e   :  { %5703 = vmatpush.bf16.msra.mxu2 %v7022_v32  ;;  %v6718_v32 = vor.u32 %v10060_v15, %v6715_v40  ;;  %v10116_v15 = vld [vmem:[%s16255_s1 + $0x22c] sm:$0xf]  ;;  %v6939_v40 = vld [vmem:[%s16255_s1 + $0x238] sm:$0xf0] }
 0x24f   :  { %5716 = vmatpush.bf16.msra.mxu3 %v7150_v61  ;;  %v6699_v61 = vld [vmem:[%s16255_s1 + $0x58] sm:$0xf0]  ;;  %v6942_v56 = vor.u32 %v10116_v15, %v6939_v40  ;;  %v10080_v57 = vld [vmem:[%s16255_s1 + $0x10c] sm:$0xf] }
 0x250   :  { %5678 = vmatpush.bf16.msra.mxu0 %v6750_v4  ;;  %v6955_v4 = vld [vmem:[%s16255_s1 + $0x258] sm:$0xf0]  ;;  %v6702_v9 = vor.u32 %v10056_v54, %v6699_v61  ;;  %v5427_v13 = vpop.f32.mrf.mxu0  ;;  %v10144_v54 = vld [vmem:[%s16255_s1 + $0x30c] sm:$0xf] }
 0x251   :  { %5691 = vmatpush.bf16.msra.mxu1 %v6878_v55  ;;  %v5452_v55 = vadd.f32 %v5451_v63, %v5439_v58  ;;  %v6958_v5 = vor.u32 %v10120_v3, %v6955_v4  ;;  %v6795_v21 = vld [vmem:[%s16255_s1 + $0x118] sm:$0xf0]  ;;  %v10112_v58 = vld [vmem:[%s16255_s1 + $0x20c] sm:$0xf] }
 0x252   :  { %5704 = vmatpush.bf16.msra.mxu2 %v7006_v0  ;;  %v5464_v0 = vpop.f32.mrf.mxu3  ;;  %v7051_v61 = vld [vmem:[%s16255_s1 + $0x318] sm:$0xf0]  ;;  %v10204_v63 = vld [vmem:[%s16255_s1 + $0x4ec] sm:$0xf] }
 0x253   :  { %5717 = vmatpush.bf16.msra.mxu3 %v7134_v10  ;;  %v14741_v10 = vadd.f32 %v5464_v0, %v5452_v55  ;;  %v10236_v2 = vld [vmem:[%s16255_s1 + $0x5ec] sm:$0xf]  ;;  %v7419_v4 = vld [vmem:[%s16255_s1 + $0x5f8] sm:$0xf0] }
 0x254   :  { %5679 = vmatpush.bf16.msra.mxu0 %v6734_v24  ;;  %v10084_v24 = vld [vmem:[%s16255_s1 + $0x12c] sm:$0xf]  ;;  %v7547_v0 = vld [vmem:[%s16255_s1 + $0x6f8] sm:$0xf0]  ;;  %v7422_v17 = vor.u32 %v10236_v2, %v7419_v4 }
 0x255   :  { %5692 = vmatpush.bf16.msra.mxu1 %v6862_v27  ;;  %v7086_v27 = vor.u32 %v10152_v6, %v7083_v8  ;;  %v10268_v55 = vld [vmem:[%s16255_s1 + $0x6ec] sm:$0xf]  ;;  %v6798_v6 = vor.u32 %v10080_v57, %v6795_v21  ;;  %v7675_v13 = vld [vmem:[%s16255_s1 + $0x7f8] sm:$0xf0] }
 0x256   :  { %5705 = vmatpush.bf16.msra.mxu2 %v6990_v34  ;;  %v6811_v34 = vld [vmem:[%s16255_s1 + $0x138] sm:$0xf0]  ;;  %v7550_v14 = vor.u32 %v10268_v55, %v7547_v0  ;;  %v10264_v40 = vld [vmem:[%s16255_s1 + $0x6cc] sm:$0xf] }
 0x257   :  { %5718 = vmatpush.bf16.msra.mxu3 %v7118_v39  ;;  %v10048_v39 = vld [vmem:[%s16255_s1 + $0xc] sm:$0xf]  ;;  %v6814_v51 = vor.u32 %v10084_v24, %v6811_v34  ;;  %v7275_v26 = vld [vmem:[%s16255_s1 + $0x4d8] sm:$0xf0] }
 0x258   :  { %5680 = vmatpush.bf16.msra.mxu0 %v6718_v32  ;;  %v5453_v32 = vpop.f32.mrf.mxu2  ;;  %v6670_v3 = vor.u32 %v10048_v39, %v6667_v50  ;;  %v10200_v24 = vld [vmem:[%s16255_s1 + $0x4cc] sm:$0xf]  ;;  %v7403_v15 = vld [vmem:[%s16255_s1 + $0x5d8] sm:$0xf0] }
 0x259   :  { %5693 = vmatpush.bf16.msra.mxu1 %v6846_v59  ;;  %v7070_v59 = vor.u32 %v10148_v43, %v7067_v47  ;;  %v7531_v43 = vld [vmem:[%s16255_s1 + $0x6d8] sm:$0xf0]  ;;  %v10296_v47 = vld [vmem:[%s16255_s1 + $0x7cc] sm:$0xf]  ;;  %v7278_v39 = vor.u32 %v10200_v24, %v7275_v26 }
 0x25a   :  { %5706 = vmatpush.bf16.msra.mxu2 %v6974_v60  ;;  %v6923_v60 = vld [vmem:[%s16255_s1 + $0x218] sm:$0xf0]  ;;  %v5466_v62 = vpop.f32.mrf.mxu3  ;;  %v10228_v21 = vld [vmem:[%s16255_s1 + $0x5ac] sm:$0xf] }
 0x25b   :  { %5719 = vmatpush.bf16.msra.mxu3 %v7102_v1  ;;  %v7291_v1 = vld [vmem:[%s16255_s1 + $0x4f8] sm:$0xf0]  ;;  %v6926_v8 = vor.u32 %v10112_v58, %v6923_v60  ;;  %v10288_v0 = vld [vmem:[%s16255_s1 + $0x78c] sm:$0xf] }
 0x25c   :  { %5681 = vmatpush.bf16.msra.mxu0 %v6702_v9  ;;  %v10300_v9 = vld [vmem:[%s16255_s1 + $0x7ec] sm:$0xf]  ;;  %v7259_v57 = vld [vmem:[%s16255_s1 + $0x4b8] sm:$0xf0] }
 0x25d   :  { %5694 = vmatpush.bf16.msra.mxu1 %v6830_v53  ;;  %v7054_v53 = vor.u32 %v10144_v54, %v7051_v61  ;;  %v7678_v34 = vor.u32 %v10300_v9, %v7675_v13  ;;  %v7387_v32 = vld [vmem:[%s16255_s1 + $0x5b8] sm:$0xf0]  ;;  %v10292_v54 = vld [vmem:[%s16255_s1 + $0x7ac] sm:$0xf] }
 0x25e   :  { %5707 = vmatpush.bf16.msra.mxu2 %v6958_v5  ;;  %v7294_v5 = vor.u32 %v10204_v63, %v7291_v1  ;;  %v7515_v60 = vld [vmem:[%s16255_s1 + $0x6b8] sm:$0xf0]  ;;  %v7390_v63 = vor.u32 %v10228_v21, %v7387_v32  ;;  %v10192_v1 = vld [vmem:[%s16255_s1 + $0x48c] sm:$0xf] }
 0x25f   :  { %5720 = vmatpush.bf16.msra.mxu3 %v7086_v27  ;;  %v10232_v27 = vld [vmem:[%s16255_s1 + $0x5cc] sm:$0xf]  ;;  %v7643_v61 = vld [vmem:[%s16255_s1 + $0x7b8] sm:$0xf0] }
 0x260   :  { %5682 = vmatpush.bf16.msra.mxu0 %v6686_v48  ;;  %v7659_v48 = vld [vmem:[%s16255_s1 + $0x7d8] sm:$0xf0]  ;;  %v7406_v50 = vor.u32 %v10232_v27, %v7403_v15  ;;  %v10220_v24 = vld [vmem:[%s16255_s1 + $0x56c] sm:$0xf] }
 0x261   :  { %5695 = vmatpush.bf16.msra.mxu1 %v6814_v51  ;;  %v7534_v51 = vor.u32 %v10264_v40, %v7531_v43  ;;  %v7662_v58 = vor.u32 %v10296_v47, %v7659_v48  ;;  %v7243_v2 = vld [vmem:[%s16255_s1 + $0x498] sm:$0xf0]  ;;  %v10284_v40 = vld [vmem:[%s16255_s1 + $0x76c] sm:$0xf] }
 0x262   :  { %5708 = vmatpush.bf16.msra.mxu2 %v6942_v56  ;;  %v10196_v56 = vld [vmem:[%s16255_s1 + $0x4ac] sm:$0xf]  ;;  %v7499_v4 = vld [vmem:[%s16255_s1 + $0x698] sm:$0xf0]  ;;  %v7246_v9 = vor.u32 %v10192_v1, %v7243_v2 }
 0x263   :  { %5721 = vmatpush.bf16.msra.mxu3 %v7070_v59  ;;  %v10260_v59 = vld [vmem:[%s16255_s1 + $0x6ac] sm:$0xf]  ;;  %v7262_v62 = vor.u32 %v10196_v56, %v7259_v57  ;;  %v7355_v27 = vld [vmem:[%s16255_s1 + $0x578] sm:$0xf0] }
 0x264   :  { %5683 = vmatpush.bf16.msra.mxu0 %v6670_v3  ;;  %v10256_v3 = vld [vmem:[%s16255_s1 + $0x68c] sm:$0xf]  ;;  %v5477_v55 = vpop.f32.mrf.mxu0  ;;  %v7483_v15 = vld [vmem:[%s16255_s1 + $0x678] sm:$0xf0]  ;;  %v7358_v48 = vor.u32 %v10220_v24, %v7355_v27 }
 0x265   :  { %5696 = vmatpush.bf16.msra.mxu1 %v6798_v6  ;;  %v7627_v6 = vld [vmem:[%s16255_s1 + $0x798] sm:$0xf0]  ;;  %v5490_v13 = vpop.f32.mrf.mxu1  ;;  %v10216_v56 = vld [vmem:[%s16255_s1 + $0x54c] sm:$0xf] }
 0x266   :  { %5709 = vmatpush.bf16.msra.mxu2 %v6926_v8  ;;  %v5478_v8 = vadd.f32 %v5477_v55, %v14741_v10  ;;  %v7630_v10 = vor.u32 %v10288_v0, %v7627_v6  ;;  %v7611_v43 = vld [vmem:[%s16255_s1 + $0x778] sm:$0xf0]  ;;  %v10248_v32 = vld [vmem:[%s16255_s1 + $0x64c] sm:$0xf] }
 0x267   :  { %5722 = vmatpush.bf16.msra.mxu3 %v7054_v53  ;;  %5684 = vmatmul.bf16.vlgmr.msra.gmra.mxu0 %v11235_v19  ;;  %v10224_v19 = vld [vmem:[%s16255_s1 + $0x58c] sm:$0xf]  ;;  %v7614_v57 = vor.u32 %v10284_v40, %v7611_v43  ;;  %v7323_v0 = vld [vmem:[%s16255_s1 + $0x538] sm:$0xf0] }
 0x268   :  { %5728 = vmatpush.bf16.msrb.mxu0 %v7294_v5  ;;  %5697 = vmatmul.bf16.vlgmr.msra.gmra.mxu1 %v11239_v22  ;;  %v7371_v22 = vld [vmem:[%s16255_s1 + $0x598] sm:$0xf0]  ;;  %v7502_v5 = vor.u32 %v10256_v3, %v7499_v4  ;;  %v5491_v26 = vadd.f32 %v5490_v13, %v5478_v8  ;;  %v10212_v4 = vld [vmem:[%s16255_s1 + $0x52c] sm:$0xf] }
 0x269   :  { %5741 = vmatpush.bf16.msrb.mxu1 %v7422_v17  ;;  %5710 = vmatmul.bf16.vlgmr.msra.gmra.mxu2 %v11233_v18  ;;  %v7518_v18 = vor.u32 %v10260_v59, %v7515_v60  ;;  %v7374_v53 = vor.u32 %v10224_v19, %v7371_v22  ;;  %v10188_v17 = vld [vmem:[%s16255_s1 + $0x46c] sm:$0xf]  ;;  %v7467_v59 = vld [vmem:[%s16255_s1 + $0x658] sm:$0xf0] }
 0x26a   :  { %5754 = vmatpush.bf16.msrb.mxu2 %v7550_v14  ;;  %5723 = vmatmul.bf16.vlgmr.msra.gmra.mxu3 %v11237_v20  ;;  %v7646_v20 = vor.u32 %v10292_v54, %v7643_v61  ;;  %v7227_v14 = vld [vmem:[%s16255_s1 + $0x478] sm:$0xf0]  ;;  %v10280_v61 = vld [vmem:[%s16255_s1 + $0x74c] sm:$0xf] }
 0x26b   :  { %5767 = vmatpush.bf16.msrb.mxu3 %v7678_v34  ;;  %v10252_v34 = vld [vmem:[%s16255_s1 + $0x66c] sm:$0xf]  ;;  %v7230_v47 = vor.u32 %v10188_v17, %v7227_v14  ;;  %v7195_v3 = vld [vmem:[%s16255_s1 + $0x438] sm:$0xf0]  ;;  %v7326_v14 = vor.u32 %v10212_v4, %v7323_v0 }
 0x26c   :  { %5729 = vmatpush.bf16.msrb.mxu0 %v7278_v39  ;;  %v7486_v39 = vor.u32 %v10252_v34, %v7483_v15  ;;  %v5503_v21 = vpop.f32.mrf.mxu2  ;;  %v10180_v22 = vld [vmem:[%s16255_s1 + $0x42c] sm:$0xf]  ;;  %v7451_v8 = vld [vmem:[%s16255_s1 + $0x638] sm:$0xf0] }
 0x26d   :  { %5742 = vmatpush.bf16.msrb.mxu1 %v7406_v50  ;;  %v10184_v50 = vld [vmem:[%s16255_s1 + $0x44c] sm:$0xf]  ;;  %v5504_v60 = vadd.f32 %v5503_v21, %v5491_v26  ;;  %v5516_v54 = vpop.f32.mrf.mxu3  ;;  %v5492_v1 = vpop.f32.mrf.mxu1  ;;  %v7579_v13 = vld [vmem:[%s16255_s1 + $0x738] sm:$0xf0] }
 0x26e   :  { %5755 = vmatpush.bf16.msrb.mxu2 %v7534_v51  ;;  %v7211_v51 = vld [vmem:[%s16255_s1 + $0x458] sm:$0xf0]  ;;  %v10244_v6 = vld [vmem:[%s16255_s1 + $0x62c] sm:$0xf] }
 0x26f   :  { %5768 = vmatpush.bf16.msrb.mxu3 %v7662_v58  ;;  %v7339_v58 = vld [vmem:[%s16255_s1 + $0x558] sm:$0xf0]  ;;  %v14940_v2 = vadd.f32 %v5516_v54, %v5504_v60  ;;  %v7454_v24 = vor.u32 %v10244_v6, %v7451_v8  ;;  %v10240_v27 = vld [vmem:[%s16255_s1 + $0x60c] sm:$0xf] }
 0x270   :  { %5730 = vmatpush.bf16.msrb.mxu0 %v7262_v62  ;;  %v7595_v62 = vld [vmem:[%s16255_s1 + $0x758] sm:$0xf0]  ;;  %v7342_v19 = vor.u32 %v10216_v56, %v7339_v58  ;;  %v10272_v40 = vld [vmem:[%s16255_s1 + $0x70c] sm:$0xf] }
 0x271   :  { %5743 = vmatpush.bf16.msrb.mxu1 %v7390_v63  ;;  %v5479_v63 = vpop.f32.mrf.mxu0  ;;  %v7598_v55 = vor.u32 %v10280_v61, %v7595_v62  ;;  %v7179_v17 = vld [vmem:[%s16255_s1 + $0x418] sm:$0xf0]  ;;  %v10396_v21 = vld [vmem:[%s16255_s1 + $0xaec] sm:$0xf] }
 0x272   :  { %5756 = vmatpush.bf16.msrb.mxu2 %v7518_v18  ;;  %v7214_v18 = vor.u32 %v10184_v50, %v7211_v51  ;;  %v7307_v26 = vld [vmem:[%s16255_s1 + $0x518] sm:$0xf0]  ;;  %v10364_v50 = vld [vmem:[%s16255_s1 + $0x9ec] sm:$0xf] }
 0x273   :  { %5769 = vmatpush.bf16.msrb.mxu3 %v7646_v20  ;;  %v7470_v20 = vor.u32 %v10248_v32, %v7467_v59  ;;  %v7435_v15 = vld [vmem:[%s16255_s1 + $0x618] sm:$0xf0]  ;;  %v10428_v60 = vld [vmem:[%s16255_s1 + $0xbec] sm:$0xf] }
 0x274   :  { %5731 = vmatpush.bf16.msrb.mxu0 %v7246_v9  ;;  %v10276_v9 = vld [vmem:[%s16255_s1 + $0x72c] sm:$0xf]  ;;  %v7563_v43 = vld [vmem:[%s16255_s1 + $0x718] sm:$0xf0]  ;;  %v7438_v59 = vor.u32 %v10240_v27, %v7435_v15 }
 0x275   :  { %5744 = vmatpush.bf16.msrb.mxu1 %v7374_v53  ;;  %v7198_v53 = vor.u32 %v10180_v22, %v7195_v3  ;;  %v7582_v34 = vor.u32 %v10276_v9, %v7579_v13  ;;  %v5518_v51 = vpop.f32.mrf.mxu3  ;;  %v8059_v58 = vld [vmem:[%s16255_s1 + $0xaf8] sm:$0xf0]  ;;  %v7566_v61 = vor.u32 %v10272_v40, %v7563_v43  ;;  %v10328_v1 = vld [vmem:[%s16255_s1 + $0x8cc] sm:$0xf] }
 0x276   :  { %5757 = vmatpush.bf16.msrb.mxu2 %v7502_v5  ;;  %v10176_v5 = vld [vmem:[%s16255_s1 + $0x40c] sm:$0xf]  ;;  %v8187_v54 = vld [vmem:[%s16255_s1 + $0xbf8] sm:$0xf0] }
 0x277   :  { %5770 = vmatpush.bf16.msrb.mxu3 %v7630_v10  ;;  %v10208_v10 = vld [vmem:[%s16255_s1 + $0x50c] sm:$0xf]  ;;  %v7182_v56 = vor.u32 %v10176_v5, %v7179_v17  ;;  %v8190_v22 = vor.u32 %v10428_v60, %v8187_v54  ;;  %v7915_v3 = vld [vmem:[%s16255_s1 + $0x9d8] sm:$0xf0] }
 0x278   :  { %5732 = vmatpush.bf16.msrb.mxu0 %v7230_v47  ;;  %v5505_v47 = vpop.f32.mrf.mxu2  ;;  %v7310_v32 = vor.u32 %v10208_v10, %v7307_v26  ;;  %v10392_v4 = vld [vmem:[%s16255_s1 + $0xacc] sm:$0xf]  ;;  %v8171_v6 = vld [vmem:[%s16255_s1 + $0xbd8] sm:$0xf0] }
 0x279   :  { %5745 = vmatpush.bf16.msrb.mxu1 %v7358_v48  ;;  %v10332_v48 = vld [vmem:[%s16255_s1 + $0x8ec] sm:$0xf]  ;;  %v7771_v5 = vld [vmem:[%s16255_s1 + $0x8b8] sm:$0xf0] }
 0x27a   :  { %5758 = vmatpush.bf16.msrb.mxu2 %v7486_v39  ;;  %v7803_v39 = vld [vmem:[%s16255_s1 + $0x8f8] sm:$0xf0]  ;;  %v10424_v0 = vld [vmem:[%s16255_s1 + $0xbcc] sm:$0xf] }
 0x27b   :  { %5771 = vmatpush.bf16.msrb.mxu3 %v7614_v57  ;;  %v7931_v57 = vld [vmem:[%s16255_s1 + $0x9f8] sm:$0xf0]  ;;  %v7806_v62 = vor.u32 %v10332_v48, %v7803_v39  ;;  %v10356_v17 = vld [vmem:[%s16255_s1 + $0x9ac] sm:$0xf] }
 0x27c   :  { %5733 = vmatpush.bf16.msrb.mxu0 %v7214_v18  ;;  %v7934_v63 = vor.u32 %v10364_v50, %v7931_v57  ;;  %v8062_v18 = vor.u32 %v10396_v21, %v8059_v58  ;;  %v10388_v10 = vld [vmem:[%s16255_s1 + $0xaac] sm:$0xf]  ;;  %v8027_v26 = vld [vmem:[%s16255_s1 + $0xab8] sm:$0xf0] }
 0x27d   :  { %5746 = vmatpush.bf16.msrb.mxu1 %v7342_v19  ;;  %v7787_v19 = vld [vmem:[%s16255_s1 + $0x8d8] sm:$0xf0]  ;;  %v10420_v27 = vld [vmem:[%s16255_s1 + $0xbac] sm:$0xf]  ;;  %v8030_v40 = vor.u32 %v10388_v10, %v8027_v26 }
 0x27e   :  { %5759 = vmatpush.bf16.msrb.mxu2 %v7470_v20  ;;  %v10360_v20 = vld [vmem:[%s16255_s1 + $0x9cc] sm:$0xf]  ;;  %v7790_v8 = vor.u32 %v10328_v1, %v7787_v19  ;;  %v7755_v47 = vld [vmem:[%s16255_s1 + $0x898] sm:$0xf0] }
 0x27f   :  { %5772 = vmatpush.bf16.msrb.mxu3 %v7598_v55  ;;  %v8043_v55 = vld [vmem:[%s16255_s1 + $0xad8] sm:$0xf0]  ;;  %v7918_v9 = vor.u32 %v10360_v20, %v7915_v3  ;;  %v10320_v43 = vld [vmem:[%s16255_s1 + $0x88c] sm:$0xf] }
 0x280   :  { %5734 = vmatpush.bf16.msrb.mxu0 %v7198_v53  ;;  %v8046_v13 = vor.u32 %v10392_v4, %v8043_v55  ;;  %v10324_v53 = vld [vmem:[%s16255_s1 + $0x8ac] sm:$0xf]  ;;  %v8011_v39 = vld [vmem:[%s16255_s1 + $0xa98] sm:$0xf0]  ;;  %v7758_v21 = vor.u32 %v10320_v43, %v7755_v47 }
 0x281   :  { %5747 = vmatpush.bf16.msrb.mxu1 %v7326_v14  ;;  %v8174_v14 = vor.u32 %v10424_v0, %v8171_v6  ;;  %v10384_v48 = vld [vmem:[%s16255_s1 + $0xa8c] sm:$0xf]  ;;  %v7739_v54 = vld [vmem:[%s16255_s1 + $0x878] sm:$0xf0] }
 0x282   :  { %5760 = vmatpush.bf16.msrb.mxu2 %v7454_v24  ;;  %v7899_v24 = vld [vmem:[%s16255_s1 + $0x9b8] sm:$0xf0]  ;;  %v10416_v51 = vld [vmem:[%s16255_s1 + $0xb8c] sm:$0xf] }
 0x283   :  { %5773 = vmatpush.bf16.msrb.mxu3 %v7582_v34  ;;  %v7774_v34 = vor.u32 %v10324_v53, %v7771_v5  ;;  %v7902_v15 = vor.u32 %v10356_v17, %v7899_v24  ;;  %v10316_v60 = vld [vmem:[%s16255_s1 + $0x86c] sm:$0xf]  ;;  %v7995_v1 = vld [vmem:[%s16255_s1 + $0xa78] sm:$0xf0] }
 0x284   :  { %5735 = vmatpush.bf16.msrb.mxu0 %v7182_v56  ;;  %v5529_v50 = vpop.f32.mrf.mxu0  ;;  %v8139_v56 = vld [vmem:[%s16255_s1 + $0xb98] sm:$0xf0]  ;;  %v10412_v19 = vld [vmem:[%s16255_s1 + $0xb6c] sm:$0xf] }
 0x285   :  { %5748 = vmatpush.bf16.msrb.mxu1 %v7310_v32  ;;  %v5530_v57 = vadd.f32 %v5529_v50, %v14940_v2  ;;  %v5542_v58 = vpop.f32.mrf.mxu1  ;;  %v8142_v2 = vor.u32 %v10416_v51, %v8139_v56  ;;  %v8123_v20 = vld [vmem:[%s16255_s1 + $0xb78] sm:$0xf0]  ;;  %v10312_v55 = vld [vmem:[%s16255_s1 + $0x84c] sm:$0xf] }
 0x286   :  { %5761 = vmatpush.bf16.msrb.mxu2 %v7438_v59  ;;  %v8014_v59 = vor.u32 %v10384_v48, %v8011_v39  ;;  %v7723_v0 = vld [vmem:[%s16255_s1 + $0x858] sm:$0xf0]  ;;  %v10344_v6 = vld [vmem:[%s16255_s1 + $0x94c] sm:$0xf] }
 0x287   :  { %5774 = vmatpush.bf16.msrb.mxu3 %v7566_v61  ;;  %5736 = vmatmul.bf16.vlgmr.msrb.gmra.mxu0 %v11397_v41  ;;  %v10352_v41 = vld [vmem:[%s16255_s1 + $0x98c] sm:$0xf]  ;;  %v7979_v5 = vld [vmem:[%s16255_s1 + $0xa58] sm:$0xf0] }
 0x288   :  { %5780 = vmatpush.bf16.msra.mxu0 %v7806_v62  ;;  %5749 = vmatmul.bf16.vlgmr.msrb.gmra.mxu1 %v11401_v44  ;;  %v7883_v44 = vld [vmem:[%s16255_s1 + $0x998] sm:$0xf0]  ;;  %v10348_v61 = vld [vmem:[%s16255_s1 + $0x96c] sm:$0xf]  ;;  %v5543_v62 = vadd.f32 %v5542_v58, %v5530_v57 }
 0x289   :  { %5793 = vmatpush.bf16.msra.mxu1 %v7934_v63  ;;  %5762 = vmatmul.bf16.vlgmr.msrb.gmra.mxu2 %v11389_v38  ;;  %v8155_v38 = vld [vmem:[%s16255_s1 + $0xbb8] sm:$0xf0]  ;;  %v7886_v32 = vor.u32 %v10352_v41, %v7883_v44  ;;  %v10376_v53 = vld [vmem:[%s16255_s1 + $0xa4c] sm:$0xf] }
 0x28a   :  { %5806 = vmatpush.bf16.msra.mxu2 %v8062_v18  ;;  %5775 = vmatmul.bf16.vlgmr.msrb.gmra.mxu3 %v11399_v42  ;;  %v8158_v42 = vor.u32 %v10420_v27, %v8155_v38  ;;  %v7867_v63 = vld [vmem:[%s16255_s1 + $0x978] sm:$0xf0]  ;;  %v10380_v18 = vld [vmem:[%s16255_s1 + $0xa6c] sm:$0xf]  ;;  %v7726_v27 = vor.u32 %v10312_v55, %v7723_v0 }
 0x28b   :  { %5819 = vmatpush.bf16.msra.mxu3 %v8190_v22  ;;  %v7742_v22 = vor.u32 %v10316_v60, %v7739_v54  ;;  %v7870_v3 = vor.u32 %v10348_v61, %v7867_v63  ;;  %v7998_v4 = vor.u32 %v10380_v18, %v7995_v1  ;;  %v10408_v24 = vld [vmem:[%s16255_s1 + $0xb4c] sm:$0xf]  ;;  %v8107_v10 = vld [vmem:[%s16255_s1 + $0xb58] sm:$0xf0] }
 0x28c   :  { %5781 = vmatpush.bf16.msra.mxu0 %v7790_v8  ;;  %v8126_v8 = vor.u32 %v10412_v19, %v8123_v20  ;;  %v5531_v26 = vpop.f32.mrf.mxu0  ;;  %v10308_v43 = vld [vmem:[%s16255_s1 + $0x82c] sm:$0xf]  ;;  %v7707_v47 = vld [vmem:[%s16255_s1 + $0x838] sm:$0xf0] }
 0x28d   :  { %5794 = vmatpush.bf16.msra.mxu1 %v7918_v9  ;;  %v5555_v9 = vpop.f32.mrf.mxu2  ;;  %v5544_v38 = vpop.f32.mrf.mxu1  ;;  %v10340_v41 = vld [vmem:[%s16255_s1 + $0x92c] sm:$0xf]  ;;  %v7835_v44 = vld [vmem:[%s16255_s1 + $0x938] sm:$0xf0]  ;;  %v7710_v56 = vor.u32 %v10308_v43, %v7707_v47 }
 0x28e   :  { %5807 = vmatpush.bf16.msra.mxu2 %v8046_v13  ;;  %v7851_v13 = vld [vmem:[%s16255_s1 + $0x958] sm:$0xf0]  ;;  %v5556_v17 = vadd.f32 %v5555_v9, %v5543_v62  ;;  %v10372_v48 = vld [vmem:[%s16255_s1 + $0xa2c] sm:$0xf]  ;;  %v7838_v58 = vor.u32 %v10340_v41, %v7835_v44 }
 0x28f   :  { %5820 = vmatpush.bf16.msra.mxu3 %v8174_v14  ;;  %v5568_v14 = vpop.f32.mrf.mxu3  ;;  %v7963_v39 = vld [vmem:[%s16255_s1 + $0xa38] sm:$0xf0]  ;;  %v10404_v50 = vld [vmem:[%s16255_s1 + $0xb2c] sm:$0xf] }
 0x290   :  { %5782 = vmatpush.bf16.msra.mxu0 %v7774_v34  ;;  %v15139_v34 = vadd.f32 %v5568_v14, %v5556_v17  ;;  %v8091_v51 = vld [vmem:[%s16255_s1 + $0xb38] sm:$0xf0]  ;;  %v10304_v57 = vld [vmem:[%s16255_s1 + $0x80c] sm:$0xf] }
 0x291   :  { %5795 = vmatpush.bf16.msra.mxu1 %v7902_v15  ;;  %v7854_v15 = vor.u32 %v10344_v6, %v7851_v13  ;;  %v7819_v60 = vld [vmem:[%s16255_s1 + $0x918] sm:$0xf0]  ;;  %v10368_v54 = vld [vmem:[%s16255_s1 + $0xa0c] sm:$0xf]  ;;  %v8094_v61 = vor.u32 %v10404_v50, %v8091_v51 }
 0x292   :  { %5808 = vmatpush.bf16.msra.mxu2 %v8030_v40  ;;  %v7982_v40 = vor.u32 %v10376_v53, %v7979_v5  ;;  %v10400_v62 = vld [vmem:[%s16255_s1 + $0xb0c] sm:$0xf]  ;;  %v8075_v63 = vld [vmem:[%s16255_s1 + $0xb18] sm:$0xf0] }
 0x293   :  { %5821 = vmatpush.bf16.msra.mxu3 %v8158_v42  ;;  %v8110_v42 = vor.u32 %v10408_v24, %v8107_v10  ;;  %v10460_v1 = vld [vmem:[%s16255_s1 + $0xcec] sm:$0xf]  ;;  %v8315_v19 = vld [vmem:[%s16255_s1 + $0xcf8] sm:$0xf0]  ;;  %v8078_v53 = vor.u32 %v10400_v62, %v8075_v63 }
 0x294   :  { %5783 = vmatpush.bf16.msra.mxu0 %v7758_v21  ;;  %v7691_v21 = vld [vmem:[%s16255_s1 + $0x818] sm:$0xf0]  ;;  %v10492_v20 = vld [vmem:[%s16255_s1 + $0xdec] sm:$0xf]  ;;  %v8318_v5 = vor.u32 %v10460_v1, %v8315_v19 }
 0x295   :  { %5796 = vmatpush.bf16.msra.mxu1 %v7886_v32  ;;  %v7966_v32 = vor.u32 %v10372_v48, %v7963_v39  ;;  %v5557_v18 = vpop.f32.mrf.mxu2  ;;  %v10524_v55 = vld [vmem:[%s16255_s1 + $0xeec] sm:$0xf]  ;;  %v8571_v0 = vld [vmem:[%s16255_s1 + $0xef8] sm:$0xf0] }
 0x296   :  { %5809 = vmatpush.bf16.msra.mxu2 %v8014_v59  ;;  %v10336_v59 = vld [vmem:[%s16255_s1 + $0x90c] sm:$0xf]  ;;  %v8699_v13 = vld [vmem:[%s16255_s1 + $0xff8] sm:$0xf0]  ;;  %v8574_v14 = vor.u32 %v10524_v55, %v8571_v0 }
 0x297   :  { %5822 = vmatpush.bf16.msra.mxu3 %v8142_v2  ;;  %v7947_v2 = vld [vmem:[%s16255_s1 + $0xa18] sm:$0xf0]  ;;  %v7822_v6 = vor.u32 %v10336_v59, %v7819_v60  ;;  %v10556_v9 = vld [vmem:[%s16255_s1 + $0xfec] sm:$0xf] }
 0x298   :  { %5784 = vmatpush.bf16.msra.mxu0 %v7742_v22  ;;  %v5570_v22 = vpop.f32.mrf.mxu3  ;;  %v10456_v24 = vld [vmem:[%s16255_s1 + $0xccc] sm:$0xf]  ;;  %v8299_v10 = vld [vmem:[%s16255_s1 + $0xcd8] sm:$0xf0] }
 0x299   :  { %5797 = vmatpush.bf16.msra.mxu1 %v7870_v3  ;;  %v7694_v3 = vor.u32 %v10304_v57, %v7691_v21  ;;  %v10488_v26 = vld [vmem:[%s16255_s1 + $0xdcc] sm:$0xf]  ;;  %v8427_v38 = vld [vmem:[%s16255_s1 + $0xdd8] sm:$0xf0]  ;;  %v8302_v41 = vor.u32 %v10456_v24, %v8299_v10 }
 0x29a   :  { %5810 = vmatpush.bf16.msra.mxu2 %v7998_v4  ;;  %v8443_v4 = vld [vmem:[%s16255_s1 + $0xdf8] sm:$0xf0]  ;;  %v10552_v43 = vld [vmem:[%s16255_s1 + $0xfcc] sm:$0xf] }
 0x29b   :  { %5823 = vmatpush.bf16.msra.mxu3 %v8126_v8  ;;  %v7950_v8 = vor.u32 %v10368_v54, %v7947_v2  ;;  %v8446_v17 = vor.u32 %v10492_v20, %v8443_v4  ;;  %v8683_v47 = vld [vmem:[%s16255_s1 + $0xfd8] sm:$0xf0]  ;;  %v10452_v48 = vld [vmem:[%s16255_s1 + $0xcac] sm:$0xf] }
 0x29c   :  { %5785 = vmatpush.bf16.msra.mxu0 %v7726_v27  ;;  %v8702_v27 = vor.u32 %v10556_v9, %v8699_v13  ;;  %v8283_v39 = vld [vmem:[%s16255_s1 + $0xcb8] sm:$0xf0]  ;;  %v10484_v50 = vld [vmem:[%s16255_s1 + $0xdac] sm:$0xf]  ;;  %v8686_v51 = vor.u32 %v10552_v43, %v8683_v47 }
 0x29d   :  { %5798 = vmatpush.bf16.msra.mxu1 %v7854_v15  ;;  %v10520_v15 = vld [vmem:[%s16255_s1 + $0xecc] sm:$0xf]  ;;  %v8539_v21 = vld [vmem:[%s16255_s1 + $0xeb8] sm:$0xf0] }
 0x29e   :  { %5811 = vmatpush.bf16.msra.mxu2 %v7982_v40  ;;  %v8555_v40 = vld [vmem:[%s16255_s1 + $0xed8] sm:$0xf0]  ;;  %v10516_v57 = vld [vmem:[%s16255_s1 + $0xeac] sm:$0xf] }
 0x29f   :  { %5824 = vmatpush.bf16.msra.mxu3 %v8110_v42  ;;  %v8430_v42 = vor.u32 %v10488_v26, %v8427_v38  ;;  %v8558_v44 = vor.u32 %v10520_v15, %v8555_v40  ;;  %v8542_v60 = vor.u32 %v10516_v57, %v8539_v21  ;;  %v10480_v54 = vld [vmem:[%s16255_s1 + $0xd8c] sm:$0xf]  ;;  %v8523_v62 = vld [vmem:[%s16255_s1 + $0xe98] sm:$0xf0] }
 0x2a0   :  { %5786 = vmatpush.bf16.msra.mxu0 %v7710_v56  ;;  %v8411_v56 = vld [vmem:[%s16255_s1 + $0xdb8] sm:$0xf0]  ;;  %v10512_v2 = vld [vmem:[%s16255_s1 + $0xe8c] sm:$0xf] }
 0x2a1   :  { %5799 = vmatpush.bf16.msra.mxu1 %v7838_v58  ;;  %v8667_v58 = vld [vmem:[%s16255_s1 + $0xfb8] sm:$0xf0]  ;;  %v8414_v59 = vor.u32 %v10484_v50, %v8411_v56  ;;  %v10544_v18 = vld [vmem:[%s16255_s1 + $0xf8c] sm:$0xf]  ;;  %v8526_v4 = vor.u32 %v10512_v2, %v8523_v62 }
 0x2a2   :  { %5812 = vmatpush.bf16.msra.mxu2 %v7966_v32  ;;  %v8286_v32 = vor.u32 %v10452_v48, %v8283_v39  ;;  %v8651_v1 = vld [vmem:[%s16255_s1 + $0xf98] sm:$0xf0]  ;;  %v10444_v55 = vld [vmem:[%s16255_s1 + $0xc6c] sm:$0xf] }
 0x2a3   :  { %5825 = vmatpush.bf16.msra.mxu3 %v8094_v61  ;;  %v8395_v61 = vld [vmem:[%s16255_s1 + $0xd98] sm:$0xf0]  ;;  %v10508_v13 = vld [vmem:[%s16255_s1 + $0xe6c] sm:$0xf] }
 0x2a4   :  { %5787 = vmatpush.bf16.msra.mxu0 %v7694_v3  ;;  %v5581_v63 = vpop.f32.mrf.mxu0  ;;  %v8398_v3 = vor.u32 %v10480_v54, %v8395_v61  ;;  %v8251_v0 = vld [vmem:[%s16255_s1 + $0xc78] sm:$0xf0]  ;;  %v10440_v26 = vld [vmem:[%s16255_s1 + $0xc4c] sm:$0xf] }
 0x2a5   :  { %5800 = vmatpush.bf16.msra.mxu1 %v7822_v6  ;;  %v5582_v19 = vadd.f32 %v5581_v63, %v15139_v34  ;;  %v5594_v22 = vpop.f32.mrf.mxu1  ;;  %v10476_v6 = vld [vmem:[%s16255_s1 + $0xd6c] sm:$0xf]  ;;  %v8654_v34 = vor.u32 %v10544_v18, %v8651_v1  ;;  %v8379_v9 = vld [vmem:[%s16255_s1 + $0xd78] sm:$0xf0] }
 0x2a6   :  { %5813 = vmatpush.bf16.msra.mxu2 %v7950_v8  ;;  %v8382_v24 = vor.u32 %v10476_v6, %v8379_v9  ;;  %v10472_v38 = vld [vmem:[%s16255_s1 + $0xd4c] sm:$0xf]  ;;  %v8363_v43 = vld [vmem:[%s16255_s1 + $0xd58] sm:$0xf0] }
 0x2a7   :  { %5826 = vmatpush.bf16.msra.mxu3 %v8078_v53  ;;  %5788 = vmatmul.bf16.vlgmr.msra.gmra.mxu0 %v11590_v25  ;;  %v10548_v25 = vld [vmem:[%s16255_s1 + $0xfac] sm:$0xf]  ;;  %v5595_v8 = vadd.f32 %v5594_v22, %v5582_v19  ;;  %v8507_v53 = vld [vmem:[%s16255_s1 + $0xe78] sm:$0xf0]  ;;  %v8366_v21 = vor.u32 %v10472_v38, %v8363_v43 }
 0x2a8   :  { %5832 = vmatpush.bf16.msrb.mxu0 %v8318_v5  ;;  %5801 = vmatmul.bf16.vlgmr.msra.gmra.mxu1 %v11603_v30  ;;  %v8267_v30 = vld [vmem:[%s16255_s1 + $0xc98] sm:$0xf0]  ;;  %v10540_v5 = vld [vmem:[%s16255_s1 + $0xf6c] sm:$0xf]  ;;  %v8510_v10 = vor.u32 %v10508_v13, %v8507_v53 }
 0x2a9   :  { %5845 = vmatpush.bf16.msrb.mxu1 %v8446_v17  ;;  %5814 = vmatmul.bf16.vlgmr.msra.gmra.mxu2 %v11601_v29  ;;  %v10448_v29 = vld [vmem:[%s16255_s1 + $0xc8c] sm:$0xf]  ;;  %v8635_v17 = vld [vmem:[%s16255_s1 + $0xf78] sm:$0xf0] }
 0x2aa   :  { %5858 = vmatpush.bf16.msrb.mxu2 %v8574_v14  ;;  %5827 = vmatmul.bf16.vlgmr.msra.gmra.mxu3 %v11611_v33  ;;  %v8670_v33 = vor.u32 %v10548_v25, %v8667_v58  ;;  %v8270_v20 = vor.u32 %v10448_v29, %v8267_v30  ;;  %v8254_v14 = vor.u32 %v10444_v55, %v8251_v0  ;;  %v10504_v47 = vld [vmem:[%s16255_s1 + $0xe4c] sm:$0xf]  ;;  %v8619_v39 = vld [vmem:[%s16255_s1 + $0xf58] sm:$0xf0] }
 0x2ab   :  { %5871 = vmatpush.bf16.msrb.mxu3 %v8702_v27  ;;  %v8235_v27 = vld [vmem:[%s16255_s1 + $0xc58] sm:$0xf0]  ;;  %v8638_v15 = vor.u32 %v10540_v5, %v8635_v17  ;;  %v10536_v48 = vld [vmem:[%s16255_s1 + $0xf4c] sm:$0xf] }
 0x2ac   :  { %5833 = vmatpush.bf16.msrb.mxu0 %v8302_v41  ;;  %v5607_v40 = vpop.f32.mrf.mxu2  ;;  %v8491_v41 = vld [vmem:[%s16255_s1 + $0xe58] sm:$0xf0]  ;;  %v5583_v50 = vpop.f32.mrf.mxu0  ;;  %v10436_v58 = vld [vmem:[%s16255_s1 + $0xc2c] sm:$0xf] }
 0x2ad   :  { %5846 = vmatpush.bf16.msrb.mxu1 %v8430_v42  ;;  %v5608_v42 = vadd.f32 %v5607_v40, %v5595_v8  ;;  %v5596_v56 = vpop.f32.mrf.mxu1  ;;  %v8494_v25 = vor.u32 %v10504_v47, %v8491_v41  ;;  %v8347_v29 = vld [vmem:[%s16255_s1 + $0xd38] sm:$0xf0]  ;;  %v10500_v30 = vld [vmem:[%s16255_s1 + $0xe2c] sm:$0xf] }
 0x2ae   :  { %5859 = vmatpush.bf16.msrb.mxu2 %v8558_v44  ;;  %v5620_v44 = vpop.f32.mrf.mxu3  ;;  %v8475_v54 = vld [vmem:[%s16255_s1 + $0xe38] sm:$0xf0]  ;;  %v10432_v62 = vld [vmem:[%s16255_s1 + $0xc0c] sm:$0xf] }
 0x2af   :  { %5872 = vmatpush.bf16.msrb.mxu3 %v8686_v51  ;;  %v8238_v51 = vor.u32 %v10440_v26, %v8235_v27  ;;  %v15338_v57 = vadd.f32 %v5620_v44, %v5608_v42  ;;  %v8603_v61 = vld [vmem:[%s16255_s1 + $0xf38] sm:$0xf0]  ;;  %v8478_v1 = vor.u32 %v10500_v30, %v8475_v54  ;;  %v10464_v19 = vld [vmem:[%s16255_s1 + $0xd0c] sm:$0xf] }
 0x2b0   :  { %5834 = vmatpush.bf16.msrb.mxu0 %v8286_v32  ;;  %v8219_v32 = vld [vmem:[%s16255_s1 + $0xc38] sm:$0xf0]  ;;  %v10496_v22 = vld [vmem:[%s16255_s1 + $0xe0c] sm:$0xf] }
 0x2b1   :  { %5847 = vmatpush.bf16.msrb.mxu1 %v8414_v59  ;;  %v10468_v59 = vld [vmem:[%s16255_s1 + $0xd2c] sm:$0xf]  ;;  %v8222_v2 = vor.u32 %v10436_v58, %v8219_v32  ;;  %v8203_v63 = vld [vmem:[%s16255_s1 + $0xc18] sm:$0xf0] }
 0x2b2   :  { %5860 = vmatpush.bf16.msrb.mxu2 %v8542_v60  ;;  %v8622_v60 = vor.u32 %v10536_v48, %v8619_v39  ;;  %v8350_v18 = vor.u32 %v10468_v59, %v8347_v29  ;;  %v10528_v55 = vld [vmem:[%s16255_s1 + $0xf0c] sm:$0xf]  ;;  %v8587_v0 = vld [vmem:[%s16255_s1 + $0xf18] sm:$0xf0]  ;;  %v8206_v53 = vor.u32 %v10432_v62, %v8203_v63 }
 0x2b3   :  { %5873 = vmatpush.bf16.msrb.mxu3 %v8670_v33  ;;  %v10532_v33 = vld [vmem:[%s16255_s1 + $0xf2c] sm:$0xf]  ;;  %v8827_v8 = vld [vmem:[%s16255_s1 + $0x10f8] sm:$0xf0]  ;;  %v8590_v38 = vor.u32 %v10528_v55, %v8587_v0 }
 0x2b4   :  { %5835 = vmatpush.bf16.msrb.mxu0 %v8270_v20  ;;  %v8331_v20 = vld [vmem:[%s16255_s1 + $0xd18] sm:$0xf0]  ;;  %v5609_v6 = vpop.f32.mrf.mxu2  ;;  %v10620_v9 = vld [vmem:[%s16255_s1 + $0x11ec] sm:$0xf] }
 0x2b5   :  { %5848 = vmatpush.bf16.msrb.mxu1 %v8398_v3  ;;  %v8606_v3 = vor.u32 %v10532_v33, %v8603_v61  ;;  %v8955_v5 = vld [vmem:[%s16255_s1 + $0x11f8] sm:$0xf0]  ;;  %v10652_v17 = vld [vmem:[%s16255_s1 + $0x12ec] sm:$0xf] }
 0x2b6   :  { %5861 = vmatpush.bf16.msrb.mxu2 %v8526_v4  ;;  %v8459_v4 = vld [vmem:[%s16255_s1 + $0xe18] sm:$0xf0]  ;;  %v5622_v13 = vpop.f32.mrf.mxu3  ;;  %v10684_v26 = vld [vmem:[%s16255_s1 + $0x13ec] sm:$0xf]  ;;  %v8958_v40 = vor.u32 %v10620_v9, %v8955_v5 }
 0x2b7   :  { %5874 = vmatpush.bf16.msrb.mxu3 %v8654_v34  ;;  %v10588_v34 = vld [vmem:[%s16255_s1 + $0x10ec] sm:$0xf]  ;;  %v9211_v27 = vld [vmem:[%s16255_s1 + $0x13f8] sm:$0xf0] }
 0x2b8   :  { %5836 = vmatpush.bf16.msrb.mxu0 %v8254_v14  ;;  %v9083_v14 = vld [vmem:[%s16255_s1 + $0x12f8] sm:$0xf0]  ;;  %v10584_v47 = vld [vmem:[%s16255_s1 + $0x10cc] sm:$0xf]  ;;  %v9214_v44 = vor.u32 %v10684_v26, %v9211_v27 }
 0x2b9   :  { %5849 = vmatpush.bf16.msrb.mxu1 %v8382_v24  ;;  %v8334_v24 = vor.u32 %v10464_v19, %v8331_v20  ;;  %v9086_v43 = vor.u32 %v10652_v17, %v9083_v14  ;;  %v8811_v41 = vld [vmem:[%s16255_s1 + $0x10d8] sm:$0xf0]  ;;  %v10616_v42 = vld [vmem:[%s16255_s1 + $0x11cc] sm:$0xf] }
 0x2ba   :  { %5862 = vmatpush.bf16.msrb.mxu2 %v8510_v10  ;;  %v8462_v10 = vor.u32 %v10496_v22, %v8459_v4  ;;  %v8939_v48 = vld [vmem:[%s16255_s1 + $0x11d8] sm:$0xf0]  ;;  %v10648_v39 = vld [vmem:[%s16255_s1 + $0x12cc] sm:$0xf] }
 0x2bb   :  { %5875 = vmatpush.bf16.msrb.mxu3 %v8638_v15  ;;  %v8830_v15 = vor.u32 %v10588_v34, %v8827_v8  ;;  %v9067_v50 = vld [vmem:[%s16255_s1 + $0x12d8] sm:$0xf0]  ;;  %v10580_v32 = vld [vmem:[%s16255_s1 + $0x10ac] sm:$0xf] }
 0x2bc   :  { %5837 = vmatpush.bf16.msrb.mxu0 %v8238_v51  ;;  %v10680_v51 = vld [vmem:[%s16255_s1 + $0x13cc] sm:$0xf]  ;;  %v9195_v56 = vld [vmem:[%s16255_s1 + $0x13d8] sm:$0xf0]  ;;  %v9070_v58 = vor.u32 %v10648_v39, %v9067_v50 }
 0x2bd   :  { %5850 = vmatpush.bf16.msrb.mxu1 %v8366_v21  ;;  %v8814_v21 = vor.u32 %v10584_v47, %v8811_v41  ;;  %v8795_v59 = vld [vmem:[%s16255_s1 + $0x10b8] sm:$0xf0]  ;;  %v9198_v29 = vor.u32 %v10680_v51, %v9195_v56  ;;  %v10644_v54 = vld [vmem:[%s16255_s1 + $0x12ac] sm:$0xf] }
 0x2be   :  { %5863 = vmatpush.bf16.msrb.mxu2 %v8494_v25  ;;  %v8942_v25 = vor.u32 %v10616_v42, %v8939_v48  ;;  %v8923_v30 = vld [vmem:[%s16255_s1 + $0x11b8] sm:$0xf0]  ;;  %v10640_v19 = vld [vmem:[%s16255_s1 + $0x128c] sm:$0xf] }
 0x2bf   :  { %5876 = vmatpush.bf16.msrb.mxu3 %v8622_v60  ;;  %v10612_v60 = vld [vmem:[%s16255_s1 + $0x11ac] sm:$0xf]  ;;  %v9051_v33 = vld [vmem:[%s16255_s1 + $0x12b8] sm:$0xf0] }
 0x2c0   :  { %5838 = vmatpush.bf16.msrb.mxu0 %v8222_v2  ;;  %v9179_v61 = vld [vmem:[%s16255_s1 + $0x13b8] sm:$0xf0]  ;;  %v8798_v2 = vor.u32 %v10580_v32, %v8795_v59  ;;  %v8926_v62 = vor.u32 %v10612_v60, %v8923_v30  ;;  %v9054_v63 = vor.u32 %v10644_v54, %v9051_v33  ;;  %v10572_v9 = vld [vmem:[%s16255_s1 + $0x106c] sm:$0xf] }
 0x2c1   :  { %5851 = vmatpush.bf16.msrb.mxu1 %v8350_v18  ;;  %v10608_v18 = vld [vmem:[%s16255_s1 + $0x118c] sm:$0xf]  ;;  %v9035_v20 = vld [vmem:[%s16255_s1 + $0x1298] sm:$0xf0] }
 0x2c2   :  { %5864 = vmatpush.bf16.msrb.mxu2 %v8478_v1  ;;  %v8907_v1 = vld [vmem:[%s16255_s1 + $0x1198] sm:$0xf0]  ;;  %v9038_v8 = vor.u32 %v10640_v19, %v9035_v20  ;;  %v10636_v14 = vld [vmem:[%s16255_s1 + $0x126c] sm:$0xf] }
 0x2c3   :  { %5877 = vmatpush.bf16.msrb.mxu3 %v8606_v3  ;;  %v10672_v3 = vld [vmem:[%s16255_s1 + $0x138c] sm:$0xf]  ;;  %v9163_v4 = vld [vmem:[%s16255_s1 + $0x1398] sm:$0xf0]  ;;  %v8910_v34 = vor.u32 %v10608_v18, %v8907_v1 }
 0x2c4   :  { %5839 = vmatpush.bf16.msrb.mxu0 %v8206_v53  ;;  %v5633_v22 = vpop.f32.mrf.mxu0  ;;  %v8763_v13 = vld [vmem:[%s16255_s1 + $0x1078] sm:$0xf0]  ;;  %v10604_v53 = vld [vmem:[%s16255_s1 + $0x116c] sm:$0xf] }
 0x2c5   :  { %5852 = vmatpush.bf16.msrb.mxu1 %v8334_v24  ;;  %v5634_v55 = vadd.f32 %v5633_v22, %v15338_v57  ;;  %v5646_v6 = vpop.f32.mrf.mxu1  ;;  %v9166_v57 = vor.u32 %v10672_v3, %v9163_v4  ;;  %v8891_v17 = vld [vmem:[%s16255_s1 + $0x1178] sm:$0xf0]  ;;  %v8766_v27 = vor.u32 %v10572_v9, %v8763_v13  ;;  %v10600_v47 = vld [vmem:[%s16255_s1 + $0x114c] sm:$0xf] }
 0x2c6   :  { %5865 = vmatpush.bf16.msrb.mxu2 %v8462_v10  ;;  %v9019_v24 = vld [vmem:[%s16255_s1 + $0x1278] sm:$0xf0]  ;;  %v10668_v10 = vld [vmem:[%s16255_s1 + $0x136c] sm:$0xf] }
 0x2c7   :  { %5878 = vmatpush.bf16.msrb.mxu3 %v8590_v38  ;;  %5840 = vmatmul.bf16.vlgmr.msrb.gmra.mxu0 %v11800_v23  ;;  %v10676_v23 = vld [vmem:[%s16255_s1 + $0x13ac] sm:$0xf]  ;;  %v5647_v5 = vadd.f32 %v5646_v6, %v5634_v55  ;;  %v9147_v26 = vld [vmem:[%s16255_s1 + $0x1378] sm:$0xf0]  ;;  %v8894_v38 = vor.u32 %v10604_v53, %v8891_v17 }
 0x2c8   :  { %5884 = vmatpush.bf16.msra.mxu0 %v8830_v15  ;;  %5853 = vmatmul.bf16.vlgmr.msrb.gmra.mxu1 %v11813_v31  ;;  %v8779_v31 = vld [vmem:[%s16255_s1 + $0x1098] sm:$0xf0]  ;;  %v9022_v15 = vor.u32 %v10636_v14, %v9019_v24  ;;  %v9150_v41 = vor.u32 %v10668_v10, %v9147_v26  ;;  %v10632_v48 = vld [vmem:[%s16255_s1 + $0x124c] sm:$0xf] }
 0x2c9   :  { %5897 = vmatpush.bf16.msra.mxu1 %v8958_v40  ;;  %5866 = vmatmul.bf16.vlgmr.msrb.gmra.mxu2 %v11811_v28  ;;  %v10576_v28 = vld [vmem:[%s16255_s1 + $0x108c] sm:$0xf]  ;;  %v9003_v39 = vld [vmem:[%s16255_s1 + $0x1258] sm:$0xf0] }
 0x2ca   :  { %5910 = vmatpush.bf16.msra.mxu2 %v9086_v43  ;;  %5879 = vmatmul.bf16.vlgmr.msrb.gmra.mxu3 %v11821_v35  ;;  %v9182_v35 = vor.u32 %v10676_v23, %v9179_v61  ;;  %v8782_v0 = vor.u32 %v10576_v28, %v8779_v31  ;;  %v10568_v40 = vld [vmem:[%s16255_s1 + $0x104c] sm:$0xf]  ;;  %v8747_v43 = vld [vmem:[%s16255_s1 + $0x1058] sm:$0xf0] }
 0x2cb   :  { %5923 = vmatpush.bf16.msra.mxu3 %v9214_v44  ;;  %v8875_v44 = vld [vmem:[%s16255_s1 + $0x1158] sm:$0xf0]  ;;  %v10664_v56 = vld [vmem:[%s16255_s1 + $0x134c] sm:$0xf] }
 0x2cc   :  { %5885 = vmatpush.bf16.msra.mxu0 %v8814_v21  ;;  %v5659_v42 = vpop.f32.mrf.mxu2  ;;  %v9131_v21 = vld [vmem:[%s16255_s1 + $0x1358] sm:$0xf0]  ;;  %v8878_v60 = vor.u32 %v10600_v47, %v8875_v44  ;;  %v10564_v30 = vld [vmem:[%s16255_s1 + $0x102c] sm:$0xf] }
 0x2cd   :  { %5898 = vmatpush.bf16.msra.mxu1 %v8942_v25  ;;  %v5660_v50 = vadd.f32 %v5659_v42, %v5647_v5  ;;  %v5672_v51 = vpop.f32.mrf.mxu3  ;;  %v5635_v25 = vpop.f32.mrf.mxu0  ;;  %v8731_v54 = vld [vmem:[%s16255_s1 + $0x1038] sm:$0xf0]  ;;  %v10596_v33 = vld [vmem:[%s16255_s1 + $0x112c] sm:$0xf]  ;;  %v9134_v23 = vor.u32 %v10664_v56, %v9131_v21 }
 0x2ce   :  { %5911 = vmatpush.bf16.msra.mxu2 %v9070_v58  ;;  %v8750_v58 = vor.u32 %v10568_v40, %v8747_v43  ;;  %v5648_v32 = vpop.f32.mrf.mxu1  ;;  %v8859_v61 = vld [vmem:[%s16255_s1 + $0x1138] sm:$0xf0]  ;;  %v8734_v31 = vor.u32 %v10564_v30, %v8731_v54  ;;  %v10560_v18 = vld [vmem:[%s16255_s1 + $0x100c] sm:$0xf] }
 0x2cf   :  { %5924 = vmatpush.bf16.msra.mxu3 %v9198_v29  ;;  %v15537_v59 = vadd.f32 %v5672_v51, %v5660_v50  ;;  %v9006_v29 = vor.u32 %v10632_v48, %v9003_v39  ;;  %v9115_v28 = vld [vmem:[%s16255_s1 + $0x1338] sm:$0xf0]  ;;  %v8862_v1 = vor.u32 %v10596_v33, %v8859_v61  ;;  %v10592_v20 = vld [vmem:[%s16255_s1 + $0x110c] sm:$0xf] }
 0x2d0   :  { %5886 = vmatpush.bf16.msra.mxu0 %v8798_v2  ;;  %v10628_v2 = vld [vmem:[%s16255_s1 + $0x122c] sm:$0xf]  ;;  %v8843_v22 = vld [vmem:[%s16255_s1 + $0x1118] sm:$0xf0] }
 0x2d1   :  { %5899 = vmatpush.bf16.msra.mxu1 %v8926_v62  ;;  %v8987_v62 = vld [vmem:[%s16255_s1 + $0x1238] sm:$0xf0]  ;;  %v10624_v3 = vld [vmem:[%s16255_s1 + $0x120c] sm:$0xf]  ;;  %v8846_v24 = vor.u32 %v10592_v20, %v8843_v22 }
 0x2d2   :  { %5912 = vmatpush.bf16.msra.mxu2 %v9054_v63  ;;  %v10660_v63 = vld [vmem:[%s16255_s1 + $0x132c] sm:$0xf]  ;;  %v8990_v19 = vor.u32 %v10628_v2, %v8987_v62  ;;  %v8971_v55 = vld [vmem:[%s16255_s1 + $0x1218] sm:$0xf0] }
 0x2d3   :  { %5925 = vmatpush.bf16.msra.mxu3 %v9182_v35  ;;  %v8715_v35 = vld [vmem:[%s16255_s1 + $0x1018] sm:$0xf0]  ;;  %v9118_v4 = vor.u32 %v10660_v63, %v9115_v28  ;;  %v10748_v13 = vld [vmem:[%s16255_s1 + $0x15ec] sm:$0xf]  ;;  %v8974_v10 = vor.u32 %v10624_v3, %v8971_v55 }
 0x2d4   :  { %5887 = vmatpush.bf16.msra.mxu0 %v8782_v0  ;;  %v10656_v0 = vld [vmem:[%s16255_s1 + $0x130c] sm:$0xf]  ;;  %v9099_v6 = vld [vmem:[%s16255_s1 + $0x1318] sm:$0xf0] }
 0x2d5   :  { %5900 = vmatpush.bf16.msra.mxu1 %v8910_v34  ;;  %v5661_v34 = vpop.f32.mrf.mxu2  ;;  %v9339_v9 = vld [vmem:[%s16255_s1 + $0x14f8] sm:$0xf0]  ;;  %v5674_v53 = vpop.f32.mrf.mxu3  ;;  %v10780_v17 = vld [vmem:[%s16255_s1 + $0x16ec] sm:$0xf] }
 0x2d6   :  { %5913 = vmatpush.bf16.msra.mxu2 %v9038_v8  ;;  %v10716_v8 = vld [vmem:[%s16255_s1 + $0x14ec] sm:$0xf]  ;;  %v9467_v5 = vld [vmem:[%s16255_s1 + $0x15f8] sm:$0xf0] }
 0x2d7   :  { %5926 = vmatpush.bf16.msra.mxu3 %v9166_v57  ;;  %v8718_v57 = vor.u32 %v10560_v18, %v8715_v35  ;;  %v9595_v14 = vld [vmem:[%s16255_s1 + $0x16f8] sm:$0xf0]  ;;  %v10812_v26 = vld [vmem:[%s16255_s1 + $0x17ec] sm:$0xf]  ;;  %v9470_v40 = vor.u32 %v10748_v13, %v9467_v5 }
 0x2d8   :  { %5888 = vmatpush.bf16.msra.mxu0 %v8766_v27  ;;  %v9723_v27 = vld [vmem:[%s16255_s1 + $0x17f8] sm:$0xf0]  ;;  %v9598_v43 = vor.u32 %v10780_v17, %v9595_v14  ;;  %v10712_v47 = vld [vmem:[%s16255_s1 + $0x14cc] sm:$0xf] }
 0x2d9   :  { %5901 = vmatpush.bf16.msra.mxu1 %v8894_v38  ;;  %v9102_v38 = vor.u32 %v10656_v0, %v9099_v6  ;;  %v10744_v42 = vld [vmem:[%s16255_s1 + $0x15cc] sm:$0xf]  ;;  %v9726_v44 = vor.u32 %v10812_v26, %v9723_v27  ;;  %v9451_v48 = vld [vmem:[%s16255_s1 + $0x15d8] sm:$0xf0] }
 0x2da   :  { %5914 = vmatpush.bf16.msra.mxu2 %v9022_v15  ;;  %v9342_v15 = vor.u32 %v10716_v8, %v9339_v9  ;;  %v10776_v39 = vld [vmem:[%s16255_s1 + $0x16cc] sm:$0xf]  ;;  %v9579_v50 = vld [vmem:[%s16255_s1 + $0x16d8] sm:$0xf0]  ;;  %v9454_v25 = vor.u32 %v10744_v42, %v9451_v48 }
 0x2db   :  { %5927 = vmatpush.bf16.msra.mxu3 %v9150_v41  ;;  %v9323_v41 = vld [vmem:[%s16255_s1 + $0x14d8] sm:$0xf0]  ;;  %v10808_v51 = vld [vmem:[%s16255_s1 + $0x17cc] sm:$0xf] }
 0x2dc   :  { %5889 = vmatpush.bf16.msra.mxu0 %v8750_v58  ;;  %v9707_v56 = vld [vmem:[%s16255_s1 + $0x17d8] sm:$0xf0]  ;;  %v9326_v21 = vor.u32 %v10712_v47, %v9323_v41  ;;  %v9582_v58 = vor.u32 %v10776_v39, %v9579_v50  ;;  %v10708_v32 = vld [vmem:[%s16255_s1 + $0x14ac] sm:$0xf] }
 0x2dd   :  { %5902 = vmatpush.bf16.msra.mxu1 %v8878_v60  ;;  %v9307_v60 = vld [vmem:[%s16255_s1 + $0x14b8] sm:$0xf0]  ;;  %v9710_v30 = vor.u32 %v10808_v51, %v9707_v56  ;;  %v10772_v33 = vld [vmem:[%s16255_s1 + $0x16ac] sm:$0xf] }
 0x2de   :  { %5915 = vmatpush.bf16.msra.mxu2 %v9006_v29  ;;  %v10740_v29 = vld [vmem:[%s16255_s1 + $0x15ac] sm:$0xf]  ;;  %v9435_v54 = vld [vmem:[%s16255_s1 + $0x15b8] sm:$0xf0]  ;;  %v9310_v2 = vor.u32 %v10708_v32, %v9307_v60 }
 0x2df   :  { %5928 = vmatpush.bf16.msra.mxu3 %v9134_v23  ;;  %v9563_v23 = vld [vmem:[%s16255_s1 + $0x16b8] sm:$0xf0]  ;;  %v10704_v62 = vld [vmem:[%s16255_s1 + $0x148c] sm:$0xf] }
 0x2e0   :  { %5890 = vmatpush.bf16.msra.mxu0 %v8734_v31  ;;  %v9691_v61 = vld [vmem:[%s16255_s1 + $0x17b8] sm:$0xf0]  ;;  %v10736_v28 = vld [vmem:[%s16255_s1 + $0x158c] sm:$0xf] }
 0x2e1   :  { %5903 = vmatpush.bf16.msra.mxu1 %v8862_v1  ;;  %v9291_v63 = vld [vmem:[%s16255_s1 + $0x1498] sm:$0xf0]  ;;  %v10768_v1 = vld [vmem:[%s16255_s1 + $0x168c] sm:$0xf] }
 0x2e2   :  { %5916 = vmatpush.bf16.msra.mxu2 %v8990_v19  ;;  %v9419_v35 = vld [vmem:[%s16255_s1 + $0x1598] sm:$0xf0]  ;;  %v10800_v20 = vld [vmem:[%s16255_s1 + $0x178c] sm:$0xf]  ;;  %v9294_v3 = vor.u32 %v10704_v62, %v9291_v63 }
 0x2e3   :  { %5929 = vmatpush.bf16.msra.mxu3 %v9118_v4  ;;  %v9547_v19 = vld [vmem:[%s16255_s1 + $0x1698] sm:$0xf0]  ;;  %v9422_v55 = vor.u32 %v10736_v28, %v9419_v35  ;;  %v10700_v6 = vld [vmem:[%s16255_s1 + $0x146c] sm:$0xf] }
 0x2e4   :  { %5891 = vmatpush.bf16.msra.mxu0 %v8718_v57  ;;  %v9675_v22 = vld [vmem:[%s16255_s1 + $0x1798] sm:$0xf0]  ;;  %v5685_v4 = vpop.f32.mrf.mxu0  ;;  %v9550_v0 = vor.u32 %v10768_v1, %v9547_v19  ;;  %v10732_v8 = vld [vmem:[%s16255_s1 + $0x156c] sm:$0xf] }
 0x2e5   :  { %5904 = vmatpush.bf16.msra.mxu1 %v8846_v24  ;;  %v9275_v34 = vld [vmem:[%s16255_s1 + $0x1478] sm:$0xf0]  ;;  %v5698_v13 = vpop.f32.mrf.mxu1  ;;  %v9678_v53 = vor.u32 %v10800_v20, %v9675_v22  ;;  %v10764_v5 = vld [vmem:[%s16255_s1 + $0x166c] sm:$0xf] }
 0x2e6   :  { %5917 = vmatpush.bf16.msra.mxu2 %v8974_v10  ;;  %v9403_v57 = vld [vmem:[%s16255_s1 + $0x1578] sm:$0xf0]  ;;  %v10796_v14 = vld [vmem:[%s16255_s1 + $0x176c] sm:$0xf]  ;;  %v9278_v26 = vor.u32 %v10700_v6, %v9275_v34  ;;  %v10830_v6 = vld [vmem:[%s16258_s3 + $0x74] sm:$0xf0] }
 0x2e7   :  { %5930 = vmatpush.bf16.msra.mxu3 %v9102_v38  ;;  %5892 = vmatmul.bf16.vlgmr.msra.gmra.mxu0 %v12010_v37  ;;  %v10804_v37 = vld [vmem:[%s16255_s1 + $0x17ac] sm:$0xf]  ;;  %v9531_v17 = vld [vmem:[%s16255_s1 + $0x1678] sm:$0xf0]  ;;  %v9406_v27 = vor.u32 %v10732_v8, %v9403_v57  ;;  %v9849_v34 = vld [vmem:[%s16258_s3 + $0xf0] sm:$0xf] }
 0x2e8   :  { %5936 = vmatpush.bf16.msrb.mxu0 %v9342_v15  ;;  %5905 = vmatmul.bf16.vlgmr.msra.gmra.mxu1 %v12023_v46  ;;  %v9566_v46 = vor.u32 %v10772_v33, %v9563_v23  ;;  %v9694_v18 = vor.u32 %v10804_v37, %v9691_v61  ;;  %v9659_v24 = vld [vmem:[%s16255_s1 + $0x1778] sm:$0xf0]  ;;  %v9534_v38 = vor.u32 %v10764_v5, %v9531_v17  ;;  %v10696_v15 = vld [vmem:[%s16255_s1 + $0x144c] sm:$0xf] }
 0x2e9   :  { %5949 = vmatpush.bf16.msrb.mxu1 %v9470_v40  ;;  %5918 = vmatmul.bf16.vlgmr.msra.gmra.mxu2 %v12021_v45  ;;  %v9438_v45 = vor.u32 %v10740_v29, %v9435_v54  ;;  %v9259_v40 = vld [vmem:[%s16255_s1 + $0x1458] sm:$0xf0]  ;;  %v9662_v41 = vor.u32 %v10796_v14, %v9659_v24  ;;  %v10792_v51 = vld [vmem:[%s16255_s1 + $0x174c] sm:$0xf] }
 0x2ea   :  { %5962 = vmatpush.bf16.msrb.mxu2 %v9598_v43  ;;  %5931 = vmatmul.bf16.vlgmr.msra.gmra.mxu3 %v12031_v49  ;;  %v10898_v49 = vld [vmem:[%s16257_s2] sm:$0xf]  ;;  %v10728_v43 = vld [vmem:[%s16255_s1 + $0x154c] sm:$0xf]  ;;  %v9387_v42 = vld [vmem:[%s16255_s1 + $0x1558] sm:$0xf0] }
 0x2eb   :  { %5975 = vmatpush.bf16.msrb.mxu3 %v9726_v44  ;;  %v811_v31 = vperm.slane %v10898_v49, 3  ;;  %v10760_v44 = vld [vmem:[%s16255_s1 + $0x164c] sm:$0xf]  ;;  %v9515_v48 = vld [vmem:[%s16255_s1 + $0x1658] sm:$0xf0]  ;;  %v9390_v32 = vor.u32 %v10728_v43, %v9387_v42 }
 0x2ec   :  { %5937 = vmatpush.bf16.msrb.mxu0 %v9326_v21  ;;  %v5711_v47 = vpop.f32.mrf.mxu2  ;;  %v9643_v56 = vld [vmem:[%s16255_s1 + $0x1758] sm:$0xf0]  ;;  %v9262_v21 = vor.u32 %v10696_v15, %v9259_v40  ;;  %v9518_v60 = vor.u32 %v10760_v44, %v9515_v48  ;;  %v10692_v29 = vld [vmem:[%s16255_s1 + $0x142c] sm:$0xf]  ;;  %v10844_v15 = vld [vmem:[%s16258_s3 + $0xe4] sm:$0xf0] }
 0x2ed   :  { %5950 = vmatpush.bf16.msrb.mxu1 %v9454_v25  ;;  %v5686_v9 = vadd.f32 %v5685_v4, %v811_v31  ;;  %v5724_v50 = vpop.f32.mrf.mxu3  ;;  %v10724_v54 = vld [vmem:[%s16255_s1 + $0x152c] sm:$0xf]  ;;  %v5700_v33 = vpop.f32.mrf.mxu1  ;;  %v9646_v23 = vor.u32 %v10792_v51, %v9643_v56  ;;  %v9371_v37 = vld [vmem:[%s16255_s1 + $0x1538] sm:$0xf0]  ;;  %v9905_v40 = vld [vmem:[%s16258_s3 + $0x160] sm:$0xf] }
 0x2ee   :  { %5963 = vmatpush.bf16.msrb.mxu2 %v9582_v58  ;;  %v5687_v58 = vpop.f32.mrf.mxu0  ;;  %v10756_v61 = vld [vmem:[%s16255_s1 + $0x162c] sm:$0xf]  ;;  %v9227_v28 = vld [vmem:[%s16255_s1 + $0x1418] sm:$0xf0]  ;;  %v9374_v49 = vor.u32 %v10724_v54, %v9371_v37  ;;  %v10860_v43 = vld [vmem:[%s16258_s3 + $0x164] sm:$0xf0] }
 0x2ef   :  { %5976 = vmatpush.bf16.msrb.mxu3 %v9710_v30  ;;  %v5699_v10 = vadd.f32 %v5698_v13, %v5686_v9  ;;  %v9243_v30 = vld [vmem:[%s16255_s1 + $0x1438] sm:$0xf0]  ;;  %v10788_v62 = vld [vmem:[%s16255_s1 + $0x172c] sm:$0xf]  ;;  %v10846_v9 = vld [vmem:[%s16258_s3 + $0xf4] sm:$0xf0]  ;;  %v9906_v42 = vor.u32 %v10860_v43, %v9905_v40 }
 0x2f0   :  { %5938 = vmatpush.bf16.msrb.mxu0 %v9310_v2  ;;  %v9499_v2 = vld [vmem:[%s16255_s1 + $0x1638] sm:$0xf0]  ;;  %v10688_v63 = vld [vmem:[%s16255_s1 + $0x140c] sm:$0xf]  ;;  %v9913_v13 = vld [vmem:[%s16258_s3 + $0x170] sm:$0xf]  ;;  %v9850_v24 = vor.u32 %v10846_v9, %v9849_v34 }
 0x2f1   :  { %5951 = vmatpush.bf16.msrb.mxu1 %v9438_v45  ;;  %v5712_v39 = vadd.f32 %v5711_v47, %v5699_v10  ;;  %v9627_v45 = vld [vmem:[%s16255_s1 + $0x1738] sm:$0xf0]  ;;  %v9502_v31 = vor.u32 %v10756_v61, %v9499_v2  ;;  %v10752_v1 = vld [vmem:[%s16255_s1 + $0x160c] sm:$0xf]  ;;  %v9230_v8 = vor.u32 %v10688_v63, %v9227_v28  ;;  %v9769_v44 = vld [vmem:[%s16258_s3 + $0x50] sm:$0xf] }
 0x2f2   :  { %5964 = vmatpush.bf16.msrb.mxu2 %v9566_v46  ;;  %v9246_v46 = vor.u32 %v10692_v29, %v9243_v30  ;;  %v9355_v35 = vld [vmem:[%s16255_s1 + $0x1518] sm:$0xf0]  ;;  %v9630_v20 = vor.u32 %v10788_v62, %v9627_v45  ;;  %v10826_v48 = vld [vmem:[%s16258_s3 + $0x54] sm:$0xf0]  ;;  %v9897_v51 = vld [vmem:[%s16258_s3 + $0x150] sm:$0xf] }
 0x2f3   :  { %5977 = vmatpush.bf16.msrb.mxu3 %v9694_v18  ;;  %v15738_v25 = vadd.f32 %v5724_v50, %v5712_v39  ;;  %v10720_v18 = vld [vmem:[%s16255_s1 + $0x150c] sm:$0xf]  ;;  %v9483_v22 = vld [vmem:[%s16255_s1 + $0x1618] sm:$0xf0]  ;;  %v9833_v39 = vld [vmem:[%s16258_s3 + $0xd0] sm:$0xf] }
 0x2f4   :  { %5939 = vmatpush.bf16.msrb.mxu0 %v9294_v3  ;;  %v5713_v19 = vpop.f32.mrf.mxu2  ;;  %v10784_v3 = vld [vmem:[%s16255_s1 + $0x170c] sm:$0xf]  ;;  %v9611_v4 = vld [vmem:[%s16255_s1 + $0x1718] sm:$0xf0]  ;;  %v9358_v57 = vor.u32 %v10720_v18, %v9355_v35  ;;  %v9486_v5 = vor.u32 %v10752_v1, %v9483_v22  ;;  %v10842_v50 = vld [vmem:[%s16258_s3 + $0xd4] sm:$0xf0] }
 0x2f5   :  { %5952 = vmatpush.bf16.msrb.mxu1 %v9422_v55  ;;  %v5726_v55 = vpop.f32.mrf.mxu3  ;;  %v9614_v17 = vor.u32 %v10784_v3, %v9611_v4  ;;  %v10858_v56 = vld [vmem:[%s16258_s3 + $0x154] sm:$0xf0]  ;;  %v9761_v58 = vld [vmem:[%s16258_s3 + $0x40] sm:$0xf]  ;;  %v10856_v29 = vld [vmem:[%s16258_s3 + $0x144] sm:$0xf0] }
 0x2f6   :  { %5965 = vmatpush.bf16.msrb.mxu2 %v9550_v0  ;;  %v9785_v0 = vld [vmem:[%s16258_s3 + $0x70] sm:$0xf]  ;;  %v10822_v61 = vld [vmem:[%s16258_s3 + $0x34] sm:$0xf0]  ;;  %v9745_v35 = vld [vmem:[%s16258_s3 + $0x20] sm:$0xf] }
 0x2f7   :  { %5978 = vmatpush.bf16.msrb.mxu3 %v9678_v53  ;;  %v10862_v53 = vld [vmem:[%s16258_s3 + $0x174] sm:$0xf0]  ;;  %v9786_v14 = vor.u32 %v10830_v6, %v9785_v0  ;;  %v9753_v37 = vld [vmem:[%s16258_s3 + $0x30] sm:$0xf]  ;;  %v10820_v1 = vld [vmem:[%s16258_s3 + $0x24] sm:$0xf0] }
 0x2f8   :  { %5940 = vmatpush.bf16.msrb.mxu0 %v9278_v26  ;;  %v9914_v10 = vor.u32 %v10862_v53, %v9913_v13  ;;  %v9777_v26 = vld [vmem:[%s16258_s3 + $0x60] sm:$0xf]  ;;  %v9817_v2 = vld [vmem:[%s16258_s3 + $0xb0] sm:$0xf]  ;;  %v10854_v28 = vld [vmem:[%s16258_s3 + $0x134] sm:$0xf0]  ;;  %v9746_v6 = vor.u32 %v10820_v1, %v9745_v35 }
 0x2f9   :  { %5953 = vmatpush.bf16.msrb.mxu1 %v9406_v27  ;;  %v10828_v27 = vld [vmem:[%s16258_s3 + $0x64] sm:$0xf0]  ;;  %v9881_v63 = vld [vmem:[%s16258_s3 + $0x130] sm:$0xf]  ;;  %v9809_v19 = vld [vmem:[%s16258_s3 + $0xa0] sm:$0xf] }
 0x2fa   :  { %5966 = vmatpush.bf16.msrb.mxu2 %v9534_v38  ;;  %v9841_v38 = vld [vmem:[%s16258_s3 + $0xe0] sm:$0xf]  ;;  %v9778_v47 = vor.u32 %v10828_v27, %v9777_v26  ;;  %v10836_v22 = vld [vmem:[%s16258_s3 + $0xa4] sm:$0xf0]  ;;  %v9737_v53 = vld [vmem:[%s16258_s3 + $0x10] sm:$0xf] }
 0x2fb   :  { %5979 = vmatpush.bf16.msrb.mxu3 %v9662_v41  ;;  %v9842_v41 = vor.u32 %v10844_v15, %v9841_v38  ;;  %v9873_v3 = vld [vmem:[%s16258_s3 + $0x120] sm:$0xf]  ;;  %v10852_v4 = vld [vmem:[%s16258_s3 + $0x124] sm:$0xf0]  ;;  %v9810_v9 = vor.u32 %v10836_v22, %v9809_v19  ;;  %v9899_v35 = vld [vmem:[%s16258_s3 + $0x158] sm:$0xf0] }
 0x2fc   :  { %5941 = vmatpush.bf16.msrb.mxu0 %v9262_v21  ;;  %v9898_v21 = vor.u32 %v10858_v56, %v9897_v51  ;;  %v9874_v13 = vor.u32 %v10852_v4, %v9873_v3  ;;  %v9729_v27 = vld [vmem:[%s16258_s3] sm:$0xf]  ;;  %v10816_v40 = vld [vmem:[%s16258_s3 + $0x4] sm:$0xf0]  ;;  %v10845_v51 = vld [vmem:[%s16258_s3 + $0xf4] sm:$0xf] }
 0x2fd   :  { %5954 = vmatpush.bf16.msrb.mxu1 %v9390_v32  ;;  %v10824_v32 = vld [vmem:[%s16258_s3 + $0x44] sm:$0xf0]  ;;  %v9793_v43 = vld [vmem:[%s16258_s3 + $0x80] sm:$0xf]  ;;  %v9851_v56 = vld [vmem:[%s16258_s3 + $0xf8] sm:$0xf0] }
 0x2fe   :  { %5967 = vmatpush.bf16.msrb.mxu2 %v9518_v60  ;;  %v9889_v60 = vld [vmem:[%s16258_s3 + $0x140] sm:$0xf]  ;;  %v9762_v30 = vor.u32 %v10824_v32, %v9761_v58  ;;  %v5988_v58 = vmax.f32 %v13145_v52, 0.0  ;;  %v5989_v32 = vmax.f32 %v14341_v36, 0.0  ;;  %v10843_v52 = vld [vmem:[%s16258_s3 + $0xe4] sm:$0xf] }
 0x2ff   :  { %5980 = vmatpush.bf16.msrb.mxu3 %v9646_v23  ;;  %v9890_v23 = vor.u32 %v10856_v29, %v9889_v60  ;;  %v5990_v60 = vmax.f32 %v15537_v59, 0.0  ;;  %v9843_v36 = vld [vmem:[%s16258_s3 + $0xe8] sm:$0xf0]  ;;  %v10859_v59 = vld [vmem:[%s16258_s3 + $0x164] sm:$0xf] }
 0x300   :  { %5942 = vmatpush.bf16.msrb.mxu0 %v9246_v46  ;;  %v10838_v46 = vld [vmem:[%s16258_s3 + $0xb4] sm:$0xf0]  ;;  %v9763_v3 = vld [vmem:[%s16258_s3 + $0x48] sm:$0xf0]  ;;  %v10839_v4 = vld [vmem:[%s16258_s3 + $0xc4] sm:$0xf] }
 0x301   :  { %5955 = vmatpush.bf16.msrb.mxu1 %v9374_v49  ;;  %v9818_v18 = vor.u32 %v10838_v46, %v9817_v2  ;;  %v15980_v2 = vpack.c.bf16 %v5989_v32, %v5989_v32  ;;  %v9846_v46 = vor.u32 %v10843_v52, %v9843_v36  ;;  %v10815_v52 = vld [vmem:[%s16258_s3 + $0x4] sm:$0xf] }
 0x302   :  { %5968 = vmatpush.bf16.msrb.mxu2 %v9502_v31  ;;  %v9754_v31 = vor.u32 %v10822_v61, %v9753_v37  ;;  %v9907_v37 = vld [vmem:[%s16258_s3 + $0x168] sm:$0xf0]  ;;  %v15978_v61 = vpack.c.bf16 %v5988_v58, %v5988_v58 }
 0x303   :  { %5981 = vmatpush.bf16.msrb.mxu3 %v9630_v20 }
 0x304   :  { %5943 = vmatpush.bf16.msrb.mxu0 %v9230_v8  ;;  %v5737_v54 = vpop.f32.mrf.mxu0 }
 0x305   :  { %5956 = vmatpush.bf16.msrb.mxu1 %v9358_v57  ;;  %v5738_v62 = vadd.f32 %v5737_v54, %v15738_v25  ;;  %v5750_v45 = vpop.f32.mrf.mxu1  ;;  %v9882_v25 = vor.u32 %v10854_v28, %v9881_v63  ;;  %v10818_v57 = vld [vmem:[%s16258_s3 + $0x14] sm:$0xf0]  ;;  %v10827_v54 = vld [vmem:[%s16258_s3 + $0x64] sm:$0xf]  ;;  %v10825_v63 = vld [vmem:[%s16258_s3 + $0x54] sm:$0xf]  ;;  %v9910_v28 = vor.u32 %v10859_v59, %v9907_v37 }
 0x306   :  { %5969 = vmatpush.bf16.msrb.mxu2 %v9486_v5  ;;  %v9801_v5 = vld [vmem:[%s16258_s3 + $0x90] sm:$0xf]  ;;  %v9738_v26 = vor.u32 %v10818_v57, %v9737_v53  ;;  %v9731_v59 = vld [vmem:[%s16258_s3 + $0x8] sm:$0xf0]  ;;  %v10831_v37 = vld [vmem:[%s16258_s3 + $0x84] sm:$0xf] }
 0x307   :  { %5982 = vmatpush.bf16.msrb.mxu3 %v9614_v17  ;;  %5944 = vmatmul.bf16.vlgmr.msrb.gmra.mxu0 %v12225_v7  ;;  %v9770_v7 = vor.u32 %v10826_v48, %v9769_v44  ;;  %v5751_v49 = vadd.f32 %v5750_v45, %v5738_v62  ;;  %v10848_v44 = vld [vmem:[%s16258_s3 + $0x104] sm:$0xf0]  ;;  %v10829_v48 = vld [vmem:[%s16258_s3 + $0x74] sm:$0xf]  ;;  %v15982_v62 = vpack.c.bf16 %v5990_v60, %v5990_v60 }
 0x308   :  { %6386 = vmatpush.bf16.msra.mxu0 %v9786_v14  ;;  %5957 = vmatmul.bf16.vlgmr.msrb.gmra.mxu1 %v12238_v12  ;;  %v9834_v12 = vor.u32 %v10842_v50, %v9833_v39  ;;  %v10834_v14 = vld [vmem:[%s16258_s3 + $0x94] sm:$0xf0]  ;;  %v9787_v50 = vld [vmem:[%s16258_s3 + $0x78] sm:$0xf0]  ;;  %v10833_v60 = vld [vmem:[%s16258_s3 + $0x94] sm:$0xf] }
 0x309   :  { %6399 = vmatpush.bf16.msra.mxu1 %v9850_v24  ;;  %5970 = vmatmul.bf16.vlgmr.msrb.gmra.mxu2 %v12236_v11  ;;  %v9825_v11 = vld [vmem:[%s16258_s3 + $0xc0] sm:$0xf]  ;;  %v9865_v24 = vld [vmem:[%s16258_s3 + $0x110] sm:$0xf]  ;;  %v9802_v38 = vor.u32 %v10834_v14, %v9801_v5  ;;  %v9790_v29 = vor.u32 %v10829_v48, %v9787_v50  ;;  %v10821_v5 = vld [vmem:[%s16258_s3 + $0x34] sm:$0xf] }
 0x30a   :  { %6412 = vmatpush.bf16.msra.mxu2 %v9914_v10  ;;  %5983 = vmatmul.bf16.vlgmr.msrb.gmra.mxu3 %v12246_v16  ;;  %v10840_v16 = vld [vmem:[%s16258_s3 + $0xc4] sm:$0xf0]  ;;  %v10850_v10 = vld [vmem:[%s16258_s3 + $0x114] sm:$0xf0]  ;;  %v9755_v14 = vld [vmem:[%s16258_s3 + $0x38] sm:$0xf0] }
 0x30b   :  { %v9826_v33 = vor.u32 %v10840_v16, %v9825_v11  ;;  %v9866_v15 = vor.u32 %v10850_v10, %v9865_v24  ;;  %v10837_v24 = vld [vmem:[%s16258_s3 + $0xb4] sm:$0xf]  ;;  %v10851_v48 = vld [vmem:[%s16258_s3 + $0x124] sm:$0xf] }
 0x30c   :  { %6387 = vmatpush.bf16.msra.mxu0 %v9778_v47  ;;  %v5763_v20 = vpop.f32.mrf.mxu2  ;;  %v5739_v8 = vpop.f32.mrf.mxu0  ;;  %v10832_v47 = vld [vmem:[%s16258_s3 + $0x84] sm:$0xf0] }
 0x30d   :  { %6400 = vmatpush.bf16.msra.mxu1 %v9842_v41  ;;  %v5764_v55 = vadd.f32 %v5763_v20, %v5751_v49  ;;  %v5776_v0 = vpop.f32.mrf.mxu3  ;;  %v5752_v17 = vpop.f32.mrf.mxu1  ;;  %v9794_v11 = vor.u32 %v10832_v47, %v9793_v43  ;;  %v9771_v49 = vld [vmem:[%s16258_s3 + $0x58] sm:$0xf0]  ;;  %v10823_v20 = vld [vmem:[%s16258_s3 + $0x44] sm:$0xf]  ;;  %v9747_v47 = vld [vmem:[%s16258_s3 + $0x28] sm:$0xf0] }
 0x30e   :  { %6413 = vmatpush.bf16.msra.mxu2 %v9906_v42  ;;  %v9857_v42 = vld [vmem:[%s16258_s3 + $0x100] sm:$0xf]  ;;  %v9774_v1 = vor.u32 %v10825_v63, %v9771_v49  ;;  %v9859_v63 = vld [vmem:[%s16258_s3 + $0x108] sm:$0xf0] }
 0x30f   :  { %v15901_v34 = vadd.f32 %v5776_v0, %v5764_v55  ;;  %v9858_v16 = vor.u32 %v10848_v44, %v9857_v42  ;;  %v9827_v55 = vld [vmem:[%s16258_s3 + $0xc8] sm:$0xf0]  ;;  %v10855_v0 = vld [vmem:[%s16258_s3 + $0x144] sm:$0xf] }
 0x310   :  { %6388 = vmatpush.bf16.msra.mxu0 %v9770_v7  ;;  %v9730_v7 = vor.u32 %v10816_v40, %v9729_v27  ;;  %v9830_v53 = vor.u32 %v10839_v4, %v9827_v55  ;;  %v9883_v27 = vld [vmem:[%s16258_s3 + $0x138] sm:$0xf0]  ;;  %v10819_v40 = vld [vmem:[%s16258_s3 + $0x24] sm:$0xf]  ;;  %v9811_v42 = vld [vmem:[%s16258_s3 + $0xa8] sm:$0xf0] }
 0x311   :  { %6401 = vmatpush.bf16.msra.mxu1 %v9834_v12  ;;  %v10861_v12 = vld [vmem:[%s16258_s3 + $0x174] sm:$0xf]  ;;  %v10874_v4 = vld [vmem:[%s16258_s3 + $0x1d4] sm:$0xf0] }
 0x312   :  { %6414 = vmatpush.bf16.msra.mxu2 %v9898_v21  ;;  %v9915_v21 = vld [vmem:[%s16258_s3 + $0x178] sm:$0xf0] }
 0x314   :  { %6389 = vmatpush.bf16.msra.mxu0 %v9762_v30  ;;  %v5765_v41 = vpop.f32.mrf.mxu2  ;;  %v9854_v30 = vor.u32 %v10845_v51, %v9851_v56 }
 0x315   :  { %6402 = vmatpush.bf16.msra.mxu1 %v9826_v33  ;;  %v5778_v39 = vpop.f32.mrf.mxu3  ;;  %v9918_v33 = vor.u32 %v10861_v12, %v9915_v21  ;;  %v10835_v41 = vld [vmem:[%s16258_s3 + $0xa4] sm:$0xf]  ;;  %v10817_v21 = vld [vmem:[%s16258_s3 + $0x14] sm:$0xf] }
 0x316   :  { %6415 = vmatpush.bf16.msra.mxu2 %v9890_v23  ;;  %v9779_v23 = vld [vmem:[%s16258_s3 + $0x68] sm:$0xf0]  ;;  %v9814_v12 = vor.u32 %v10835_v41, %v9811_v42  ;;  %v10877_v42 = vld [vmem:[%s16258_s3 + $0x1f4] sm:$0xf] }
 0x317   :  { %v9782_v45 = vor.u32 %v10827_v54, %v9779_v23  ;;  %v9875_v39 = vld [vmem:[%s16258_s3 + $0x128] sm:$0xf0]  ;;  %v9867_v54 = vld [vmem:[%s16258_s3 + $0x118] sm:$0xf0] }
 0x318   :  { %6390 = vmatpush.bf16.msra.mxu0 %v9754_v31  ;;  %v10841_v31 = vld [vmem:[%s16258_s3 + $0xd4] sm:$0xf] }
 0x319   :  { %6403 = vmatpush.bf16.msra.mxu1 %v9818_v18  ;;  %v9835_v18 = vld [vmem:[%s16258_s3 + $0xd8] sm:$0xf0] }
 0x31a   :  { %6416 = vmatpush.bf16.msra.mxu2 %v9882_v25  ;;  %v10857_v25 = vld [vmem:[%s16258_s3 + $0x154] sm:$0xf]  ;;  %v9838_v19 = vor.u32 %v10841_v31, %v9835_v18  ;;  %v9734_v31 = vor.u32 %v10815_v52, %v9731_v59 }
 0x31b   :  { %v9902_v22 = vor.u32 %v10857_v25, %v9899_v35  ;;  %v9977_v35 = vld [vmem:[%s16258_s3 + $0x1f0] sm:$0xf] }
 0x31c   :  { %6391 = vmatpush.bf16.msra.mxu0 %v9746_v6  ;;  %v9891_v6 = vld [vmem:[%s16258_s3 + $0x148] sm:$0xf0] }
 0x31d   :  { %6404 = vmatpush.bf16.msra.mxu1 %v9810_v9  ;;  %v9894_v17 = vor.u32 %v10855_v0, %v9891_v6 }
 0x31e   :  { %6417 = vmatpush.bf16.msra.mxu2 %v9874_v13  ;;  %v9766_v13 = vor.u32 %v10823_v20, %v9763_v3  ;;  %v9961_v3 = vld [vmem:[%s16258_s3 + $0x1d0] sm:$0xf] }
 0x31f   :  { %v9962_v0 = vor.u32 %v10874_v4, %v9961_v3 }
 0x320   :  { %6392 = vmatpush.bf16.msra.mxu0 %v9738_v26  ;;  %v10853_v26 = vld [vmem:[%s16258_s3 + $0x134] sm:$0xf] }
 0x321   :  { %6405 = vmatpush.bf16.msra.mxu1 %v9802_v38  ;;  %v9758_v38 = vor.u32 %v10821_v5, %v9755_v14  ;;  %v9886_v43 = vor.u32 %v10853_v26, %v9883_v27  ;;  %v9945_v5 = vld [vmem:[%s16258_s3 + $0x1b0] sm:$0xf] }
 0x322   :  { %6418 = vmatpush.bf16.msra.mxu2 %v9866_v15 }
 0x324   :  { %6393 = vmatpush.bf16.msra.mxu0 %v9730_v7  ;;  %v5789_v8 = vpop.f32.mrf.mxu0  ;;  %v9750_v7 = vor.u32 %v10819_v40, %v9747_v47  ;;  %v10864_v47 = vld [vmem:[%s16258_s3 + $0x184] sm:$0xf0] }
 0x325   :  { %6406 = vmatpush.bf16.msra.mxu1 %v9794_v11  ;;  %v5790_v9 = vadd.f32 %v5789_v8, %v15901_v34  ;;  %v5802_v57 = vpop.f32.mrf.mxu1  ;;  %v9819_v34 = vld [vmem:[%s16258_s3 + $0xb8] sm:$0xf0]  ;;  %v9878_v11 = vor.u32 %v10851_v48, %v9875_v39 }
 0x326   :  { %6419 = vmatpush.bf16.msra.mxu2 %v9858_v16  ;;  %v9822_v15 = vor.u32 %v10837_v24, %v9819_v34  ;;  %v9739_v16 = vld [vmem:[%s16258_s3 + $0x18] sm:$0xf0]  ;;  %v9937_v24 = vld [vmem:[%s16258_s3 + $0x1a0] sm:$0xf]  ;;  %v10868_v34 = vld [vmem:[%s16258_s3 + $0x1a4] sm:$0xf0] }
 0x327   :  { %6394 = vmatmul.bf16.vlgmr.msra.gmra.mxu0 %v15978_v61  ;;  %v5803_v10 = vadd.f32 %v5802_v57, %v5790_v9  ;;  %v9953_v9 = vld [vmem:[%s16258_s3 + $0x1c0] sm:$0xf]  ;;  %v9938_v27 = vor.u32 %v10868_v34, %v9937_v24 }
 0x328   :  { %6438 = vmatpush.bf16.msrb.mxu0 %v9790_v29  ;;  %6407 = vmatmul.bf16.vlgmr.msra.gmra.mxu1 %v15980_v2  ;;  %v9803_v29 = vld [vmem:[%s16258_s3 + $0x98] sm:$0xf0]  ;;  %v6060_v34 = vld [vmem:[%s16259_s4] sm:$0x3] }
 0x329   :  { %6451 = vmatpush.bf16.msrb.mxu1 %v9854_v30  ;;  %6420 = vmatmul.bf16.vlgmr.msra.gmra.mxu2 %v15982_v62  ;;  %v10849_v30 = vld [vmem:[%s16258_s3 + $0x114] sm:$0xf]  ;;  %v9806_v23 = vor.u32 %v10833_v60, %v9803_v29 }
 0x32a   :  { %6464 = vmatpush.bf16.msrb.mxu2 %v9918_v33  ;;  %v9742_v33 = vor.u32 %v10817_v21, %v9739_v16  ;;  %v9870_v36 = vor.u32 %v10849_v30, %v9867_v54  ;;  %v9963_v21 = vld [vmem:[%s16258_s3 + $0x1d8] sm:$0xf0]  ;;  %v10871_v54 = vld [vmem:[%s16258_s3 + $0x1c4] sm:$0xf] }
 0x32c   :  { %6439 = vmatpush.bf16.msrb.mxu0 %v9782_v45  ;;  %v5815_v44 = vpop.f32.mrf.mxu2  ;;  %v5791_v56 = vpop.f32.mrf.mxu0  ;;  %v9795_v45 = vld [vmem:[%s16258_s3 + $0x88] sm:$0xf0] }
 0x32d   :  { %6452 = vmatpush.bf16.msrb.mxu1 %v9846_v46  ;;  %v5816_v50 = vadd.f32 %v5815_v44, %v5803_v10  ;;  %v5828_v51 = vpop.f32.mrf.mxu3  ;;  %v5804_v58 = vpop.f32.mrf.mxu1  ;;  %v10847_v46 = vld [vmem:[%s16258_s3 + $0x104] sm:$0xf]  ;;  %v9798_v18 = vor.u32 %v10831_v37, %v9795_v45  ;;  %v9979_v44 = vld [vmem:[%s16258_s3 + $0x1f8] sm:$0xf0]  ;;  %v9971_v56 = vld [vmem:[%s16258_s3 + $0x1e8] sm:$0xf0] }
 0x32e   :  { %6465 = vmatpush.bf16.msrb.mxu2 %v9910_v28  ;;  %v9862_v25 = vor.u32 %v10847_v46, %v9859_v63  ;;  %v9982_v48 = vor.u32 %v10877_v42, %v9979_v44  ;;  %v10867_v45 = vld [vmem:[%s16258_s3 + $0x1a4] sm:$0xf]  ;;  %v9939_v46 = vld [vmem:[%s16258_s3 + $0x1a8] sm:$0xf0]  ;;  %v10886_v42 = vld [vmem:[%s16260_s5 + $0x38] sm:$0xff] }
 0x32f   :  { %v16063_v32 = vadd.f32 %v5828_v51, %v5816_v50  ;;  %v10875_v51 = vld [vmem:[%s16258_s3 + $0x1e4] sm:$0xf]  ;;  %v10894_v44 = vld [vmem:[%s16260_s5 + $0x78] sm:$0xff] }
 0x330   :  { %6440 = vmatpush.bf16.msrb.mxu0 %v9774_v1  ;;  %v10878_v1 = vld [vmem:[%s16258_s3 + $0x1f4] sm:$0xf0] }
 0x331   :  { %6453 = vmatpush.bf16.msrb.mxu1 %v9838_v19  ;;  %v9978_v19 = vor.u32 %v10878_v1, %v9977_v35 }
 0x332   :  { %6466 = vmatpush.bf16.msrb.mxu2 %v9902_v22 }
 0x333   :  { %6425 = vmatpush.bf16.msra.mxu3 %v9978_v19  ;;  %v10863_v19 = vld [vmem:[%s16258_s3 + $0x184] sm:$0xf] }
 0x334   :  { %6441 = vmatpush.bf16.msrb.mxu0 %v9766_v13  ;;  %v5817_v28 = vpop.f32.mrf.mxu2  ;;  %v10872_v13 = vld [vmem:[%s16258_s3 + $0x1c4] sm:$0xf0] }
 0x335   :  { %6454 = vmatpush.bf16.msrb.mxu1 %v9830_v53  ;;  %v5830_v49 = vpop.f32.mrf.mxu3  ;;  %v9954_v57 = vor.u32 %v10872_v13, %v9953_v9 }
 0x336   :  { %6467 = vmatpush.bf16.msrb.mxu2 %v9894_v17  ;;  %v10870_v17 = vld [vmem:[%s16258_s3 + $0x1b4] sm:$0xf0]  ;;  %v9942_v49 = vor.u32 %v10867_v45, %v9939_v46  ;;  %v10889_v45 = vld [vmem:[%s16260_s5 + $0x50] sm:$0xff]  ;;  %v10888_v46 = vld [vmem:[%s16260_s5 + $0x48] sm:$0xff] }
 0x337   :  { %v9946_v14 = vor.u32 %v10870_v17, %v9945_v5 }
 0x338   :  { %6442 = vmatpush.bf16.msrb.mxu0 %v9758_v38  ;;  %v9929_v38 = vld [vmem:[%s16258_s3 + $0x190] sm:$0xf] }
 0x339   :  { %6455 = vmatpush.bf16.msrb.mxu1 %v9822_v15  ;;  %v10866_v15 = vld [vmem:[%s16258_s3 + $0x194] sm:$0xf0] }
 0x33a   :  { %6468 = vmatpush.bf16.msrb.mxu2 %v9886_v43  ;;  %v9930_v40 = vor.u32 %v10866_v15, %v9929_v38  ;;  %v9921_v43 = vld [vmem:[%s16258_s3 + $0x180] sm:$0xf] }
 0x33b   :  { %v9922_v41 = vor.u32 %v10864_v47, %v9921_v43 }
 0x33c   :  { %6443 = vmatpush.bf16.msrb.mxu0 %v9750_v7  ;;  %v9974_v7 = vor.u32 %v10875_v51, %v9971_v56  ;;  %v10884_v51 = vld [vmem:[%s16260_s5 + $0x28] sm:$0xff] }
 0x33d   :  { %6456 = vmatpush.bf16.msrb.mxu1 %v9814_v12  ;;  %v10873_v12 = vld [vmem:[%s16258_s3 + $0x1d4] sm:$0xf]  ;;  %v10892_v56 = vld [vmem:[%s16260_s5 + $0x68] sm:$0xff] }
 0x33e   :  { %6469 = vmatpush.bf16.msrb.mxu2 %v9878_v11  ;;  %v9966_v58 = vor.u32 %v10873_v12, %v9963_v21  ;;  %v6063_v12 = vperm.slane %v6060_v34, 1  ;;  %v10882_v21 = vld [vmem:[%s16260_s5 + $0x18] sm:$0xff] }
 0x340   :  { %6444 = vmatpush.bf16.msrb.mxu0 %v9742_v33  ;;  %v9955_v33 = vld [vmem:[%s16258_s3 + $0x1c8] sm:$0xf0] }
 0x341   :  { %6457 = vmatpush.bf16.msrb.mxu1 %v9806_v23  ;;  %v9958_v23 = vor.u32 %v10871_v54, %v9955_v33 }
 0x342   :  { %6470 = vmatpush.bf16.msrb.mxu2 %v9870_v36  ;;  %v10869_v36 = vld [vmem:[%s16258_s3 + $0x1b4] sm:$0xf] }
 0x344   :  { %6445 = vmatpush.bf16.msrb.mxu0 %v9734_v31  ;;  %v5841_v20 = vpop.f32.mrf.mxu0  ;;  %v10865_v31 = vld [vmem:[%s16258_s3 + $0x194] sm:$0xf] }
 0x345   :  { %6458 = vmatpush.bf16.msrb.mxu1 %v9798_v18  ;;  %v5854_v22 = vpop.f32.mrf.mxu1  ;;  %v5842_v16 = vadd.f32 %v5841_v20, %v16063_v32  ;;  %v9947_v32 = vld [vmem:[%s16258_s3 + $0x1b8] sm:$0xf0]  ;;  %v9923_v20 = vld [vmem:[%s16258_s3 + $0x188] sm:$0xf0] }
 0x346   :  { %6471 = vmatpush.bf16.msrb.mxu2 %v9862_v25  ;;  %v9950_v37 = vor.u32 %v10869_v36, %v9947_v32  ;;  %v9931_v18 = vld [vmem:[%s16258_s3 + $0x198] sm:$0xf0]  ;;  %v10879_v32 = vld [vmem:[%s16260_s5] sm:$0xff] }
 0x347   :  { %6446 = vmatmul.bf16.vlgmr.msrb.gmra.mxu0 %v15978_v61  ;;  %v9969_v61 = vld [vmem:[%s16258_s3 + $0x1e0] sm:$0xf]  ;;  %v5855_v52 = vadd.f32 %v5854_v22, %v5842_v16  ;;  %v9934_v1 = vor.u32 %v10865_v31, %v9931_v18 }
 0x348   :  { %6459 = vmatmul.bf16.vlgmr.msrb.gmra.mxu1 %v15980_v2  ;;  %v10876_v2 = vld [vmem:[%s16258_s3 + $0x1e4] sm:$0xf0]  ;;  %6624 = vmatpush.bf16.msra.mxu0 %v10886_v42 }
 0x349   :  { %6472 = vmatmul.bf16.vlgmr.msrb.gmra.mxu2 %v15982_v62  ;;  %v9970_v62 = vor.u32 %v10876_v2, %v9969_v61  ;;  %v9926_v61 = vor.u32 %v10863_v19, %v9923_v20  ;;  %6637 = vmatpush.bf16.msra.mxu1 %v10894_v44 }
 0x34b   :  { %6426 = vmatpush.bf16.msra.mxu3 %v9970_v62 }
 0x34c   :  { %v5867_v55 = vpop.f32.mrf.mxu2  ;;  %v5843_v8 = vpop.f32.mrf.mxu0 }
 0x34d   :  { %v5880_v6 = vpop.f32.mrf.mxu3  ;;  %v5856_v53 = vpop.f32.mrf.mxu1  ;;  %v5868_v59 = vadd.f32 %v5867_v55, %v5855_v52 }
 0x34f   :  { %6427 = vmatpush.bf16.msra.mxu3 %v9962_v0  ;;  %v5881_v25 = vadd.f32 %v5880_v6, %v5868_v59  ;;  %v10891_v59 = vld [vmem:[%s16260_s5 + $0x60] sm:$0xff] }
 0x353   :  { %6428 = vmatpush.bf16.msra.mxu3 %v9954_v57 }
 0x354   :  { %v5869_v10 = vpop.f32.mrf.mxu2 }
 0x355   :  { %v5882_v26 = vpop.f32.mrf.mxu3  ;;  %v6062_v10 = vperm.slane %v6060_v34, 0 }
 0x357   :  { %6429 = vmatpush.bf16.msra.mxu3 %v9946_v14 }
 0x35b   :  { %6430 = vmatpush.bf16.msra.mxu3 %v9938_v27 }
 0x35f   :  { %6431 = vmatpush.bf16.msra.mxu3 %v9930_v40 }
 0x363   :  { %6432 = vmatpush.bf16.msra.mxu3 %v9922_v41 }
 0x364   :  { %v5893_v39 = vpop.f32.mrf.mxu0 }
 0x365   :  { %v5906_v50 = vpop.f32.mrf.mxu1  ;;  %v5894_v35 = vadd.f32 %v5893_v39, %v5881_v25  ;;  %v10885_v39 = vld [vmem:[%s16260_s5 + $0x30] sm:$0xff] }
 0x366   :  { %6625 = vmatpush.bf16.msra.mxu0 %v10885_v39 }
 0x367   :  { %6477 = vmatpush.bf16.msrb.mxu3 %v9982_v48  ;;  %v5907_v22 = vadd.f32 %v5906_v50, %v5894_v35  ;;  %v10893_v50 = vld [vmem:[%s16260_s5 + $0x70] sm:$0xff] }
 0x368   :  { %6638 = vmatpush.bf16.msra.mxu1 %v10893_v50 }
 0x36a   :  { %6626 = vmatpush.bf16.msra.mxu0 %v10884_v51 }
 0x36b   :  { %6478 = vmatpush.bf16.msrb.mxu3 %v9974_v7  ;;  %v10883_v7 = vld [vmem:[%s16260_s5 + $0x20] sm:$0xff] }
 0x36c   :  { %v5919_v11 = vpop.f32.mrf.mxu2  ;;  %v5895_v29 = vpop.f32.mrf.mxu0  ;;  %6639 = vmatpush.bf16.msra.mxu1 %v10892_v56 }
 0x36d   :  { %v5932_v60 = vpop.f32.mrf.mxu3  ;;  %v5908_v30 = vpop.f32.mrf.mxu1  ;;  %v5920_v2 = vadd.f32 %v5919_v11, %v5907_v22 }
 0x36e   :  { %6627 = vmatpush.bf16.msra.mxu0 %v10883_v7  ;;  %v10880_v30 = vld [vmem:[%s16260_s5 + $0x8] sm:$0xff] }
 0x36f   :  { %6479 = vmatpush.bf16.msrb.mxu3 %v9966_v58  ;;  %v5933_v62 = vadd.f32 %v5932_v60, %v5920_v2  ;;  %v10881_v60 = vld [vmem:[%s16260_s5 + $0x10] sm:$0xff] }
 0x370   :  { %6640 = vmatpush.bf16.msra.mxu1 %v10891_v59 }
 0x372   :  { %6628 = vmatpush.bf16.msra.mxu0 %v10882_v21 }
 0x373   :  { %6480 = vmatpush.bf16.msrb.mxu3 %v9958_v23 }
 0x374   :  { %v5921_v63 = vpop.f32.mrf.mxu2 }
 0x375   :  { %v5934_v28 = vpop.f32.mrf.mxu3  ;;  %v10887_v63 = vld [vmem:[%s16260_s5 + $0x40] sm:$0xff] }
 0x376   :  { %6629 = vmatpush.bf16.msra.mxu0 %v10881_v60 }
 0x377   :  { %6481 = vmatpush.bf16.msrb.mxu3 %v9950_v37  ;;  %v10890_v37 = vld [vmem:[%s16260_s5 + $0x58] sm:$0xff] }
 0x378   :  { %6641 = vmatpush.bf16.msra.mxu1 %v10890_v37 }
 0x37a   :  { %6630 = vmatpush.bf16.msra.mxu0 %v10880_v30 }
 0x37b   :  { %6482 = vmatpush.bf16.msrb.mxu3 %v9942_v49 }
 0x37c   :  { %6642 = vmatpush.bf16.msra.mxu1 %v10889_v45 }
 0x37e   :  { %6631 = vmatpush.bf16.msra.mxu0 %v10879_v32 }
 0x37f   :  { %6483 = vmatpush.bf16.msrb.mxu3 %v9934_v1 }
 0x380   :  { %6643 = vmatpush.bf16.msra.mxu1 %v10888_v46 }
 0x383   :  { %6484 = vmatpush.bf16.msrb.mxu3 %v9926_v61  ;;  %v10895_v61 = vld [vmem:[%s16261_s6] ss:$0 sm:$0xff] }
 0x384   :  { %v5945_v3 = vpop.f32.mrf.mxu0  ;;  %6644 = vmatpush.bf16.msra.mxu1 %v10887_v63 }
 0x385   :  { %v5958_v4 = vpop.f32.mrf.mxu1  ;;  %v5946_v55 = vadd.f32 %v5945_v3, %v5933_v62 }
 0x387   :  { %v5959_v0 = vadd.f32 %v5958_v4, %v5946_v55 }
 0x38c   :  { %v5971_v6 = vpop.f32.mrf.mxu2  ;;  %v5947_v13 = vpop.f32.mrf.mxu0 }
 0x38d   :  { %v5984_v8 = vpop.f32.mrf.mxu3  ;;  %v5972_v9 = vadd.f32 %v5971_v6, %v5959_v0  ;;  %v5960_v53 = vpop.f32.mrf.mxu1 }
 0x38f   :  { %v5985_v57 = vadd.f32 %v5984_v8, %v5972_v9 }
 0x391   :  { %v5991_v5 = vmax.f32 %v5985_v57, 0.0 }
 0x393   :  { %v5995_v17 = vpack.c.bf16 %v5991_v5, %v5991_v5 }
 0x394   :  { %v5973_v14 = vpop.f32.mrf.mxu2 }
 0x395   :  { %v5986_v24 = vpop.f32.mrf.mxu3  ;;  %6433 = vmatmul.bf16.vlgmr.msra.gmra.mxu3 %v5995_v17 }
 0x3a4   :  { %v6395_v26 = vpop.f32.mrf.mxu0 }
 0x3a5   :  { %v6396_v27 = vadd.f32 %v6395_v26, %v6062_v10  ;;  %v6408_v38 = vpop.f32.mrf.mxu1  ;;  %6485 = vmatmul.bf16.vlgmr.msrb.gmra.mxu3 %v5995_v17 }
 0x3a7   :  { %v6409_v15 = vadd.f32 %v6408_v38, %v6396_v27 }
 0x3ac   :  { %v6421_v40 = vpop.f32.mrf.mxu2  ;;  %v6397_v47 = vpop.f32.mrf.mxu0 }
 0x3ad   :  { %v6422_v43 = vadd.f32 %v6421_v40, %v6409_v15  ;;  %v6410_v41 = vpop.f32.mrf.mxu1 }
 0x3b4   :  { %v6423_v48 = vpop.f32.mrf.mxu2 }
 0x3c4   :  { %v6447_v58 = vpop.f32.mrf.mxu0 }
 0x3c5   :  { %v6460_v11 = vpop.f32.mrf.mxu1  ;;  %v6448_v16 = vadd.f32 %v6447_v58, %v6063_v12 }
 0x3c7   :  { %v6461_v29 = vadd.f32 %v6460_v11, %v6448_v16 }
 0x3cc   :  { %v6473_v54 = vpop.f32.mrf.mxu2  ;;  %v6449_v23 = vpop.f32.mrf.mxu0 }
 0x3cd   :  { %v6474_v33 = vadd.f32 %v6473_v54, %v6461_v29  ;;  %v6462_v52 = vpop.f32.mrf.mxu1 }
 0x3d4   :  { %v6475_v36 = vpop.f32.mrf.mxu2 }
 0x418   :  { %v6434_v28 = vpop.f32.mrf.mxu3 }
 0x419   :  { %v6435_v49 = vadd.f32 %v6434_v28, %v6422_v43 }
 0x41b   :  { %v6490_v31 = vpack.c.bf16 %v6435_v49, %v6435_v49 }
 0x41d   :  { %6632 = vmatmul.bf16.vlgmr.msra.gmra.mxu0 %v6490_v31 }
 0x420   :  { %v6436_v18 = vpop.f32.mrf.mxu3 }
 0x428   :  { %v6486_v25 = vpop.f32.mrf.mxu3 }
 0x429   :  { %v6487_v35 = vadd.f32 %v6486_v25, %v6474_v33 }
 0x42b   :  { %v6491_v1 = vpack.c.bf16 %v6487_v35, %v6487_v35 }
 0x42d   :  { %6645 = vmatmul.bf16.vlgmr.msra.gmra.mxu1 %v6491_v1 }
 0x430   :  { %v6488_v19 = vpop.f32.mrf.mxu3 }
 0x49a   :  { %v6633_v20 = vpop.f32.mrf.mxu0 }
 0x49b   :  { %v6634_v2 = vadd.f32 %v10895_v61, %v6633_v20 }
 0x4a2   :  { %v6635_v22 = vpop.f32.mrf.mxu0 }
 0x4aa   :  { %v6646_v62 = vpop.f32.mrf.mxu1 }
 0x4ab   :  { %v6647_v3 = vadd.f32 %v6646_v62, %v6634_v2 }
 0x4ad   :  { %6650 = vst [vmem:[%s16262_s7] sm:$0xff] %v6647_v3 }
 0x4b2   :  { %v6648_v4 = vpop.f32.mrf.mxu1 }

</bundles_post_ra>
